<compile_context>
chip_gen: v6e
topology: v6e:2x2x1
jax: 0.10.0
libtpu: 0.0.40
codegen_flags: <defaults>
</compile_context>

<pallas_src>
import functools

import jax
import jax.numpy as jnp
from jax.experimental import pallas as pl
from jax.experimental.pallas import tpu as pltpu

LANE = 128          # TPU lane width; every flat activation width is padded to this
NEG_INF = -1e30     # pad value for unused logit lanes (exp -> 0, softmax exact)


def _round_up(n, m):
    return ((n + m - 1) // m) * m


# --------------------------------------------------------------------------
# Fused forward kernel: conv branches + pooling + fusion head, all in VMEM
# --------------------------------------------------------------------------
def _tf_cnn_kernel(*refs, n_layers, R, MB):
    refs = list(refs)
    out_ref = refs.pop()                          # single output ref (last)
    eeg_ref, oxy_ref, deoxy_ref = refs[:3]

    cursor = 3
    branch_layers = []
    for n in n_layers:                            # static python structure
        layers = []
        for _ in range(n):
            layers.append((refs[cursor], refs[cursor + 1]))
            cursor += 2
        branch_layers.append(layers)
    wz_ref, wl_ref, bl_ref = refs[cursor:cursor + 3]

    def run_chain(x_ref, layers):
        x = x_ref[...]                            # (TB, W) bf16, VMEM resident
        for t_ref, sh_ref in layers:
            x = jnp.maximum(x, 0.0)               # ReLU precedes every conv
            x = jnp.dot(x.astype(jnp.bfloat16), t_ref[...],
                        preferred_element_type=jnp.float32)
            x = x + sh_ref[...]                   # folded BatchNorm shift (f32)
        return x                                  # (TB, CAT) f32; avg-pool folded in,
                                                  # branch output in its own lane slot

    x1 = run_chain(eeg_ref, branch_layers[0])
    x2 = run_chain(oxy_ref, branch_layers[1])
    x3 = run_chain(deoxy_ref, branch_layers[2])
    # branch outputs occupy disjoint lane slots -> concat is a free VPU add
    xcat = (x1 + x2 + x3).astype(jnp.bfloat16)    # (TB, CAT)

    # single block-diagonal matmul produces [z1 | z2 | z3]; w_out is already
    # folded into the z1 block on the host.
    z = jnp.dot(xcat, wz_ref[...], preferred_element_type=jnp.float32)  # (TB, 3*R*MB)
    RB = R * MB
    prod = z[:, 0:RB] * z[:, RB:2 * RB] * z[:, 2 * RB:3 * RB]           # (TB, R*MB)

    # rank contraction: whole-vreg (128-lane-aligned) VPU adds
    acc = prod[:, 0:MB]
    for r in range(1, R):                          # R is static (=4)
        acc = acc + prod[:, r * MB:(r + 1) * MB]

    # F.normalize(p=2, dim=1); padded lanes are exactly zero so the norm is exact
    nrm_sq = jnp.sum(acc * acc, axis=1, keepdims=True)
    xn = acc * jax.lax.rsqrt(jnp.maximum(nrm_sq, 1e-24))

    # Tanh -> Linear -> Softmax over a lane-dense 128-wide logit slab
    h = jnp.tanh(xn)
    logits = jnp.dot(h.astype(jnp.bfloat16), wl_ref[...],
                     preferred_element_type=jnp.float32) + bl_ref[...]
    mx = jnp.max(logits, axis=-1, keepdims=True)
    e = jnp.exp(logits - mx)                       # pad lanes -> exp(-1e30) = 0
    out_ref[...] = e / jnp.sum(e, axis=-1, keepdims=True)


# --------------------------------------------------------------------------
# One-time (outside-jit) parameter folding: conv+BN -> dense matmul operands
# --------------------------------------------------------------------------
def _conv_bn_to_matmul(w, gamma, beta, rmean, rvar, stride, L_in, *, pool,
                       channel_major_in=False, eps=1e-5):
    """Lower ReLU->Conv1d(bias=False)->BN(eval) to: y_flat = relu(x_flat) @ T + shift.

    x_flat[b, l*C_in + ci] = x[b, ci, l]   (or ci*L_in + l if channel_major_in)
    y_flat[b, j*C_out + co] = y[b, co, j]
    When pool=True, AdaptiveAvgPool1d(1) is folded in and T maps to (C_out,).
    """
    C_out, C_in, K = w.shape
    L_out = (L_in - K) // stride + 1
    inv_std = gamma / jnp.sqrt(rvar + eps)
    w_fold = w * inv_std[:, None, None]                     # fold BN scale into weight
    shift = beta - rmean * inv_std                          # per-channel BN shift

    l = jnp.arange(L_in)
    j = jnp.arange(L_out)
    rel = l[:, None] - (j * stride)[None, :]                # k = l - j*stride
    valid = (rel >= 0) & (rel < K)
    wk = w_fold[:, :, jnp.clip(rel, 0, K - 1)]              # (C_out, C_in, L_in, L_out)
    wk = jnp.where(valid[None, None], wk, 0.0)
    if channel_major_in:
        T = jnp.transpose(wk, (1, 2, 3, 0)).reshape(C_in * L_in, L_out * C_out)
    else:
        T = jnp.transpose(wk, (2, 1, 3, 0)).reshape(L_in * C_in, L_out * C_out)

    if pool:                                                # fold AdaptiveAvgPool1d(1)
        T = T.reshape(T.shape[0], L_out, C_out).mean(axis=1)
        shift_row = shift.reshape(1, C_out)
    else:
        shift_row = jnp.broadcast_to(shift.reshape(1, 1, C_out),
                                     (1, L_out, C_out)).reshape(1, L_out * C_out)
    return T, shift_row, L_out


def prepare_params(params, L_eeg, L_nirs):
    """Fold PyTorch-style parameters into lane-padded bf16 matmul operands.
    Run OUTSIDE jit, once. Returned dict contains only arrays (jit-friendly)."""
    w_core1, w_core2, w_core3 = params["w_core1"], params["w_core2"], params["w_core3"]
    R, C1, M = w_core1.shape
    C2, C3 = w_core2.shape[1], w_core3.shape[1]
    CAT = _round_up(C1 + C2 + C3, LANE)   # lane-padded width of [x1|x2|x3]
    MB = _round_up(M, LANE)               # lane-padded rank-block width
    OUT_PAD = LANE                        # lane-dense logit slab width

    def prep_branch(raw, L, col_off):
        out = []
        n = len(raw)
        rows_pad = _round_up(raw[0][0].shape[1] * L, LANE)   # C_in * L_in, padded
        for i, (w, g, b, rm, rv, s) in enumerate(raw):       # s is a static python int
            T, sh, L = _conv_bn_to_matmul(w, g, b, rm, rv, s, L,
                                          pool=(i == n - 1),
                                          channel_major_in=(i == 0))
            if i == n - 1:
                cols_pad, off = CAT, col_off                 # pooled output -> lane slot
            else:
                cols_pad, off = _round_up(T.shape[1], LANE), 0
            T_pad = jnp.zeros((rows_pad, cols_pad), jnp.float32)
            T_pad = T_pad.at[:T.shape[0], off:off + T.shape[1]].set(T)
            sh_pad = jnp.zeros((1, cols_pad), jnp.float32)
            sh_pad = sh_pad.at[:, off:off + sh.shape[1]].set(sh)
            out.append((T_pad.astype(jnp.bfloat16), sh_pad))  # shift stays f32 (tiny)
            rows_pad = cols_pad                               # next layer's input rows
        return out

    # fused block-diagonal core weight: reads [x1|x2|x3] lanes, emits [z1|z2|z3];
    # each rank block padded to MB lanes; w_out folded into the z1 block.
    wz = jnp.zeros((CAT, 3 * R * MB), jnp.float32)
    cores = [(w_core1 * params["w_out"][:, None, None], 0, 0),
             (w_core2, 1, C1),
             (w_core3, 2, C1 + C2)]
    for wc, bidx, row_off in cores:
        Cc = wc.shape[1]
        col_base = bidx * R * MB
        for r in range(R):
            wz = wz.at[row_off:row_off + Cc,
                       col_base + r * MB: col_base + r * MB + M].set(wc[r])

    n_cls = params["lin_w"].shape[0]
    wl = jnp.zeros((MB, OUT_PAD), jnp.float32)
    wl = wl.at[:M, :n_cls].set(params["lin_w"].T)
    bl = jnp.full((1, OUT_PAD), NEG_INF, jnp.float32)
    bl = bl.at[0, :n_cls].set(params["lin_b"])

    return {
        "eeg": prep_branch(params["eeg"], L_eeg, 0),
        "oxy": prep_branch(params["oxy"], L_nirs, C1),
        "deoxy": prep_branch(params["deoxy"], L_nirs, C1 + C2),
        "wz": wz.astype(jnp.bfloat16),
        "wl": wl.astype(jnp.bfloat16),
        "bl": bl,
    }


# --------------------------------------------------------------------------
# Forward pass: one pallas_call for the whole model (weight-stationary grid)
# --------------------------------------------------------------------------
def tf_cnn_forward(EEG_x, NIRS_oxy_x, NIRS_deoxy_x, prep):
    B = EEG_x.shape[0]
    MB, OUT_PAD = prep["wl"].shape
    R = prep["wz"].shape[1] // (3 * MB)
    n_layers = (len(prep["eeg"]), len(prep["oxy"]), len(prep["deoxy"]))

    # batch tiling: pad to >=8 sublanes; cap tile at 128 MXU rows
    B8 = _round_up(max(B, 8), 8)
    TB = min(B8, 128)
    B_pad = _round_up(B8, TB)
    grid = (B_pad // TB,)

    def prep_input(x, rows_pad):
        xf = x.reshape(x.shape[0], -1).astype(jnp.bfloat16)   # channel-major flatten
        return jnp.pad(xf, ((0, B_pad - x.shape[0]), (0, rows_pad - xf.shape[1])))

    act_args = [prep_input(EEG_x, prep["eeg"][0][0].shape[0]),
                prep_input(NIRS_oxy_x, prep["oxy"][0][0].shape[0]),
                prep_input(NIRS_deoxy_x, prep["deoxy"][0][0].shape[0])]
    weight_args = []
    for name in ("eeg", "oxy", "deoxy"):
        for T, sh in prep[name]:
            weight_args += [T, sh]
    weight_args += [prep["wz"], prep["wl"], prep["bl"]]

    # batch-tiled blocks for activations; constant-index (weight-stationary) blocks
    # for every folded weight -> no weight re-DMA across grid steps.
    in_specs = [pl.BlockSpec((TB, a.shape[1]), lambda b: (b, 0)) for a in act_args]
    in_specs += [pl.BlockSpec(w.shape, lambda b: (0, 0)) for w in weight_args]
    out_spec = pl.BlockSpec((TB, OUT_PAD), lambda b: (b, 0))

    out = pl.pallas_call(
        functools.partial(_tf_cnn_kernel, n_layers=n_layers, R=R, MB=MB),
        grid=grid,
        in_specs=in_specs,
        out_specs=out_spec,
        out_shape=jax.ShapeDtypeStruct((B_pad, OUT_PAD), jnp.float32),
        compiler_params=pltpu.CompilerParams(
            dimension_semantics=("parallel",)),
    )(*act_args, *weight_args)
    return out[:B, :2]                      # drop batch / lane padding


# --------------------------------------------------------------------------
# Parameter construction + pure-JAX reference
# --------------------------------------------------------------------------
def make_branch_params(key, layer_specs):
    """layer_specs: list of (C_in, C_out, K, stride) — static Python ints."""
    params = []
    for (ci, co, k, s) in layer_specs:
        key, wk = jax.random.split(key)
        w = jax.random.normal(wk, (co, ci, k), jnp.float32) * 0.1
        gamma = jnp.ones((co,), jnp.float32)
        beta = jnp.zeros((co,), jnp.float32)
        rmean = jnp.zeros((co,), jnp.float32)
        rvar = jnp.ones((co,), jnp.float32)
        params.append((w, gamma, beta, rmean, rvar, s))
    return params, key


def _ref_relu_conv_bn(x, w, g, b, rm, rv, stride, eps=1e-5):
    C_out, C_in, K = w.shape
    L = x.shape[2]
    L_out = (L - K) // stride + 1
    xr = jnp.maximum(x, 0.0)
    idx = (jnp.arange(L_out) * stride)[:, None] + jnp.arange(K)[None, :]
    patches = xr[:, :, idx]                                   # (B, C_in, L_out, K)
    y = jnp.einsum('bcjk,ock->boj', patches, w, precision='highest')
    inv = g / jnp.sqrt(rv + eps)
    return y * inv[None, :, None] + (b - rm * inv)[None, :, None]


def ref_forward(EEG_x, NIRS_oxy_x, NIRS_deoxy_x, params):
    def run(x, ps):
        for (w, g, b, rm, rv, s) in ps:
            x = _ref_relu_conv_bn(x, w, g, b, rm, rv, s)
        return jnp.mean(x, axis=-1)
    x1 = run(EEG_x, params["eeg"])
    x2 = run(NIRS_oxy_x, params["oxy"])
    x3 = run(NIRS_deoxy_x, params["deoxy"])
    z1 = jnp.einsum('bc,rco->bro', x1, params["w_core1"], precision='highest')
    z2 = jnp.einsum('bc,rco->bro', x2, params["w_core2"], precision='highest')
    z3 = jnp.einsum('bc,rco->bro', x3, params["w_core3"], precision='highest')
    x = jnp.einsum('bro,bro,bro,r->bo', z1, z2, z3, params["w_out"], precision='highest')
    nrm = jnp.sqrt(jnp.sum(x * x, axis=1, keepdims=True))
    x = x / jnp.maximum(nrm, 1e-12)
    h = jnp.tanh(x)
    logits = h @ params["lin_w"].T + params["lin_b"][None, :]
    return jax.nn.softmax(logits, axis=-1)


if __name__ == "__main__":
    EEG_channel, NIRS_channel, rank, middle_num = 4, 4, 4, 32
    B, L_eeg, L_nirs = 2, 128, 32

    key = jax.random.PRNGKey(0)

    C = EEG_channel
    eeg_specs = [(C, 2 * C, 9, 4), (2 * C, 2 * C, 3, 1), (2 * C, 2 * C, 3, 1),
                 (2 * C, 4 * C, 9, 4), (4 * C, 4 * C, 3, 1), (4 * C, 4 * C, 3, 1)]
    Cn = NIRS_channel
    nirs_specs = [(Cn, 2 * Cn, 5, 2), (2 * Cn, 2 * Cn, 3, 1), (2 * Cn, 2 * Cn, 3, 1),
                  (2 * Cn, 4 * Cn, 5, 1), (4 * Cn, 4 * Cn, 3, 1), (4 * Cn, 4 * Cn, 3, 1)]

    eeg_params, key = make_branch_params(key, eeg_specs)
    oxy_params, key = make_branch_params(key, nirs_specs)
    deoxy_params, key = make_branch_params(key, nirs_specs)

    k1, k2, k3, k4, k5, k6, kx1, kx2, kx3 = jax.random.split(key, 9)
    params = {
        "eeg": eeg_params, "oxy": oxy_params, "deoxy": deoxy_params,
        "w_core1": jax.random.normal(k1, (rank, EEG_channel * 4, middle_num), jnp.float32)
                   / (EEG_channel * 4),
        "w_core2": jax.random.normal(k2, (rank, NIRS_channel * 4, middle_num), jnp.float32)
                   / (NIRS_channel * 4),
        "w_core3": jax.random.normal(k3, (rank, NIRS_channel * 4, middle_num), jnp.float32)
                   / (NIRS_channel * 4),
        "w_out": jax.random.normal(k4, (rank,), jnp.float32) / rank,
        "lin_w": jax.random.normal(k5, (2, middle_num), jnp.float32) * 0.1,
        "lin_b": jax.random.normal(k6, (2,), jnp.float32) * 0.1,
    }

    EEG_x = jax.random.normal(kx1, (B, EEG_channel, L_eeg), jnp.float32)
    NIRS_oxy_x = jax.random.normal(kx2, (B, NIRS_channel, L_nirs), jnp.float32)
    NIRS_deoxy_x = jax.random.normal(kx3, (B, NIRS_channel, L_nirs), jnp.float32)

    # One-time parameter folding, OUTSIDE jit (strides stay static Python ints).
    prep = prepare_params(params, L_eeg, L_nirs)

    fwd = jax.jit(tf_cnn_forward)
    out = jax.block_until_ready(fwd(EEG_x, NIRS_oxy_x, NIRS_deoxy_x, prep))

    assert out.shape == (B, 2)
    assert bool(jnp.all(jnp.isfinite(out)))
    assert bool(jnp.allclose(jnp.sum(out, axis=-1), 1.0, atol=1e-5))

    # pure-JAX reference check (loose tolerance for bf16 weights / MXU precision)
    ref = ref_forward(EEG_x, NIRS_oxy_x, NIRS_deoxy_x, params)
    assert bool(jnp.allclose(out, ref, atol=3e-2, rtol=3e-2))
    print("KERNEL_OK")
</pallas_src>

<mosaic_0001>
module attributes {stable_mosaic.version = 11 : i64} {
  func.func @_tf_cnn_kernel(%arg0: i32, %arg1: memref<8x512xbf16, #tpu.memory_space<vmem>>, %arg2: memref<8x128xbf16, #tpu.memory_space<vmem>>, %arg3: memref<8x128xbf16, #tpu.memory_space<vmem>>, %arg4: memref<512x256xbf16, #tpu.memory_space<vmem>>, %arg5: memref<1x256xf32, #tpu.memory_space<vmem>>, %arg6: memref<256x256xbf16, #tpu.memory_space<vmem>>, %arg7: memref<1x256xf32, #tpu.memory_space<vmem>>, %arg8: memref<256x256xbf16, #tpu.memory_space<vmem>>, %arg9: memref<1x256xf32, #tpu.memory_space<vmem>>, %arg10: memref<256x128xbf16, #tpu.memory_space<vmem>>, %arg11: memref<1x128xf32, #tpu.memory_space<vmem>>, %arg12: memref<128x128xbf16, #tpu.memory_space<vmem>>, %arg13: memref<1x128xf32, #tpu.memory_space<vmem>>, %arg14: memref<128x128xbf16, #tpu.memory_space<vmem>>, %arg15: memref<1x128xf32, #tpu.memory_space<vmem>>, %arg16: memref<128x128xbf16, #tpu.memory_space<vmem>>, %arg17: memref<1x128xf32, #tpu.memory_space<vmem>>, %arg18: memref<128x128xbf16, #tpu.memory_space<vmem>>, %arg19: memref<1x128xf32, #tpu.memory_space<vmem>>, %arg20: memref<128x128xbf16, #tpu.memory_space<vmem>>, %arg21: memref<1x128xf32, #tpu.memory_space<vmem>>, %arg22: memref<128x128xbf16, #tpu.memory_space<vmem>>, %arg23: memref<1x128xf32, #tpu.memory_space<vmem>>, %arg24: memref<128x128xbf16, #tpu.memory_space<vmem>>, %arg25: memref<1x128xf32, #tpu.memory_space<vmem>>, %arg26: memref<128x128xbf16, #tpu.memory_space<vmem>>, %arg27: memref<1x128xf32, #tpu.memory_space<vmem>>, %arg28: memref<128x128xbf16, #tpu.memory_space<vmem>>, %arg29: memref<1x128xf32, #tpu.memory_space<vmem>>, %arg30: memref<128x128xbf16, #tpu.memory_space<vmem>>, %arg31: memref<1x128xf32, #tpu.memory_space<vmem>>, %arg32: memref<128x128xbf16, #tpu.memory_space<vmem>>, %arg33: memref<1x128xf32, #tpu.memory_space<vmem>>, %arg34: memref<128x128xbf16, #tpu.memory_space<vmem>>, %arg35: memref<1x128xf32, #tpu.memory_space<vmem>>, %arg36: memref<128x128xbf16, #tpu.memory_space<vmem>>, %arg37: memref<1x128xf32, #tpu.memory_space<vmem>>, %arg38: memref<128x128xbf16, #tpu.memory_space<vmem>>, %arg39: memref<1x128xf32, #tpu.memory_space<vmem>>, %arg40: memref<128x1536xbf16, #tpu.memory_space<vmem>>, %arg41: memref<128x128xbf16, #tpu.memory_space<vmem>>, %arg42: memref<1x128xf32, #tpu.memory_space<vmem>>, %arg43: memref<8x128xf32, #tpu.memory_space<vmem>>) attributes {dimension_semantics = [#tpu.dimension_semantics<parallel>], iteration_bounds = array<i64: 1>, scalar_prefetch = 0 : i64, scratch_operands = 0 : i64, tpu.core_type = #tpu.core_type<tc>, window_params = [{transform_indices = @transform_0, window_bounds = array<i64: 8, 512>}, {transform_indices = @transform_1, window_bounds = array<i64: 8, 128>}, {transform_indices = @transform_2, window_bounds = array<i64: 8, 128>}, {pipeline_mode = #tpu.pipeline_mode<synchronous>, transform_indices = @transform_3, window_bounds = array<i64: 512, 256>}, {pipeline_mode = #tpu.pipeline_mode<synchronous>, transform_indices = @transform_4, window_bounds = array<i64: 1, 256>}, {pipeline_mode = #tpu.pipeline_mode<synchronous>, transform_indices = @transform_5, window_bounds = array<i64: 256, 256>}, {pipeline_mode = #tpu.pipeline_mode<synchronous>, transform_indices = @transform_6, window_bounds = array<i64: 1, 256>}, {pipeline_mode = #tpu.pipeline_mode<synchronous>, transform_indices = @transform_7, window_bounds = array<i64: 256, 256>}, {pipeline_mode = #tpu.pipeline_mode<synchronous>, transform_indices = @transform_8, window_bounds = array<i64: 1, 256>}, {pipeline_mode = #tpu.pipeline_mode<synchronous>, transform_indices = @transform_9, window_bounds = array<i64: 256, 128>}, {pipeline_mode = #tpu.pipeline_mode<synchronous>, transform_indices = @transform_10, window_bounds = array<i64: 1, 128>}, {pipeline_mode = #tpu.pipeline_mode<synchronous>, transform_indices = @transform_11, window_bounds = array<i64: 128, 128>}, {pipeline_mode = #tpu.pipeline_mode<synchronous>, transform_indices = @transform_12, window_bounds = array<i64: 1, 128>}, {pipeline_mode = #tpu.pipeline_mode<synchronous>, transform_indices = @transform_13, window_bounds = array<i64: 128, 128>}, {pipeline_mode = #tpu.pipeline_mode<synchronous>, transform_indices = @transform_14, window_bounds = array<i64: 1, 128>}, {pipeline_mode = #tpu.pipeline_mode<synchronous>, transform_indices = @transform_15, window_bounds = array<i64: 128, 128>}, {pipeline_mode = #tpu.pipeline_mode<synchronous>, transform_indices = @transform_16, window_bounds = array<i64: 1, 128>}, {pipeline_mode = #tpu.pipeline_mode<synchronous>, transform_indices = @transform_17, window_bounds = array<i64: 128, 128>}, {pipeline_mode = #tpu.pipeline_mode<synchronous>, transform_indices = @transform_18, window_bounds = array<i64: 1, 128>}, {pipeline_mode = #tpu.pipeline_mode<synchronous>, transform_indices = @transform_19, window_bounds = array<i64: 128, 128>}, {pipeline_mode = #tpu.pipeline_mode<synchronous>, transform_indices = @transform_20, window_bounds = array<i64: 1, 128>}, {pipeline_mode = #tpu.pipeline_mode<synchronous>, transform_indices = @transform_21, window_bounds = array<i64: 128, 128>}, {pipeline_mode = #tpu.pipeline_mode<synchronous>, transform_indices = @transform_22, window_bounds = array<i64: 1, 128>}, {pipeline_mode = #tpu.pipeline_mode<synchronous>, transform_indices = @transform_23, window_bounds = array<i64: 128, 128>}, {pipeline_mode = #tpu.pipeline_mode<synchronous>, transform_indices = @transform_24, window_bounds = array<i64: 1, 128>}, {pipeline_mode = #tpu.pipeline_mode<synchronous>, transform_indices = @transform_25, window_bounds = array<i64: 128, 128>}, {pipeline_mode = #tpu.pipeline_mode<synchronous>, transform_indices = @transform_26, window_bounds = array<i64: 1, 128>}, {pipeline_mode = #tpu.pipeline_mode<synchronous>, transform_indices = @transform_27, window_bounds = array<i64: 128, 128>}, {pipeline_mode = #tpu.pipeline_mode<synchronous>, transform_indices = @transform_28, window_bounds = array<i64: 1, 128>}, {pipeline_mode = #tpu.pipeline_mode<synchronous>, transform_indices = @transform_29, window_bounds = array<i64: 128, 128>}, {pipeline_mode = #tpu.pipeline_mode<synchronous>, transform_indices = @transform_30, window_bounds = array<i64: 1, 128>}, {pipeline_mode = #tpu.pipeline_mode<synchronous>, transform_indices = @transform_31, window_bounds = array<i64: 128, 128>}, {pipeline_mode = #tpu.pipeline_mode<synchronous>, transform_indices = @transform_32, window_bounds = array<i64: 1, 128>}, {pipeline_mode = #tpu.pipeline_mode<synchronous>, transform_indices = @transform_33, window_bounds = array<i64: 128, 128>}, {pipeline_mode = #tpu.pipeline_mode<synchronous>, transform_indices = @transform_34, window_bounds = array<i64: 1, 128>}, {pipeline_mode = #tpu.pipeline_mode<synchronous>, transform_indices = @transform_35, window_bounds = array<i64: 128, 128>}, {pipeline_mode = #tpu.pipeline_mode<synchronous>, transform_indices = @transform_36, window_bounds = array<i64: 1, 128>}, {pipeline_mode = #tpu.pipeline_mode<synchronous>, transform_indices = @transform_37, window_bounds = array<i64: 128, 128>}, {pipeline_mode = #tpu.pipeline_mode<synchronous>, transform_indices = @transform_38, window_bounds = array<i64: 1, 128>}, {pipeline_mode = #tpu.pipeline_mode<synchronous>, transform_indices = @transform_39, window_bounds = array<i64: 128, 1536>}, {pipeline_mode = #tpu.pipeline_mode<synchronous>, transform_indices = @transform_40, window_bounds = array<i64: 128, 128>}, {pipeline_mode = #tpu.pipeline_mode<synchronous>, transform_indices = @transform_41, window_bounds = array<i64: 1, 128>}, {transform_indices = @transform_42, window_bounds = array<i64: 8, 128>}]} {
    %c0 = arith.constant 0 : index
    %c0_0 = arith.constant 0 : index
    %0 = vector.load %arg1[%c0, %c0_0] : memref<8x512xbf16, #tpu.memory_space<vmem>>, vector<8x512xbf16>
    %cst = arith.constant 0.000000e+00 : bf16
    %1 = vector.broadcast %cst : bf16 to vector<8x512xbf16>
    %2 = arith.maximumf %0, %1 : vector<8x512xbf16>
    %c0_1 = arith.constant 0 : index
    %c0_2 = arith.constant 0 : index
    %3 = vector.load %arg4[%c0_1, %c0_2] : memref<512x256xbf16, #tpu.memory_space<vmem>>, vector<512x256xbf16>
    %cst_3 = arith.constant dense<0.000000e+00> : vector<8x256xf32>
    %4 = tpu.matmul %2, %3, %cst_3 {dimension_numbers = #tpu.dot_dimension_numbers<[1], [0], [0], [1], [0, 0, 1, 1], [], []>} : vector<8x512xbf16>, vector<512x256xbf16>, vector<8x256xf32> -> vector<8x256xf32>
    %c0_4 = arith.constant 0 : index
    %c0_5 = arith.constant 0 : index
    %5 = vector.load %arg5[%c0_4, %c0_5] : memref<1x256xf32, #tpu.memory_space<vmem>>, vector<1x256xf32>
    %6 = vector.broadcast %5 : vector<1x256xf32> to vector<8x256xf32>
    %7 = arith.addf %4, %6 : vector<8x256xf32>
    %cst_6 = arith.constant 0.000000e+00 : f32
    %8 = vector.broadcast %cst_6 : f32 to vector<8x256xf32>
    %9 = arith.maximumf %7, %8 : vector<8x256xf32>
    %10 = arith.truncf %9 : vector<8x256xf32> to vector<8x256xbf16>
    %c0_7 = arith.constant 0 : index
    %c0_8 = arith.constant 0 : index
    %11 = vector.load %arg6[%c0_7, %c0_8] : memref<256x256xbf16, #tpu.memory_space<vmem>>, vector<256x256xbf16>
    %cst_9 = arith.constant dense<0.000000e+00> : vector<8x256xf32>
    %12 = tpu.matmul %10, %11, %cst_9 {dimension_numbers = #tpu.dot_dimension_numbers<[1], [0], [0], [1], [0, 0, 1, 1], [], []>} : vector<8x256xbf16>, vector<256x256xbf16>, vector<8x256xf32> -> vector<8x256xf32>
    %c0_10 = arith.constant 0 : index
    %c0_11 = arith.constant 0 : index
    %13 = vector.load %arg7[%c0_10, %c0_11] : memref<1x256xf32, #tpu.memory_space<vmem>>, vector<1x256xf32>
    %14 = vector.broadcast %13 : vector<1x256xf32> to vector<8x256xf32>
    %15 = arith.addf %12, %14 : vector<8x256xf32>
    %cst_12 = arith.constant 0.000000e+00 : f32
    %16 = vector.broadcast %cst_12 : f32 to vector<8x256xf32>
    %17 = arith.maximumf %15, %16 : vector<8x256xf32>
    %18 = arith.truncf %17 : vector<8x256xf32> to vector<8x256xbf16>
    %c0_13 = arith.constant 0 : index
    %c0_14 = arith.constant 0 : index
    %19 = vector.load %arg8[%c0_13, %c0_14] : memref<256x256xbf16, #tpu.memory_space<vmem>>, vector<256x256xbf16>
    %cst_15 = arith.constant dense<0.000000e+00> : vector<8x256xf32>
    %20 = tpu.matmul %18, %19, %cst_15 {dimension_numbers = #tpu.dot_dimension_numbers<[1], [0], [0], [1], [0, 0, 1, 1], [], []>} : vector<8x256xbf16>, vector<256x256xbf16>, vector<8x256xf32> -> vector<8x256xf32>
    %c0_16 = arith.constant 0 : index
    %c0_17 = arith.constant 0 : index
    %21 = vector.load %arg9[%c0_16, %c0_17] : memref<1x256xf32, #tpu.memory_space<vmem>>, vector<1x256xf32>
    %22 = vector.broadcast %21 : vector<1x256xf32> to vector<8x256xf32>
    %23 = arith.addf %20, %22 : vector<8x256xf32>
    %cst_18 = arith.constant 0.000000e+00 : f32
    %24 = vector.broadcast %cst_18 : f32 to vector<8x256xf32>
    %25 = arith.maximumf %23, %24 : vector<8x256xf32>
    %26 = arith.truncf %25 : vector<8x256xf32> to vector<8x256xbf16>
    %c0_19 = arith.constant 0 : index
    %c0_20 = arith.constant 0 : index
    %27 = vector.load %arg10[%c0_19, %c0_20] : memref<256x128xbf16, #tpu.memory_space<vmem>>, vector<256x128xbf16>
    %cst_21 = arith.constant dense<0.000000e+00> : vector<8x128xf32>
    %28 = tpu.matmul %26, %27, %cst_21 {dimension_numbers = #tpu.dot_dimension_numbers<[1], [0], [0], [1], [0, 0, 1, 1], [], []>} : vector<8x256xbf16>, vector<256x128xbf16>, vector<8x128xf32> -> vector<8x128xf32>
    %c0_22 = arith.constant 0 : index
    %c0_23 = arith.constant 0 : index
    %29 = vector.load %arg11[%c0_22, %c0_23] : memref<1x128xf32, #tpu.memory_space<vmem>>, vector<1x128xf32>
    %30 = vector.broadcast %29 : vector<1x128xf32> to vector<8x128xf32>
    %31 = arith.addf %28, %30 : vector<8x128xf32>
    %cst_24 = arith.constant 0.000000e+00 : f32
    %32 = vector.broadcast %cst_24 : f32 to vector<8x128xf32>
    %33 = arith.maximumf %31, %32 : vector<8x128xf32>
    %34 = arith.truncf %33 : vector<8x128xf32> to vector<8x128xbf16>
    %c0_25 = arith.constant 0 : index
    %c0_26 = arith.constant 0 : index
    %35 = vector.load %arg12[%c0_25, %c0_26] : memref<128x128xbf16, #tpu.memory_space<vmem>>, vector<128x128xbf16>
    %cst_27 = arith.constant dense<0.000000e+00> : vector<8x128xf32>
    %36 = tpu.matmul %34, %35, %cst_27 {dimension_numbers = #tpu.dot_dimension_numbers<[1], [0], [0], [1], [0, 0, 1, 1], [], []>} : vector<8x128xbf16>, vector<128x128xbf16>, vector<8x128xf32> -> vector<8x128xf32>
    %c0_28 = arith.constant 0 : index
    %c0_29 = arith.constant 0 : index
    %37 = vector.load %arg13[%c0_28, %c0_29] : memref<1x128xf32, #tpu.memory_space<vmem>>, vector<1x128xf32>
    %38 = vector.broadcast %37 : vector<1x128xf32> to vector<8x128xf32>
    %39 = arith.addf %36, %38 : vector<8x128xf32>
    %cst_30 = arith.constant 0.000000e+00 : f32
    %40 = vector.broadcast %cst_30 : f32 to vector<8x128xf32>
    %41 = arith.maximumf %39, %40 : vector<8x128xf32>
    %42 = arith.truncf %41 : vector<8x128xf32> to vector<8x128xbf16>
    %c0_31 = arith.constant 0 : index
    %c0_32 = arith.constant 0 : index
    %43 = vector.load %arg14[%c0_31, %c0_32] : memref<128x128xbf16, #tpu.memory_space<vmem>>, vector<128x128xbf16>
    %cst_33 = arith.constant dense<0.000000e+00> : vector<8x128xf32>
    %44 = tpu.matmul %42, %43, %cst_33 {dimension_numbers = #tpu.dot_dimension_numbers<[1], [0], [0], [1], [0, 0, 1, 1], [], []>} : vector<8x128xbf16>, vector<128x128xbf16>, vector<8x128xf32> -> vector<8x128xf32>
    %c0_34 = arith.constant 0 : index
    %c0_35 = arith.constant 0 : index
    %45 = vector.load %arg15[%c0_34, %c0_35] : memref<1x128xf32, #tpu.memory_space<vmem>>, vector<1x128xf32>
    %46 = vector.broadcast %45 : vector<1x128xf32> to vector<8x128xf32>
    %47 = arith.addf %44, %46 : vector<8x128xf32>
    %c0_36 = arith.constant 0 : index
    %c0_37 = arith.constant 0 : index
    %48 = vector.load %arg2[%c0_36, %c0_37] : memref<8x128xbf16, #tpu.memory_space<vmem>>, vector<8x128xbf16>
    %cst_38 = arith.constant 0.000000e+00 : bf16
    %49 = vector.broadcast %cst_38 : bf16 to vector<8x128xbf16>
    %50 = arith.maximumf %48, %49 : vector<8x128xbf16>
    %c0_39 = arith.constant 0 : index
    %c0_40 = arith.constant 0 : index
    %51 = vector.load %arg16[%c0_39, %c0_40] : memref<128x128xbf16, #tpu.memory_space<vmem>>, vector<128x128xbf16>
    %cst_41 = arith.constant dense<0.000000e+00> : vector<8x128xf32>
    %52 = tpu.matmul %50, %51, %cst_41 {dimension_numbers = #tpu.dot_dimension_numbers<[1], [0], [0], [1], [0, 0, 1, 1], [], []>} : vector<8x128xbf16>, vector<128x128xbf16>, vector<8x128xf32> -> vector<8x128xf32>
    %c0_42 = arith.constant 0 : index
    %c0_43 = arith.constant 0 : index
    %53 = vector.load %arg17[%c0_42, %c0_43] : memref<1x128xf32, #tpu.memory_space<vmem>>, vector<1x128xf32>
    %54 = vector.broadcast %53 : vector<1x128xf32> to vector<8x128xf32>
    %55 = arith.addf %52, %54 : vector<8x128xf32>
    %cst_44 = arith.constant 0.000000e+00 : f32
    %56 = vector.broadcast %cst_44 : f32 to vector<8x128xf32>
    %57 = arith.maximumf %55, %56 : vector<8x128xf32>
    %58 = arith.truncf %57 : vector<8x128xf32> to vector<8x128xbf16>
    %c0_45 = arith.constant 0 : index
    %c0_46 = arith.constant 0 : index
    %59 = vector.load %arg18[%c0_45, %c0_46] : memref<128x128xbf16, #tpu.memory_space<vmem>>, vector<128x128xbf16>
    %cst_47 = arith.constant dense<0.000000e+00> : vector<8x128xf32>
    %60 = tpu.matmul %58, %59, %cst_47 {dimension_numbers = #tpu.dot_dimension_numbers<[1], [0], [0], [1], [0, 0, 1, 1], [], []>} : vector<8x128xbf16>, vector<128x128xbf16>, vector<8x128xf32> -> vector<8x128xf32>
    %c0_48 = arith.constant 0 : index
    %c0_49 = arith.constant 0 : index
    %61 = vector.load %arg19[%c0_48, %c0_49] : memref<1x128xf32, #tpu.memory_space<vmem>>, vector<1x128xf32>
    %62 = vector.broadcast %61 : vector<1x128xf32> to vector<8x128xf32>
    %63 = arith.addf %60, %62 : vector<8x128xf32>
    %cst_50 = arith.constant 0.000000e+00 : f32
    %64 = vector.broadcast %cst_50 : f32 to vector<8x128xf32>
    %65 = arith.maximumf %63, %64 : vector<8x128xf32>
    %66 = arith.truncf %65 : vector<8x128xf32> to vector<8x128xbf16>
    %c0_51 = arith.constant 0 : index
    %c0_52 = arith.constant 0 : index
    %67 = vector.load %arg20[%c0_51, %c0_52] : memref<128x128xbf16, #tpu.memory_space<vmem>>, vector<128x128xbf16>
    %cst_53 = arith.constant dense<0.000000e+00> : vector<8x128xf32>
    %68 = tpu.matmul %66, %67, %cst_53 {dimension_numbers = #tpu.dot_dimension_numbers<[1], [0], [0], [1], [0, 0, 1, 1], [], []>} : vector<8x128xbf16>, vector<128x128xbf16>, vector<8x128xf32> -> vector<8x128xf32>
    %c0_54 = arith.constant 0 : index
    %c0_55 = arith.constant 0 : index
    %69 = vector.load %arg21[%c0_54, %c0_55] : memref<1x128xf32, #tpu.memory_space<vmem>>, vector<1x128xf32>
    %70 = vector.broadcast %69 : vector<1x128xf32> to vector<8x128xf32>
    %71 = arith.addf %68, %70 : vector<8x128xf32>
    %cst_56 = arith.constant 0.000000e+00 : f32
    %72 = vector.broadcast %cst_56 : f32 to vector<8x128xf32>
    %73 = arith.maximumf %71, %72 : vector<8x128xf32>
    %74 = arith.truncf %73 : vector<8x128xf32> to vector<8x128xbf16>
    %c0_57 = arith.constant 0 : index
    %c0_58 = arith.constant 0 : index
    %75 = vector.load %arg22[%c0_57, %c0_58] : memref<128x128xbf16, #tpu.memory_space<vmem>>, vector<128x128xbf16>
    %cst_59 = arith.constant dense<0.000000e+00> : vector<8x128xf32>
    %76 = tpu.matmul %74, %75, %cst_59 {dimension_numbers = #tpu.dot_dimension_numbers<[1], [0], [0], [1], [0, 0, 1, 1], [], []>} : vector<8x128xbf16>, vector<128x128xbf16>, vector<8x128xf32> -> vector<8x128xf32>
    %c0_60 = arith.constant 0 : index
    %c0_61 = arith.constant 0 : index
    %77 = vector.load %arg23[%c0_60, %c0_61] : memref<1x128xf32, #tpu.memory_space<vmem>>, vector<1x128xf32>
    %78 = vector.broadcast %77 : vector<1x128xf32> to vector<8x128xf32>
    %79 = arith.addf %76, %78 : vector<8x128xf32>
    %cst_62 = arith.constant 0.000000e+00 : f32
    %80 = vector.broadcast %cst_62 : f32 to vector<8x128xf32>
    %81 = arith.maximumf %79, %80 : vector<8x128xf32>
    %82 = arith.truncf %81 : vector<8x128xf32> to vector<8x128xbf16>
    %c0_63 = arith.constant 0 : index
    %c0_64 = arith.constant 0 : index
    %83 = vector.load %arg24[%c0_63, %c0_64] : memref<128x128xbf16, #tpu.memory_space<vmem>>, vector<128x128xbf16>
    %cst_65 = arith.constant dense<0.000000e+00> : vector<8x128xf32>
    %84 = tpu.matmul %82, %83, %cst_65 {dimension_numbers = #tpu.dot_dimension_numbers<[1], [0], [0], [1], [0, 0, 1, 1], [], []>} : vector<8x128xbf16>, vector<128x128xbf16>, vector<8x128xf32> -> vector<8x128xf32>
    %c0_66 = arith.constant 0 : index
    %c0_67 = arith.constant 0 : index
    %85 = vector.load %arg25[%c0_66, %c0_67] : memref<1x128xf32, #tpu.memory_space<vmem>>, vector<1x128xf32>
    %86 = vector.broadcast %85 : vector<1x128xf32> to vector<8x128xf32>
    %87 = arith.addf %84, %86 : vector<8x128xf32>
    %cst_68 = arith.constant 0.000000e+00 : f32
    %88 = vector.broadcast %cst_68 : f32 to vector<8x128xf32>
    %89 = arith.maximumf %87, %88 : vector<8x128xf32>
    %90 = arith.truncf %89 : vector<8x128xf32> to vector<8x128xbf16>
    %c0_69 = arith.constant 0 : index
    %c0_70 = arith.constant 0 : index
    %91 = vector.load %arg26[%c0_69, %c0_70] : memref<128x128xbf16, #tpu.memory_space<vmem>>, vector<128x128xbf16>
    %cst_71 = arith.constant dense<0.000000e+00> : vector<8x128xf32>
    %92 = tpu.matmul %90, %91, %cst_71 {dimension_numbers = #tpu.dot_dimension_numbers<[1], [0], [0], [1], [0, 0, 1, 1], [], []>} : vector<8x128xbf16>, vector<128x128xbf16>, vector<8x128xf32> -> vector<8x128xf32>
    %c0_72 = arith.constant 0 : index
    %c0_73 = arith.constant 0 : index
    %93 = vector.load %arg27[%c0_72, %c0_73] : memref<1x128xf32, #tpu.memory_space<vmem>>, vector<1x128xf32>
    %94 = vector.broadcast %93 : vector<1x128xf32> to vector<8x128xf32>
    %95 = arith.addf %92, %94 : vector<8x128xf32>
    %c0_74 = arith.constant 0 : index
    %c0_75 = arith.constant 0 : index
    %96 = vector.load %arg3[%c0_74, %c0_75] : memref<8x128xbf16, #tpu.memory_space<vmem>>, vector<8x128xbf16>
    %cst_76 = arith.constant 0.000000e+00 : bf16
    %97 = vector.broadcast %cst_76 : bf16 to vector<8x128xbf16>
    %98 = arith.maximumf %96, %97 : vector<8x128xbf16>
    %c0_77 = arith.constant 0 : index
    %c0_78 = arith.constant 0 : index
    %99 = vector.load %arg28[%c0_77, %c0_78] : memref<128x128xbf16, #tpu.memory_space<vmem>>, vector<128x128xbf16>
    %cst_79 = arith.constant dense<0.000000e+00> : vector<8x128xf32>
    %100 = tpu.matmul %98, %99, %cst_79 {dimension_numbers = #tpu.dot_dimension_numbers<[1], [0], [0], [1], [0, 0, 1, 1], [], []>} : vector<8x128xbf16>, vector<128x128xbf16>, vector<8x128xf32> -> vector<8x128xf32>
    %c0_80 = arith.constant 0 : index
    %c0_81 = arith.constant 0 : index
    %101 = vector.load %arg29[%c0_80, %c0_81] : memref<1x128xf32, #tpu.memory_space<vmem>>, vector<1x128xf32>
    %102 = vector.broadcast %101 : vector<1x128xf32> to vector<8x128xf32>
    %103 = arith.addf %100, %102 : vector<8x128xf32>
    %cst_82 = arith.constant 0.000000e+00 : f32
    %104 = vector.broadcast %cst_82 : f32 to vector<8x128xf32>
    %105 = arith.maximumf %103, %104 : vector<8x128xf32>
    %106 = arith.truncf %105 : vector<8x128xf32> to vector<8x128xbf16>
    %c0_83 = arith.constant 0 : index
    %c0_84 = arith.constant 0 : index
    %107 = vector.load %arg30[%c0_83, %c0_84] : memref<128x128xbf16, #tpu.memory_space<vmem>>, vector<128x128xbf16>
    %cst_85 = arith.constant dense<0.000000e+00> : vector<8x128xf32>
    %108 = tpu.matmul %106, %107, %cst_85 {dimension_numbers = #tpu.dot_dimension_numbers<[1], [0], [0], [1], [0, 0, 1, 1], [], []>} : vector<8x128xbf16>, vector<128x128xbf16>, vector<8x128xf32> -> vector<8x128xf32>
    %c0_86 = arith.constant 0 : index
    %c0_87 = arith.constant 0 : index
    %109 = vector.load %arg31[%c0_86, %c0_87] : memref<1x128xf32, #tpu.memory_space<vmem>>, vector<1x128xf32>
    %110 = vector.broadcast %109 : vector<1x128xf32> to vector<8x128xf32>
    %111 = arith.addf %108, %110 : vector<8x128xf32>
    %cst_88 = arith.constant 0.000000e+00 : f32
    %112 = vector.broadcast %cst_88 : f32 to vector<8x128xf32>
    %113 = arith.maximumf %111, %112 : vector<8x128xf32>
    %114 = arith.truncf %113 : vector<8x128xf32> to vector<8x128xbf16>
    %c0_89 = arith.constant 0 : index
    %c0_90 = arith.constant 0 : index
    %115 = vector.load %arg32[%c0_89, %c0_90] : memref<128x128xbf16, #tpu.memory_space<vmem>>, vector<128x128xbf16>
    %cst_91 = arith.constant dense<0.000000e+00> : vector<8x128xf32>
    %116 = tpu.matmul %114, %115, %cst_91 {dimension_numbers = #tpu.dot_dimension_numbers<[1], [0], [0], [1], [0, 0, 1, 1], [], []>} : vector<8x128xbf16>, vector<128x128xbf16>, vector<8x128xf32> -> vector<8x128xf32>
    %c0_92 = arith.constant 0 : index
    %c0_93 = arith.constant 0 : index
    %117 = vector.load %arg33[%c0_92, %c0_93] : memref<1x128xf32, #tpu.memory_space<vmem>>, vector<1x128xf32>
    %118 = vector.broadcast %117 : vector<1x128xf32> to vector<8x128xf32>
    %119 = arith.addf %116, %118 : vector<8x128xf32>
    %cst_94 = arith.constant 0.000000e+00 : f32
    %120 = vector.broadcast %cst_94 : f32 to vector<8x128xf32>
    %121 = arith.maximumf %119, %120 : vector<8x128xf32>
    %122 = arith.truncf %121 : vector<8x128xf32> to vector<8x128xbf16>
    %c0_95 = arith.constant 0 : index
    %c0_96 = arith.constant 0 : index
    %123 = vector.load %arg34[%c0_95, %c0_96] : memref<128x128xbf16, #tpu.memory_space<vmem>>, vector<128x128xbf16>
    %cst_97 = arith.constant dense<0.000000e+00> : vector<8x128xf32>
    %124 = tpu.matmul %122, %123, %cst_97 {dimension_numbers = #tpu.dot_dimension_numbers<[1], [0], [0], [1], [0, 0, 1, 1], [], []>} : vector<8x128xbf16>, vector<128x128xbf16>, vector<8x128xf32> -> vector<8x128xf32>
    %c0_98 = arith.constant 0 : index
    %c0_99 = arith.constant 0 : index
    %125 = vector.load %arg35[%c0_98, %c0_99] : memref<1x128xf32, #tpu.memory_space<vmem>>, vector<1x128xf32>
    %126 = vector.broadcast %125 : vector<1x128xf32> to vector<8x128xf32>
    %127 = arith.addf %124, %126 : vector<8x128xf32>
    %cst_100 = arith.constant 0.000000e+00 : f32
    %128 = vector.broadcast %cst_100 : f32 to vector<8x128xf32>
    %129 = arith.maximumf %127, %128 : vector<8x128xf32>
    %130 = arith.truncf %129 : vector<8x128xf32> to vector<8x128xbf16>
    %c0_101 = arith.constant 0 : index
    %c0_102 = arith.constant 0 : index
    %131 = vector.load %arg36[%c0_101, %c0_102] : memref<128x128xbf16, #tpu.memory_space<vmem>>, vector<128x128xbf16>
    %cst_103 = arith.constant dense<0.000000e+00> : vector<8x128xf32>
    %132 = tpu.matmul %130, %131, %cst_103 {dimension_numbers = #tpu.dot_dimension_numbers<[1], [0], [0], [1], [0, 0, 1, 1], [], []>} : vector<8x128xbf16>, vector<128x128xbf16>, vector<8x128xf32> -> vector<8x128xf32>
    %c0_104 = arith.constant 0 : index
    %c0_105 = arith.constant 0 : index
    %133 = vector.load %arg37[%c0_104, %c0_105] : memref<1x128xf32, #tpu.memory_space<vmem>>, vector<1x128xf32>
    %134 = vector.broadcast %133 : vector<1x128xf32> to vector<8x128xf32>
    %135 = arith.addf %132, %134 : vector<8x128xf32>
    %cst_106 = arith.constant 0.000000e+00 : f32
    %136 = vector.broadcast %cst_106 : f32 to vector<8x128xf32>
    %137 = arith.maximumf %135, %136 : vector<8x128xf32>
    %138 = arith.truncf %137 : vector<8x128xf32> to vector<8x128xbf16>
    %c0_107 = arith.constant 0 : index
    %c0_108 = arith.constant 0 : index
    %139 = vector.load %arg38[%c0_107, %c0_108] : memref<128x128xbf16, #tpu.memory_space<vmem>>, vector<128x128xbf16>
    %cst_109 = arith.constant dense<0.000000e+00> : vector<8x128xf32>
    %140 = tpu.matmul %138, %139, %cst_109 {dimension_numbers = #tpu.dot_dimension_numbers<[1], [0], [0], [1], [0, 0, 1, 1], [], []>} : vector<8x128xbf16>, vector<128x128xbf16>, vector<8x128xf32> -> vector<8x128xf32>
    %c0_110 = arith.constant 0 : index
    %c0_111 = arith.constant 0 : index
    %141 = vector.load %arg39[%c0_110, %c0_111] : memref<1x128xf32, #tpu.memory_space<vmem>>, vector<1x128xf32>
    %142 = vector.broadcast %141 : vector<1x128xf32> to vector<8x128xf32>
    %143 = arith.addf %140, %142 : vector<8x128xf32>
    %144 = arith.addf %47, %95 : vector<8x128xf32>
    %145 = arith.addf %144, %143 : vector<8x128xf32>
    %146 = arith.truncf %145 : vector<8x128xf32> to vector<8x128xbf16>
    %c0_112 = arith.constant 0 : index
    %c0_113 = arith.constant 0 : index
    %147 = vector.load %arg40[%c0_112, %c0_113] : memref<128x1536xbf16, #tpu.memory_space<vmem>>, vector<128x1536xbf16>
    %cst_114 = arith.constant dense<0.000000e+00> : vector<8x1536xf32>
    %148 = tpu.matmul %146, %147, %cst_114 {dimension_numbers = #tpu.dot_dimension_numbers<[1], [0], [0], [1], [0, 0, 1, 1], [], []>} : vector<8x128xbf16>, vector<128x1536xbf16>, vector<8x1536xf32> -> vector<8x1536xf32>
    %149 = vector.extract_strided_slice %148 {offsets = [0, 0], sizes = [8, 512], strides = [1, 1]} : vector<8x1536xf32> to vector<8x512xf32>
    %150 = vector.extract_strided_slice %148 {offsets = [0, 512], sizes = [8, 512], strides = [1, 1]} : vector<8x1536xf32> to vector<8x512xf32>
    %151 = arith.mulf %149, %150 : vector<8x512xf32>
    %152 = vector.extract_strided_slice %148 {offsets = [0, 1024], sizes = [8, 512], strides = [1, 1]} : vector<8x1536xf32> to vector<8x512xf32>
    %153 = arith.mulf %151, %152 : vector<8x512xf32>
    %154 = vector.extract_strided_slice %153 {offsets = [0, 0], sizes = [8, 128], strides = [1, 1]} : vector<8x512xf32> to vector<8x128xf32>
    %155 = vector.extract_strided_slice %153 {offsets = [0, 128], sizes = [8, 128], strides = [1, 1]} : vector<8x512xf32> to vector<8x128xf32>
    %156 = arith.addf %154, %155 : vector<8x128xf32>
    %157 = vector.extract_strided_slice %153 {offsets = [0, 256], sizes = [8, 128], strides = [1, 1]} : vector<8x512xf32> to vector<8x128xf32>
    %158 = arith.addf %156, %157 : vector<8x128xf32>
    %159 = vector.extract_strided_slice %153 {offsets = [0, 384], sizes = [8, 128], strides = [1, 1]} : vector<8x512xf32> to vector<8x128xf32>
    %160 = arith.addf %158, %159 : vector<8x128xf32>
    %161 = arith.mulf %160, %160 : vector<8x128xf32>
    %cst_115 = arith.constant dense<0.000000e+00> : vector<8xf32>
    %162 = vector.multi_reduction <add>, %161, %cst_115 [1] : vector<8x128xf32> to vector<8xf32>
    %163 = vector.shape_cast %162 : vector<8xf32> to vector<8x1xf32>
    %cst_116 = arith.constant 1.000000e-24 : f32
    %164 = vector.broadcast %cst_116 : f32 to vector<8x1xf32>
    %165 = arith.maximumf %163, %164 : vector<8x1xf32>
    %166 = math.rsqrt %165 : vector<8x1xf32>
    %167 = vector.broadcast %166 : vector<8x1xf32> to vector<8x128xf32>
    %168 = arith.mulf %160, %167 : vector<8x128xf32>
    %169 = math.tanh %168 : vector<8x128xf32>
    %170 = arith.truncf %169 : vector<8x128xf32> to vector<8x128xbf16>
    %c0_117 = arith.constant 0 : index
    %c0_118 = arith.constant 0 : index
    %171 = vector.load %arg41[%c0_117, %c0_118] : memref<128x128xbf16, #tpu.memory_space<vmem>>, vector<128x128xbf16>
    %cst_119 = arith.constant dense<0.000000e+00> : vector<8x128xf32>
    %172 = tpu.matmul %170, %171, %cst_119 {dimension_numbers = #tpu.dot_dimension_numbers<[1], [0], [0], [1], [0, 0, 1, 1], [], []>} : vector<8x128xbf16>, vector<128x128xbf16>, vector<8x128xf32> -> vector<8x128xf32>
    %c0_120 = arith.constant 0 : index
    %c0_121 = arith.constant 0 : index
    %173 = vector.load %arg42[%c0_120, %c0_121] : memref<1x128xf32, #tpu.memory_space<vmem>>, vector<1x128xf32>
    %174 = vector.broadcast %173 : vector<1x128xf32> to vector<8x128xf32>
    %175 = arith.addf %172, %174 : vector<8x128xf32>
    %cst_122 = arith.constant dense<0xFF800000> : vector<8xf32>
    %176 = vector.multi_reduction <maximumf>, %175, %cst_122 [1] : vector<8x128xf32> to vector<8xf32>
    %177 = vector.shape_cast %176 : vector<8xf32> to vector<8x1xf32>
    %178 = vector.broadcast %177 : vector<8x1xf32> to vector<8x128xf32>
    %179 = arith.subf %175, %178 : vector<8x128xf32>
    %180 = math.exp %179 : vector<8x128xf32>
    %cst_123 = arith.constant dense<0.000000e+00> : vector<8xf32>
    %181 = vector.multi_reduction <add>, %180, %cst_123 [1] : vector<8x128xf32> to vector<8xf32>
    %182 = vector.shape_cast %181 : vector<8xf32> to vector<8x1xf32>
    %183 = vector.broadcast %182 : vector<8x1xf32> to vector<8x128xf32>
    %184 = arith.divf %180, %183 : vector<8x128xf32>
    %c0_124 = arith.constant 0 : index
    %c0_125 = arith.constant 0 : index
    %185 = vector.load %arg43[%c0_124, %c0_125] : memref<8x128xf32, #tpu.memory_space<vmem>>, vector<8x128xf32>
    tpu.vector_store %arg43[%c0_124, %c0_125], %184 {strides = array<i32>} : memref<8x128xf32, #tpu.memory_space<vmem>>, vector<8x128xf32>,
    return
  }
  func.func @transform_0(%arg0: i32) -> (i32, i32) {
    %c0_i32 = arith.constant 0 : i32
    %c0_i32_0 = arith.constant 0 : i32
    return %arg0, %c0_i32 : i32, i32
  }
  func.func @transform_1(%arg0: i32) -> (i32, i32) {
    %c0_i32 = arith.constant 0 : i32
    %c0_i32_0 = arith.constant 0 : i32
    return %arg0, %c0_i32 : i32, i32
  }
  func.func @transform_2(%arg0: i32) -> (i32, i32) {
    %c0_i32 = arith.constant 0 : i32
    %c0_i32_0 = arith.constant 0 : i32
    return %arg0, %c0_i32 : i32, i32
  }
  func.func @transform_3(%arg0: i32) -> (i32, i32) {
    %c0_i32 = arith.constant 0 : i32
    %c0_i32_0 = arith.constant 0 : i32
    %c0_i32_1 = arith.constant 0 : i32
    return %c0_i32, %c0_i32_0 : i32, i32
  }
  func.func @transform_4(%arg0: i32) -> (i32, i32) {
    %c0_i32 = arith.constant 0 : i32
    %c0_i32_0 = arith.constant 0 : i32
    %c0_i32_1 = arith.constant 0 : i32
    return %c0_i32, %c0_i32_0 : i32, i32
  }
  func.func @transform_5(%arg0: i32) -> (i32, i32) {
    %c0_i32 = arith.constant 0 : i32
    %c0_i32_0 = arith.constant 0 : i32
    %c0_i32_1 = arith.constant 0 : i32
    return %c0_i32, %c0_i32_0 : i32, i32
  }
  func.func @transform_6(%arg0: i32) -> (i32, i32) {
    %c0_i32 = arith.constant 0 : i32
    %c0_i32_0 = arith.constant 0 : i32
    %c0_i32_1 = arith.constant 0 : i32
    return %c0_i32, %c0_i32_0 : i32, i32
  }
  func.func @transform_7(%arg0: i32) -> (i32, i32) {
    %c0_i32 = arith.constant 0 : i32
    %c0_i32_0 = arith.constant 0 : i32
    %c0_i32_1 = arith.constant 0 : i32
    return %c0_i32, %c0_i32_0 : i32, i32
  }
  func.func @transform_8(%arg0: i32) -> (i32, i32) {
    %c0_i32 = arith.constant 0 : i32
    %c0_i32_0 = arith.constant 0 : i32
    %c0_i32_1 = arith.constant 0 : i32
    return %c0_i32, %c0_i32_0 : i32, i32
  }
  func.func @transform_9(%arg0: i32) -> (i32, i32) {
    %c0_i32 = arith.constant 0 : i32
    %c0_i32_0 = arith.constant 0 : i32
    %c0_i32_1 = arith.constant 0 : i32
    return %c0_i32, %c0_i32_0 : i32, i32
  }
  func.func @transform_10(%arg0: i32) -> (i32, i32) {
    %c0_i32 = arith.constant 0 : i32
    %c0_i32_0 = arith.constant 0 : i32
    %c0_i32_1 = arith.constant 0 : i32
    return %c0_i32, %c0_i32_0 : i32, i32
  }
  func.func @transform_11(%arg0: i32) -> (i32, i32) {
    %c0_i32 = arith.constant 0 : i32
    %c0_i32_0 = arith.constant 0 : i32
    %c0_i32_1 = arith.constant 0 : i32
    return %c0_i32, %c0_i32_0 : i32, i32
  }
  func.func @transform_12(%arg0: i32) -> (i32, i32) {
    %c0_i32 = arith.constant 0 : i32
    %c0_i32_0 = arith.constant 0 : i32
    %c0_i32_1 = arith.constant 0 : i32
    return %c0_i32, %c0_i32_0 : i32, i32
  }
  func.func @transform_13(%arg0: i32) -> (i32, i32) {
    %c0_i32 = arith.constant 0 : i32
    %c0_i32_0 = arith.constant 0 : i32
    %c0_i32_1 = arith.constant 0 : i32
    return %c0_i32, %c0_i32_0 : i32, i32
  }
  func.func @transform_14(%arg0: i32) -> (i32, i32) {
    %c0_i32 = arith.constant 0 : i32
    %c0_i32_0 = arith.constant 0 : i32
    %c0_i32_1 = arith.constant 0 : i32
    return %c0_i32, %c0_i32_0 : i32, i32
  }
  func.func @transform_15(%arg0: i32) -> (i32, i32) {
    %c0_i32 = arith.constant 0 : i32
    %c0_i32_0 = arith.constant 0 : i32
    %c0_i32_1 = arith.constant 0 : i32
    return %c0_i32, %c0_i32_0 : i32, i32
  }
  func.func @transform_16(%arg0: i32) -> (i32, i32) {
    %c0_i32 = arith.constant 0 : i32
    %c0_i32_0 = arith.constant 0 : i32
    %c0_i32_1 = arith.constant 0 : i32
    return %c0_i32, %c0_i32_0 : i32, i32
  }
  func.func @transform_17(%arg0: i32) -> (i32, i32) {
    %c0_i32 = arith.constant 0 : i32
    %c0_i32_0 = arith.constant 0 : i32
    %c0_i32_1 = arith.constant 0 : i32
    return %c0_i32, %c0_i32_0 : i32, i32
  }
  func.func @transform_18(%arg0: i32) -> (i32, i32) {
    %c0_i32 = arith.constant 0 : i32
    %c0_i32_0 = arith.constant 0 : i32
    %c0_i32_1 = arith.constant 0 : i32
    return %c0_i32, %c0_i32_0 : i32, i32
  }
  func.func @transform_19(%arg0: i32) -> (i32, i32) {
    %c0_i32 = arith.constant 0 : i32
    %c0_i32_0 = arith.constant 0 : i32
    %c0_i32_1 = arith.constant 0 : i32
    return %c0_i32, %c0_i32_0 : i32, i32
  }
  func.func @transform_20(%arg0: i32) -> (i32, i32) {
    %c0_i32 = arith.constant 0 : i32
    %c0_i32_0 = arith.constant 0 : i32
    %c0_i32_1 = arith.constant 0 : i32
    return %c0_i32, %c0_i32_0 : i32, i32
  }
  func.func @transform_21(%arg0: i32) -> (i32, i32) {
    %c0_i32 = arith.constant 0 : i32
    %c0_i32_0 = arith.constant 0 : i32
    %c0_i32_1 = arith.constant 0 : i32
    return %c0_i32, %c0_i32_0 : i32, i32
  }
  func.func @transform_22(%arg0: i32) -> (i32, i32) {
    %c0_i32 = arith.constant 0 : i32
    %c0_i32_0 = arith.constant 0 : i32
    %c0_i32_1 = arith.constant 0 : i32
    return %c0_i32, %c0_i32_0 : i32, i32
  }
  func.func @transform_23(%arg0: i32) -> (i32, i32) {
    %c0_i32 = arith.constant 0 : i32
    %c0_i32_0 = arith.constant 0 : i32
    %c0_i32_1 = arith.constant 0 : i32
    return %c0_i32, %c0_i32_0 : i32, i32
  }
  func.func @transform_24(%arg0: i32) -> (i32, i32) {
    %c0_i32 = arith.constant 0 : i32
    %c0_i32_0 = arith.constant 0 : i32
    %c0_i32_1 = arith.constant 0 : i32
    return %c0_i32, %c0_i32_0 : i32, i32
  }
  func.func @transform_25(%arg0: i32) -> (i32, i32) {
    %c0_i32 = arith.constant 0 : i32
    %c0_i32_0 = arith.constant 0 : i32
    %c0_i32_1 = arith.constant 0 : i32
    return %c0_i32, %c0_i32_0 : i32, i32
  }
  func.func @transform_26(%arg0: i32) -> (i32, i32) {
    %c0_i32 = arith.constant 0 : i32
    %c0_i32_0 = arith.constant 0 : i32
    %c0_i32_1 = arith.constant 0 : i32
    return %c0_i32, %c0_i32_0 : i32, i32
  }
  func.func @transform_27(%arg0: i32) -> (i32, i32) {
    %c0_i32 = arith.constant 0 : i32
    %c0_i32_0 = arith.constant 0 : i32
    %c0_i32_1 = arith.constant 0 : i32
    return %c0_i32, %c0_i32_0 : i32, i32
  }
  func.func @transform_28(%arg0: i32) -> (i32, i32) {
    %c0_i32 = arith.constant 0 : i32
    %c0_i32_0 = arith.constant 0 : i32
    %c0_i32_1 = arith.constant 0 : i32
    return %c0_i32, %c0_i32_0 : i32, i32
  }
  func.func @transform_29(%arg0: i32) -> (i32, i32) {
    %c0_i32 = arith.constant 0 : i32
    %c0_i32_0 = arith.constant 0 : i32
    %c0_i32_1 = arith.constant 0 : i32
    return %c0_i32, %c0_i32_0 : i32, i32
  }
  func.func @transform_30(%arg0: i32) -> (i32, i32) {
    %c0_i32 = arith.constant 0 : i32
    %c0_i32_0 = arith.constant 0 : i32
    %c0_i32_1 = arith.constant 0 : i32
    return %c0_i32, %c0_i32_0 : i32, i32
  }
  func.func @transform_31(%arg0: i32) -> (i32, i32) {
    %c0_i32 = arith.constant 0 : i32
    %c0_i32_0 = arith.constant 0 : i32
    %c0_i32_1 = arith.constant 0 : i32
    return %c0_i32, %c0_i32_0 : i32, i32
  }
  func.func @transform_32(%arg0: i32) -> (i32, i32) {
    %c0_i32 = arith.constant 0 : i32
    %c0_i32_0 = arith.constant 0 : i32
    %c0_i32_1 = arith.constant 0 : i32
    return %c0_i32, %c0_i32_0 : i32, i32
  }
  func.func @transform_33(%arg0: i32) -> (i32, i32) {
    %c0_i32 = arith.constant 0 : i32
    %c0_i32_0 = arith.constant 0 : i32
    %c0_i32_1 = arith.constant 0 : i32
    return %c0_i32, %c0_i32_0 : i32, i32
  }
  func.func @transform_34(%arg0: i32) -> (i32, i32) {
    %c0_i32 = arith.constant 0 : i32
    %c0_i32_0 = arith.constant 0 : i32
    %c0_i32_1 = arith.constant 0 : i32
    return %c0_i32, %c0_i32_0 : i32, i32
  }
  func.func @transform_35(%arg0: i32) -> (i32, i32) {
    %c0_i32 = arith.constant 0 : i32
    %c0_i32_0 = arith.constant 0 : i32
    %c0_i32_1 = arith.constant 0 : i32
    return %c0_i32, %c0_i32_0 : i32, i32
  }
  func.func @transform_36(%arg0: i32) -> (i32, i32) {
    %c0_i32 = arith.constant 0 : i32
    %c0_i32_0 = arith.constant 0 : i32
    %c0_i32_1 = arith.constant 0 : i32
    return %c0_i32, %c0_i32_0 : i32, i32
  }
  func.func @transform_37(%arg0: i32) -> (i32, i32) {
    %c0_i32 = arith.constant 0 : i32
    %c0_i32_0 = arith.constant 0 : i32
    %c0_i32_1 = arith.constant 0 : i32
    return %c0_i32, %c0_i32_0 : i32, i32
  }
  func.func @transform_38(%arg0: i32) -> (i32, i32) {
    %c0_i32 = arith.constant 0 : i32
    %c0_i32_0 = arith.constant 0 : i32
    %c0_i32_1 = arith.constant 0 : i32
    return %c0_i32, %c0_i32_0 : i32, i32
  }
  func.func @transform_39(%arg0: i32) -> (i32, i32) {
    %c0_i32 = arith.constant 0 : i32
    %c0_i32_0 = arith.constant 0 : i32
    %c0_i32_1 = arith.constant 0 : i32
    return %c0_i32, %c0_i32_0 : i32, i32
  }
  func.func @transform_40(%arg0: i32) -> (i32, i32) {
    %c0_i32 = arith.constant 0 : i32
    %c0_i32_0 = arith.constant 0 : i32
    %c0_i32_1 = arith.constant 0 : i32
    return %c0_i32, %c0_i32_0 : i32, i32
  }
  func.func @transform_41(%arg0: i32) -> (i32, i32) {
    %c0_i32 = arith.constant 0 : i32
    %c0_i32_0 = arith.constant 0 : i32
    %c0_i32_1 = arith.constant 0 : i32
    return %c0_i32, %c0_i32_0 : i32, i32
  }
  func.func @transform_42(%arg0: i32) -> (i32, i32) {
    %c0_i32 = arith.constant 0 : i32
    %c0_i32_0 = arith.constant 0 : i32
    return %arg0, %c0_i32 : i32, i32
  }
}

</mosaic_0001>

<bundles_post_ra>
// kernel: tf_cnn_forward.1
= control target key start
LH: loop header
LB: loop body
LE: loop exit
PB: predicated region body
PF: predicated region fallthrough
CT: control target
= control target key end

     0   :  { %s6301_s6 = smov 1   ;;  %s6302_s10 = smov 2   ;;  %s6884_s0 = inlined_call_operand.smem [shape: u32[43], index: -1, kind: input, shape index: {}] }
   0x1   :  { %s6388_s5 = sld [smem:[%s6884_s0]]   ;;  %s6303_s14 = smov 3  }
   0x2   :  { %s6393_s9 = sld [smem:[%s6884_s0 + %s6301_s6]]   ;;  %s6304_s18 = smov 4  }
   0x3   :  { %s6398_s13 = sld [smem:[%s6884_s0 + %s6302_s10]]   ;;  %s6305_s22 = smov 5  }
   0x4   :  { %s6403_s17 = sld [smem:[%s6884_s0 + %s6303_s14]]   ;;  %s6306_s26 = smov 6  }
   0x5   :  { %s6408_s21 = sld [smem:[%s6884_s0 + %s6304_s18]]   ;;  %s6307_s30 = smov 7  }
   0x6   :  { %s6413_s25 = sld [smem:[%s6884_s0 + %s6305_s22]]   ;;  %s6308_s4 = smov 8  }
   0x7   :  { %6888 = sst [smem:[#allocation60_spill]] %s6388_s5  ;;  %s6309_s10 = smov 9  }
   0x8   :  { %6889 = sst [smem:[#allocation61_spill]] %s6393_s9  ;;  %s6310_s15 = smov 10  }
   0x9   :  { %6890 = sst [smem:[#allocation62_spill]] %s6398_s13  ;;  %s6311_s20 = smov 11  }
   0xa   :  { %s6418_s29 = sld [smem:[%s6884_s0 + %s6306_s26]]   ;;  %s6312_s26 = smov 12  }
   0xb   :  { %s6423_s3 = sld [smem:[%s6884_s0 + %s6307_s30]]   ;;  %s6313_s1 = smov 13  }
   0xc   :  { %s6428_s8 = sld [smem:[%s6884_s0 + %s6308_s4]]   ;;  %s6314_s7 = smov 14  }
   0xd   :  { %s6433_s14 = sld [smem:[%s6884_s0 + %s6309_s10]]   ;;  %s6316_s22 = smov 16  }
   0xe   :  { %s6438_s19 = sld [smem:[%s6884_s0 + %s6310_s15]]   ;;  %s6315_s15 = smov 15  }
   0xf   :  { %s6443_s24 = sld [smem:[%s6884_s0 + %s6311_s20]]   ;;  %s6317_s28 = smov 17  }
  0x10   :  { %s6448_s30 = sld [smem:[%s6884_s0 + %s6312_s26]]  }
  0x11   :  { %6891 = sst [smem:[#allocation63_spill]] %s6423_s3 }
  0x12   :  { %s6453_s6 = sld [smem:[%s6884_s0 + %s6313_s1]]  }
  0x13   :  { %6892 = sst [smem:[#allocation64_spill]] %s6433_s14 }
  0x14   :  { %6893 = sst [smem:[#allocation65_spill]] %s6438_s19 }
  0x15   :  { %6894 = sst [smem:[#allocation66_spill]] %s6443_s24 }
  0x16   :  { %6895 = sst [smem:[#allocation67_spill]] %s6448_s30 }
  0x17   :  { %s6458_s12 = sld [smem:[%s6884_s0 + %s6314_s7]]   ;;  %s6318_s7 = smov 18  }
  0x18   :  { %6896 = sst [smem:[#allocation68_spill]] %s6453_s6 }
  0x19   :  { %s6463_s20 = sld [smem:[%s6884_s0 + %s6315_s15]]   ;;  %s6319_s15 = smov 19  }
  0x1a   :  { %s6468_s27 = sld [smem:[%s6884_s0 + %s6316_s22]]   ;;  %s6320_s22 = smov 20  }
  0x1b   :  { %s6473_s4 = sld [smem:[%s6884_s0 + %s6317_s28]]   ;;  %s6321_s28 = smov 21  }
  0x1c   :  { %s6483_s13 = sld [smem:[%s6884_s0 + %s6319_s15]]   ;;  %s6323_s15 = smov 23  }
  0x1d   :  { %6897 = sst [smem:[#allocation69_spill]] %s6458_s12 }
  0x1e   :  { %s6478_s12 = sld [smem:[%s6884_s0 + %s6318_s7]]   ;;  %s6322_s7 = smov 22  }
  0x1f   :  { %s6493_s30 = sld [smem:[%s6884_s0 + %s6321_s28]]   ;;  %s6325_s28 = smov 25  }
  0x20   :  { %6898 = sst [smem:[#allocation70_spill]] %s6468_s27 }
  0x21   :  { %6899 = sst [smem:[#allocation71_spill]] %s6473_s4 }
  0x22   :  { %s6488_s27 = sld [smem:[%s6884_s0 + %s6320_s22]]   ;;  %s6324_s22 = smov 24  }
  0x23   :  { %s6503_s9 = sld [smem:[%s6884_s0 + %s6323_s15]]   ;;  %s6327_s15 = smov 27  }
  0x24   :  { %6900 = sst [smem:[#allocation72_spill]] %s6478_s12 }
  0x25   :  { %6902 = sst [smem:[#allocation74_spill]] %s6493_s30 }
  0x26   :  { %s6498_s12 = sld [smem:[%s6884_s0 + %s6322_s7]]   ;;  %s6326_s7 = smov 26  }
  0x27   :  { %s6513_s19 = sld [smem:[%s6884_s0 + %s6325_s28]]   ;;  %s6329_s28 = smov 29  }
  0x28   :  { %6901 = sst [smem:[#allocation73_spill]] %s6488_s27 }
  0x29   :  { %s6508_s27 = sld [smem:[%s6884_s0 + %s6324_s22]]   ;;  %s6328_s22 = smov 28  }
  0x2a   :  { %s6523_s6 = sld [smem:[%s6884_s0 + %s6327_s15]]   ;;  %s6331_s15 = smov 31  }
  0x2b   :  { %s6533_s24 = sld [smem:[%s6884_s0 + %s6329_s28]]   ;;  %s6333_s28 = smov 33  }
  0x2c   :  { %6903 = sst [smem:[#allocation75_spill]] %s6498_s12 }
  0x2d   :  { %6905 = sst [smem:[#allocation77_spill]] %s6513_s19 }
  0x2e   :  { %s6518_s12 = sld [smem:[%s6884_s0 + %s6326_s7]]   ;;  %s6330_s7 = smov 30  }
  0x2f   :  { %6904 = sst [smem:[#allocation76_spill]] %s6508_s27 }
  0x30   :  { %s6528_s27 = sld [smem:[%s6884_s0 + %s6328_s22]]   ;;  %s6332_s22 = smov 32  }
  0x31   :  { %s6543_s5 = sld [smem:[%s6884_s0 + %s6331_s15]]   ;;  %s6335_s15 = smov 35  }
  0x32   :  { %s6553_s19 = sld [smem:[%s6884_s0 + %s6333_s28]]   ;;  %s6337_s28 = smov 37  }
  0x33   :  { %s6563_s30 = sld [smem:[%s6884_s0 + %s6335_s15]]   ;;  %s6339_s15 = smov 39  }
  0x34   :  { %6906 = sst [smem:[#allocation78_spill]] %s6518_s12 }
  0x35   :  { %s6538_s12 = sld [smem:[%s6884_s0 + %s6330_s7]]   ;;  %s6334_s7 = smov 34  }
  0x36   :  { %6907 = sst [smem:[#allocation79_spill]] %s6528_s27 }
  0x37   :  { %s6548_s27 = sld [smem:[%s6884_s0 + %s6332_s22]]   ;;  %s6336_s22 = smov 36  }
  0x38   :  { %s6573_s4 = sld [smem:[%s6884_s0 + %s6337_s28]]   ;;  %s6341_s28 = smov 41  }
  0x39   :  { %s6583_s14 = sld [smem:[%s6884_s0 + %s6339_s15]]  }
  0x3a   :  { %s6593_s3 = sld [smem:[%s6884_s0 + %s6341_s28]]  }
  0x3b   :  { %6908 = sst [smem:[#allocation80_spill]] %s6538_s12 }
  0x3c   :  { %s6558_s12 = sld [smem:[%s6884_s0 + %s6334_s7]]   ;;  %s6338_s7 = smov 38  }
  0x3d   :  { %6909 = sst [smem:[#allocation81_spill]] %s6548_s27 }
  0x3e   :  { %s6568_s27 = sld [smem:[%s6884_s0 + %s6336_s22]]   ;;  %s6340_s22 = smov 40  }
  0x42   :  { %6910 = sst [smem:[#allocation82_spill]] %s6558_s12 }
  0x43   :  { %s6578_s12 = sld [smem:[%s6884_s0 + %s6338_s7]]   ;;  %s6342_s7 = smov 42  }
  0x44   :  { %6911 = sst [smem:[#allocation83_spill]] %s6568_s27 }
  0x45   :  { %s6588_s27 = sld [smem:[%s6884_s0 + %s6340_s22]]  }
  0x49   :  { %6912 = sst [smem:[#allocation84_spill]] %s6578_s12 }
  0x4a   :  { %s6598_s12 = sld [smem:[%s6884_s0 + %s6342_s7]]  }
  0x4b   :  { %90 = vsyncpa [#allocation3], 0 }
  0x4c   :  { %91 = vsyncpa [#allocation5], 0 }
  0x4d   :  { %92 = vsyncpa [#allocation8], 0 }
  0x4e   :  { %93 = vsyncpa [#allocation11], 0 }
  0x4f   :  { %94 = vsyncpa [#allocation14], 0 }
  0x50   :  { %95 = vsyncpa [#allocation17], 0 }
  0x51   :  { %96 = vsyncpa [#allocation20], 0 }
  0x52   :  { %97 = vsyncpa [#allocation23], 0 }
  0x53   :  { %98 = vsyncpa [#allocation26], 0 }
  0x54   :  { %99 = vsyncpa [#allocation29], 0 }
  0x55   :  { %100 = vsyncpa [#allocation32], 0 }
  0x56   :  { %101 = vsyncpa [#allocation35], 0 }
  0x57   :  { %102 = vsyncpa [#allocation38], 0 }
  0x58   :  { %103 = vsyncpa [#allocation41], 0 }
  0x59   :  { %104 = vsyncpa [#allocation44], 0  ;;  %s6343_s15 = smov [#allocation4]   ;;  %s6344_s18 = smov [#allocation7]  }
  0x5a   :  { %s129_s16 = sshll.u32 %s6343_s15, 4  ;;  %s151_s0 = sshll.u32 %s6344_s18, 4  ;;  %s130_s16 = int_to_ptr.vmem [resolvable:$true] %s129_s16  ;;  %s152_s0 = int_to_ptr.vmem [resolvable:$true] %s151_s0 }
  0x5b   :  { %s5719_s22 = scalar_lea.vmem %s130_s16, 32  ;;  %p5724_p1 = scmp.lt.s32.totalorder %s130_s16, %s130_s16 }
  0x5c   :  { %p5720_p0 = scmp.ne.s32.totalorder %s130_s16, %s5719_s22  ;;  %p5725_p2 = scmp.lt.s32.totalorder %s5719_s22, %s5719_s22 }
  0x5e   :  { %p5726_p3 = por %p5725_p2, %p5724_p1 }
  0x60   :  { %p5727_p4 = pnand %p5726_p3, %p5720_p0 }
  0x62   :  { %5730 = shalt.err (!%p5727_p4)
}
  0x63   :  { %132 = dma.hbm_to_vmem [thread:$0]  %s6408_s21, 32, %s130_s16, [#allocation5]  }
  0x64   :  { %s5739_s23 = scalar_lea.vmem %s152_s0, 32  ;;  %p5744_p6 = scmp.lt.s32.totalorder %s152_s0, %s152_s0 }
  0x65   :  { %p5740_p5 = scmp.ne.s32.totalorder %s152_s0, %s5739_s23  ;;  %p5745_p7 = scmp.lt.s32.totalorder %s5739_s23, %s5739_s23 }
  0x67   :  { %p5746_p8 = por %p5745_p7, %p5744_p6 }
  0x69   :  { %p5747_p9 = pnand %p5746_p8, %p5740_p5 }
  0x6b   :  { %5750 = shalt.err (!%p5747_p9)
}
  0x6c   :  { %154 = dma.hbm_to_vmem [thread:$0]  %s6418_s29, 32, %s152_s0, [#allocation8]  }
  0x6d   :  { %s6345_s26 = smov [#allocation10]  }
  0x6e   :  { %s173_s28 = sshll.u32 %s6345_s26, 4  ;;  %s174_s28 = int_to_ptr.vmem [resolvable:$true] %s173_s28 }
  0x6f   :  { %s5759_s1 = scalar_lea.vmem %s174_s28, 32  ;;  %p5764_p11 = scmp.lt.s32.totalorder %s174_s28, %s174_s28 }
  0x70   :  { %p5760_p10 = scmp.ne.s32.totalorder %s174_s28, %s5759_s1  ;;  %p5765_p12 = scmp.lt.s32.totalorder %s5759_s1, %s5759_s1 }
  0x72   :  { %p5766_p13 = por %p5765_p12, %p5764_p11 }
  0x74   :  { %p5767_p0 = pnand %p5766_p13, %p5760_p10 }
  0x76   :  { %5770 = shalt.err (!%p5767_p0)
}
  0x77   :  { %176 = dma.hbm_to_vmem [thread:$0]  %s6428_s8, 32, %s174_s28, [#allocation11]  }
  0x78   :  { %s6346_s21 = smov [#allocation13]   ;;  %s6347_s7 = smov [#allocation16]  }
  0x79   :  { %s204_s2 = sshll.u32 %s6346_s21, 4  ;;  %s232_s10 = sshll.u32 %s6347_s7, 4  ;;  %s205_s2 = int_to_ptr.vmem [resolvable:$true] %s204_s2  ;;  %s233_s10 = int_to_ptr.vmem [resolvable:$true] %s232_s10 }
  0x7a   :  { %s5779_s11 = scalar_lea.vmem %s205_s2, 1024  ;;  %p5784_p2 = scmp.lt.s32.totalorder %s205_s2, %s205_s2 }
  0x7b   :  { %p5780_p1 = scmp.ne.s32.totalorder %s205_s2, %s5779_s11  ;;  %p5785_p3 = scmp.lt.s32.totalorder %s5779_s11, %s5779_s11 }
  0x7d   :  { %p5786_p4 = por %p5785_p3, %p5784_p2 }
  0x7f   :  { %p5787_p5 = pnand %p5786_p4, %p5780_p1 }
  0x81   :  { %5790 = shalt.err (!%p5787_p5)
}
  0x82   :  { %s6348_s29 = smov 64   ;;  %s6349_s15 = smov 4  }
  0x83   :  { %210 = dma.hbm_to_vmem [thread:$0]  %s6463_s20, 1024, %s205_s2, [#allocation14], %s6348_s29, %s6348_s29, %s6349_s15  }
  0x84   :  { %s5799_s8 = scalar_lea.vmem %s233_s10, 1024  ;;  %p5804_p7 = scmp.lt.s32.totalorder %s233_s10, %s233_s10 }
  0x85   :  { %p5800_p6 = scmp.ne.s32.totalorder %s233_s10, %s5799_s8  ;;  %p5805_p8 = scmp.lt.s32.totalorder %s5799_s8, %s5799_s8 }
  0x87   :  { %p5806_p9 = por %p5805_p8, %p5804_p7 }
  0x89   :  { %p5807_p10 = pnand %p5806_p9, %p5800_p6 }
  0x8b   :  { %5810 = shalt.err (!%p5807_p10)
}
  0x8c   :  { %238 = dma.hbm_to_vmem [thread:$0]  %s6483_s13, 1024, %s233_s10, [#allocation17], %s6348_s29, %s6348_s29, %s6349_s15  }
  0x8d   :  { %s6350_s16 = smov [#allocation19]   ;;  %s6351_s0 = smov [#allocation22]  }
  0x8e   :  { %s260_s18 = sshll.u32 %s6350_s16, 4  ;;  %s288_s22 = sshll.u32 %s6351_s0, 4  ;;  %s261_s18 = int_to_ptr.vmem [resolvable:$true] %s260_s18  ;;  %s289_s22 = int_to_ptr.vmem [resolvable:$true] %s288_s22 }
  0x8f   :  { %s5819_s23 = scalar_lea.vmem %s261_s18, 1024  ;;  %p5824_p12 = scmp.lt.s32.totalorder %s261_s18, %s261_s18 }
  0x90   :  { %p5820_p11 = scmp.ne.s32.totalorder %s261_s18, %s5819_s23  ;;  %p5825_p13 = scmp.lt.s32.totalorder %s5819_s23, %s5819_s23 }
  0x92   :  { %p5826_p0 = por %p5825_p13, %p5824_p12 }
  0x94   :  { %p5827_p1 = pnand %p5826_p0, %p5820_p11 }
  0x96   :  { %5830 = shalt.err (!%p5827_p1)
}
  0x97   :  { %266 = dma.hbm_to_vmem [thread:$0]  %s6503_s9, 1024, %s261_s18, [#allocation20], %s6348_s29, %s6348_s29, %s6349_s15  }
  0x98   :  { %s5839_s20 = scalar_lea.vmem %s289_s22, 1024  ;;  %p5844_p3 = scmp.lt.s32.totalorder %s289_s22, %s289_s22 }
  0x99   :  { %p5840_p2 = scmp.ne.s32.totalorder %s289_s22, %s5839_s20  ;;  %p5845_p4 = scmp.lt.s32.totalorder %s5839_s20, %s5839_s20 }
  0x9b   :  { %p5846_p5 = por %p5845_p4, %p5844_p3 }
  0x9d   :  { %p5847_p6 = pnand %p5846_p5, %p5840_p2 }
  0x9f   :  { %5850 = shalt.err (!%p5847_p6)
}
  0xa0   :  { %294 = dma.hbm_to_vmem [thread:$0]  %s6523_s6, 1024, %s289_s22, [#allocation23], %s6348_s29, %s6348_s29, %s6349_s15  }
  0xa1   :  { %s6352_s13 = smov [#allocation25]   ;;  %s6353_s28 = smov [#allocation28]  }
  0xa2   :  { %s310_s26 = sshll.u32 %s6352_s13, 4  ;;  %s332_s1 = sshll.u32 %s6353_s28, 4  ;;  %s311_s26 = int_to_ptr.vmem [resolvable:$true] %s310_s26  ;;  %s333_s1 = int_to_ptr.vmem [resolvable:$true] %s332_s1 }
  0xa3   :  { %s5859_s21 = scalar_lea.vmem %s311_s26, 1024  ;;  %p5864_p8 = scmp.lt.s32.totalorder %s311_s26, %s311_s26 }
  0xa4   :  { %p5860_p7 = scmp.ne.s32.totalorder %s311_s26, %s5859_s21  ;;  %p5865_p9 = scmp.lt.s32.totalorder %s5859_s21, %s5859_s21 }
  0xa6   :  { %p5866_p10 = por %p5865_p9, %p5864_p8 }
  0xa8   :  { %p5867_p11 = pnand %p5866_p10, %p5860_p7 }
  0xaa   :  { %5870 = shalt.err (!%p5867_p11)
}
  0xab   :  { %316 = dma.hbm_to_vmem [thread:$0]  %s6533_s24, 1024, %s311_s26, [#allocation26], %s6348_s29, %s6348_s29, %s6349_s15  }
  0xac   :  { %s5879_s9 = scalar_lea.vmem %s333_s1, 1024  ;;  %p5884_p13 = scmp.lt.s32.totalorder %s333_s1, %s333_s1 }
  0xad   :  { %p5880_p12 = scmp.ne.s32.totalorder %s333_s1, %s5879_s9  ;;  %p5885_p0 = scmp.lt.s32.totalorder %s5879_s9, %s5879_s9 }
  0xaf   :  { %p5886_p1 = por %p5885_p0, %p5884_p13 }
  0xb1   :  { %p5887_p2 = pnand %p5886_p1, %p5880_p12 }
  0xb3   :  { %5890 = shalt.err (!%p5887_p2)
}
  0xb4   :  { %338 = dma.hbm_to_vmem [thread:$0]  %s6543_s5, 1024, %s333_s1, [#allocation29], %s6348_s29, %s6348_s29, %s6349_s15  }
  0xb5   :  { %s6354_s6 = smov [#allocation31]   ;;  %s6355_s7 = smov [#allocation34]  }
  0xb6   :  { %s354_s2 = sshll.u32 %s6354_s6, 4  ;;  %s376_s10 = sshll.u32 %s6355_s7, 4  ;;  %s355_s2 = int_to_ptr.vmem [resolvable:$true] %s354_s2  ;;  %s377_s10 = int_to_ptr.vmem [resolvable:$true] %s376_s10 }
  0xb7   :  { %s5899_s11 = scalar_lea.vmem %s355_s2, 1024  ;;  %p5904_p4 = scmp.lt.s32.totalorder %s355_s2, %s355_s2 }
  0xb8   :  { %p5900_p3 = scmp.ne.s32.totalorder %s355_s2, %s5899_s11  ;;  %p5905_p5 = scmp.lt.s32.totalorder %s5899_s11, %s5899_s11 }
  0xba   :  { %p5906_p6 = por %p5905_p5, %p5904_p4 }
  0xbc   :  { %p5907_p7 = pnand %p5906_p6, %p5900_p3 }
  0xbe   :  { %5910 = shalt.err (!%p5907_p7)
}
  0xbf   :  { %360 = dma.hbm_to_vmem [thread:$0]  %s6553_s19, 1024, %s355_s2, [#allocation32], %s6348_s29, %s6348_s29, %s6349_s15  }
  0xc0   :  { %s5919_s24 = scalar_lea.vmem %s377_s10, 1024  ;;  %p5924_p9 = scmp.lt.s32.totalorder %s377_s10, %s377_s10 }
  0xc1   :  { %p5920_p8 = scmp.ne.s32.totalorder %s377_s10, %s5919_s24  ;;  %p5925_p10 = scmp.lt.s32.totalorder %s5919_s24, %s5919_s24 }
  0xc3   :  { %p5926_p11 = por %p5925_p10, %p5924_p9 }
  0xc5   :  { %p5927_p12 = pnand %p5926_p11, %p5920_p8 }
  0xc7   :  { %5930 = shalt.err (!%p5927_p12)
}
  0xc8   :  { %382 = dma.hbm_to_vmem [thread:$0]  %s6563_s30, 1024, %s377_s10, [#allocation35], %s6348_s29, %s6348_s29, %s6349_s15  }
  0xc9   :  { %s6356_s5 = smov [#allocation37]   ;;  %s6357_s16 = smov [#allocation40]  }
  0xca   :  { %s398_s8 = sshll.u32 %s6356_s5, 4  ;;  %s420_s18 = sshll.u32 %s6357_s16, 4  ;;  %s399_s8 = int_to_ptr.vmem [resolvable:$true] %s398_s8  ;;  %s421_s18 = int_to_ptr.vmem [resolvable:$true] %s420_s18 }
  0xcb   :  { %s5939_s0 = scalar_lea.vmem %s399_s8, 1024  ;;  %p5944_p0 = scmp.lt.s32.totalorder %s399_s8, %s399_s8 }
  0xcc   :  { %p5940_p13 = scmp.ne.s32.totalorder %s399_s8, %s5939_s0  ;;  %p5945_p1 = scmp.lt.s32.totalorder %s5939_s0, %s5939_s0 }
  0xce   :  { %p5946_p2 = por %p5945_p1, %p5944_p0 }
  0xd0   :  { %p5947_p3 = pnand %p5946_p2, %p5940_p13 }
  0xd2   :  { %5950 = shalt.err (!%p5947_p3)
}
  0xd3   :  { %404 = dma.hbm_to_vmem [thread:$0]  %s6573_s4, 1024, %s399_s8, [#allocation38], %s6348_s29, %s6348_s29, %s6349_s15  }
  0xd4   :  { %s5959_s19 = scalar_lea.vmem %s421_s18, 12288  ;;  %p5964_p5 = scmp.lt.s32.totalorder %s421_s18, %s421_s18 }
  0xd5   :  { %p5960_p4 = scmp.ne.s32.totalorder %s421_s18, %s5959_s19  ;;  %p5965_p6 = scmp.lt.s32.totalorder %s5959_s19, %s5959_s19 }
  0xd7   :  { %p5966_p7 = por %p5965_p6, %p5964_p5 }
  0xd9   :  { %p5967_p8 = pnand %p5966_p7, %p5960_p4 }
  0xdb   :  { %5970 = shalt.err (!%p5967_p8)
}
  0xdc   :  { %s6358_s30 = smov 768   ;;  %s6359_s22 = smov 48  }
  0xdd   :  { %426 = dma.hbm_to_vmem [thread:$0]  %s6583_s14, 12288, %s421_s18, [#allocation41], %s6358_s30, %s6358_s30, %s6359_s22  }
  0xde   :  { %s6360_s23 = smov [#allocation2]  }
  0xdf   :  { %s116_s20 = sshll.u32 %s6360_s23, 4  ;;  %s117_s20 = int_to_ptr.vmem [resolvable:$true] %s116_s20 }
  0xe0   :  { %s5979_s13 = scalar_lea.vmem %s117_s20, 8192  ;;  %p5984_p10 = scmp.lt.s32.totalorder %s117_s20, %s117_s20 }
  0xe1   :  { %p5980_p9 = scmp.ne.s32.totalorder %s117_s20, %s5979_s13  ;;  %p5985_p11 = scmp.lt.s32.totalorder %s5979_s13, %s5979_s13 }
  0xe3   :  { %p5986_p12 = por %p5985_p11, %p5984_p10 }
  0xe5   :  { %p5987_p13 = pnand %p5986_p12, %p5980_p9 }
  0xe7   :  { %5990 = shalt.err (!%p5987_p13)
}
  0xe8   :  { %s6361_s4 = smov 128   ;;  %s6362_s26 = smov 8  }
  0xe9   :  { %122 = dma.hbm_to_vmem [thread:$0]  %s6403_s17, 8192, %s117_s20, [#allocation3], %s6361_s4, %s6361_s4, %s6362_s26  }
  0xea   :  { %s6363_s28 = smov [#allocation6]   ;;  %s6364_s21 = smov [#allocation9]  }
  0xeb   :  { %s138_s1 = sshll.u32 %s6363_s28, 4  ;;  %s160_s9 = sshll.u32 %s6364_s21, 4  ;;  %s139_s1 = int_to_ptr.vmem [resolvable:$true] %s138_s1  ;;  %s161_s9 = int_to_ptr.vmem [resolvable:$true] %s160_s9 }
  0xec   :  { %s5999_s14 = scalar_lea.vmem %s139_s1, 4096  ;;  %p6004_p1 = scmp.lt.s32.totalorder %s139_s1, %s139_s1 }
  0xed   :  { %p6000_p0 = scmp.ne.s32.totalorder %s139_s1, %s5999_s14  ;;  %p6005_p2 = scmp.lt.s32.totalorder %s5999_s14, %s5999_s14 }
  0xef   :  { %p6006_p3 = por %p6005_p2, %p6004_p1 }
  0xf1   :  { %p6007_p4 = pnand %p6006_p3, %p6000_p0 }
  0xf3   :  { %6010 = shalt.err (!%p6007_p4)
}
  0xf4   :  { %144 = dma.hbm_to_vmem [thread:$0]  %s6413_s25, 4096, %s139_s1, [#allocation5], %s6361_s4, %s6361_s4, %s6362_s26  }
  0xf5   :  { %s6019_s6 = scalar_lea.vmem %s161_s9, 4096  ;;  %p6024_p6 = scmp.lt.s32.totalorder %s161_s9, %s161_s9 }
  0xf6   :  { %p6020_p5 = scmp.ne.s32.totalorder %s161_s9, %s6019_s6  ;;  %p6025_p7 = scmp.lt.s32.totalorder %s6019_s6, %s6019_s6 }
  0xf8   :  { %p6026_p8 = por %p6025_p7, %p6024_p6 }
  0xfa   :  { %p6027_p9 = pnand %p6026_p8, %p6020_p5 }
  0xfc   :  { %6030 = shalt.err (!%p6027_p9)
}
  0xfd   :  { %s6913_s17 = sld [smem:[#allocation63_spill]]  ;;  %s6365_s2 = smov [#allocation12]  }
  0xfe   :  { %s182_s7 = sshll.u32 %s6365_s2, 4  ;;  %s6366_s10 = smov [#allocation15]   ;;  %s183_s7 = int_to_ptr.vmem [resolvable:$true] %s182_s7 }
  0xff   :  { %s218_s11 = sshll.u32 %s6366_s10, 4  ;;  %s6039_s24 = scalar_lea.vmem %s183_s7, 2048  ;;  %s219_s11 = int_to_ptr.vmem [resolvable:$true] %s218_s11 }
 0x100   :  { %p6040_p10 = scmp.ne.s32.totalorder %s183_s7, %s6039_s24  ;;  %p6044_p11 = scmp.lt.s32.totalorder %s183_s7, %s183_s7 }
 0x101   :  { %p6045_p12 = scmp.lt.s32.totalorder %s6039_s24, %s6039_s24 }
 0x103   :  { %166 = dma.hbm_to_vmem [thread:$0]  %s6913_s17, 4096, %s161_s9, [#allocation8], %s6361_s4, %s6361_s4, %s6362_s26  }
 0x104   :  { %p6046_p13 = por %p6045_p12, %p6044_p11 }
 0x106   :  { %p6047_p0 = pnand %p6046_p13, %p6040_p10 }
 0x108   :  { %6050 = shalt.err (!%p6047_p0)
}
 0x109   :  { %s6914_s25 = sld [smem:[#allocation64_spill]]  ;;  %s6059_s5 = scalar_lea.vmem %s219_s11, 1024 }
 0x10a   :  { %p6060_p1 = scmp.ne.s32.totalorder %s219_s11, %s6059_s5  ;;  %p6064_p2 = scmp.lt.s32.totalorder %s219_s11, %s219_s11 }
 0x10b   :  { %p6065_p3 = scmp.lt.s32.totalorder %s6059_s5, %s6059_s5 }
 0x10d   :  { %p6066_p4 = por %p6065_p3, %p6064_p2 }
 0x10f   :  { %188 = dma.hbm_to_vmem [thread:$0]  %s6914_s25, 2048, %s183_s7, [#allocation11], %s6348_s29, %s6348_s29, %s6349_s15  }
 0x110   :  { %p6067_p5 = pnand %p6066_p4, %p6060_p1 }
 0x112   :  { %6070 = shalt.err (!%p6067_p5)
}
 0x113   :  { %s6915_s8 = sld [smem:[#allocation71_spill]]  ;;  %s6367_s16 = smov [#allocation18]  }
 0x114   :  { %s246_s18 = sshll.u32 %s6367_s16, 4  ;;  %s6368_s0 = smov [#allocation21]   ;;  %s247_s18 = int_to_ptr.vmem [resolvable:$true] %s246_s18 }
 0x115   :  { %s274_s19 = sshll.u32 %s6368_s0, 4  ;;  %s6079_s30 = scalar_lea.vmem %s247_s18, 1024  ;;  %s275_s19 = int_to_ptr.vmem [resolvable:$true] %s274_s19 }
 0x116   :  { %p6080_p6 = scmp.ne.s32.totalorder %s247_s18, %s6079_s30  ;;  %p6084_p7 = scmp.lt.s32.totalorder %s247_s18, %s247_s18 }
 0x117   :  { %p6085_p8 = scmp.lt.s32.totalorder %s6079_s30, %s6079_s30 }
 0x119   :  { %224 = dma.hbm_to_vmem [thread:$0]  %s6915_s8, 1024, %s219_s11, [#allocation14], %s6348_s29, %s6348_s29, %s6349_s15  }
 0x11a   :  { %p6086_p9 = por %p6085_p8, %p6084_p7 }
 0x11c   :  { %p6087_p10 = pnand %p6086_p9, %p6080_p6 }
 0x11e   :  { %6090 = shalt.err (!%p6087_p10)
}
 0x11f   :  { %s6916_s22 = sld [smem:[#allocation74_spill]]  ;;  %s6099_s23 = scalar_lea.vmem %s275_s19, 1024 }
 0x120   :  { %p6100_p11 = scmp.ne.s32.totalorder %s275_s19, %s6099_s23  ;;  %p6104_p12 = scmp.lt.s32.totalorder %s275_s19, %s275_s19 }
 0x121   :  { %p6105_p13 = scmp.lt.s32.totalorder %s6099_s23, %s6099_s23 }
 0x123   :  { %p6106_p0 = por %p6105_p13, %p6104_p12 }
 0x125   :  { %252 = dma.hbm_to_vmem [thread:$0]  %s6916_s22, 1024, %s247_s18, [#allocation17], %s6348_s29, %s6348_s29, %s6349_s15  }
 0x126   :  { %p6107_p1 = pnand %p6106_p0, %p6100_p11 }
 0x128   :  { %6110 = shalt.err (!%p6107_p1)
}
 0x129   :  { %s6917_s20 = sld [smem:[#allocation77_spill]]  ;;  %s6369_s13 = smov [#allocation24]  }
 0x12a   :  { %s301_s4 = sshll.u32 %s6369_s13, 4  ;;  %s6370_s26 = smov [#allocation27]   ;;  %s302_s4 = int_to_ptr.vmem [resolvable:$true] %s301_s4 }
 0x12b   :  { %s323_s28 = sshll.u32 %s6370_s26, 4  ;;  %s6119_s1 = scalar_lea.vmem %s302_s4, 16  ;;  %s324_s28 = int_to_ptr.vmem [resolvable:$true] %s323_s28 }
 0x12c   :  { %p6120_p2 = scmp.ne.s32.totalorder %s302_s4, %s6119_s1  ;;  %s6123_s21 = scalar_lea.vmem %s302_s4, 32 }
 0x12d   :  { %p6124_p3 = scmp.lt.s32.totalorder %s302_s4, %s302_s4  ;;  %p6125_p4 = scmp.lt.s32.totalorder %s6123_s21, %s6119_s1 }
 0x12f   :  { %280 = dma.hbm_to_vmem [thread:$0]  %s6917_s20, 1024, %s275_s19, [#allocation20], %s6348_s29, %s6348_s29, %s6349_s15  }
 0x130   :  { %p6126_p5 = por %p6125_p4, %p6124_p3 }
 0x132   :  { %p6127_p6 = pnand %p6126_p5, %p6120_p2 }
 0x134   :  { %6130 = shalt.err (!%p6127_p6)
}
 0x135   :  { %s6918_s9 = sld [smem:[#allocation79_spill]]  ;;  %s6139_s14 = scalar_lea.vmem %s324_s28, 16 }
 0x136   :  { %p6140_p7 = scmp.ne.s32.totalorder %s324_s28, %s6139_s14  ;;  %s6143_s6 = scalar_lea.vmem %s324_s28, 32 }
 0x137   :  { %p6144_p8 = scmp.lt.s32.totalorder %s324_s28, %s324_s28  ;;  %p6145_p9 = scmp.lt.s32.totalorder %s6143_s6, %s6139_s14 }
 0x139   :  { %p6146_p10 = por %p6145_p9, %p6144_p8 }
 0x13b   :  { %304 = dma.hbm_to_vmem [thread:$0]  %s6918_s9, 16, %s302_s4, [#allocation23]  }
 0x13c   :  { %p6147_p11 = pnand %p6146_p10, %p6140_p7 }
 0x13e   :  { %6150 = shalt.err (!%p6147_p11)
}
 0x13f   :  { %s6919_s17 = sld [smem:[#allocation80_spill]]  ;;  %s6371_s2 = smov [#allocation30]  }
 0x140   :  { %s345_s7 = sshll.u32 %s6371_s2, 4  ;;  %s6372_s10 = smov [#allocation33]   ;;  %s346_s7 = int_to_ptr.vmem [resolvable:$true] %s345_s7 }
 0x141   :  { %s367_s11 = sshll.u32 %s6372_s10, 4  ;;  %s6159_s24 = scalar_lea.vmem %s346_s7, 16  ;;  %s368_s11 = int_to_ptr.vmem [resolvable:$true] %s367_s11 }
 0x142   :  { %p6160_p12 = scmp.ne.s32.totalorder %s346_s7, %s6159_s24  ;;  %s6163_s25 = scalar_lea.vmem %s346_s7, 32 }
 0x143   :  { %p6164_p13 = scmp.lt.s32.totalorder %s346_s7, %s346_s7  ;;  %p6165_p0 = scmp.lt.s32.totalorder %s6163_s25, %s6159_s24 }
 0x145   :  { %326 = dma.hbm_to_vmem [thread:$0]  %s6919_s17, 16, %s324_s28, [#allocation26]  }
 0x146   :  { %p6166_p1 = por %p6165_p0, %p6164_p13 }
 0x148   :  { %p6167_p2 = pnand %p6166_p1, %p6160_p12 }
 0x14a   :  { %6170 = shalt.err (!%p6167_p2)
}
 0x14b   :  { %s6920_s5 = sld [smem:[#allocation81_spill]]  ;;  %s6179_s8 = scalar_lea.vmem %s368_s11, 16 }
 0x14c   :  { %p6180_p3 = scmp.ne.s32.totalorder %s368_s11, %s6179_s8  ;;  %s6183_s16 = scalar_lea.vmem %s368_s11, 32 }
 0x14d   :  { %p6184_p4 = scmp.lt.s32.totalorder %s368_s11, %s368_s11  ;;  %p6185_p5 = scmp.lt.s32.totalorder %s6183_s16, %s6179_s8 }
 0x14f   :  { %p6186_p6 = por %p6185_p5, %p6184_p4 }
 0x151   :  { %348 = dma.hbm_to_vmem [thread:$0]  %s6920_s5, 16, %s346_s7, [#allocation29]  }
 0x152   :  { %p6187_p7 = pnand %p6186_p6, %p6180_p3 }
 0x154   :  { %6190 = shalt.err (!%p6187_p7)
}
 0x155   :  { %s6921_s18 = sld [smem:[#allocation82_spill]]  ;;  %s6373_s0 = smov [#allocation36]  }
 0x156   :  { %s389_s19 = sshll.u32 %s6373_s0, 4  ;;  %s6374_s30 = smov [#allocation39]   ;;  %s390_s19 = int_to_ptr.vmem [resolvable:$true] %s389_s19 }
 0x157   :  { %s411_s22 = sshll.u32 %s6374_s30, 4  ;;  %s6199_s23 = scalar_lea.vmem %s390_s19, 16  ;;  %s412_s22 = int_to_ptr.vmem [resolvable:$true] %s411_s22 }
 0x158   :  { %p6200_p8 = scmp.ne.s32.totalorder %s390_s19, %s6199_s23  ;;  %s6203_s20 = scalar_lea.vmem %s390_s19, 32 }
 0x159   :  { %p6204_p9 = scmp.lt.s32.totalorder %s390_s19, %s390_s19  ;;  %p6205_p10 = scmp.lt.s32.totalorder %s6203_s20, %s6199_s23 }
 0x15b   :  { %370 = dma.hbm_to_vmem [thread:$0]  %s6921_s18, 16, %s368_s11, [#allocation32]  }
 0x15c   :  { %p6206_p11 = por %p6205_p10, %p6204_p9 }
 0x15e   :  { %p6207_p12 = pnand %p6206_p11, %p6200_p8 }
 0x160   :  { %6210 = shalt.err (!%p6207_p12)
}
 0x161   :  { %s6922_s13 = sld [smem:[#allocation83_spill]]  ;;  %s6219_s4 = scalar_lea.vmem %s412_s22, 16 }
 0x162   :  { %p6220_p13 = scmp.ne.s32.totalorder %s412_s22, %s6219_s4  ;;  %s6223_s26 = scalar_lea.vmem %s412_s22, 32 }
 0x163   :  { %p6224_p0 = scmp.lt.s32.totalorder %s412_s22, %s412_s22  ;;  %p6225_p1 = scmp.lt.s32.totalorder %s6223_s26, %s6219_s4 }
 0x165   :  { %p6226_p2 = por %p6225_p1, %p6224_p0 }
 0x167   :  { %392 = dma.hbm_to_vmem [thread:$0]  %s6922_s13, 16, %s390_s19, [#allocation35]  }
 0x168   :  { %p6227_p3 = pnand %p6226_p2, %p6220_p13 }
 0x16a   :  { %6230 = shalt.err (!%p6227_p3)
}
 0x16b   :  { %s6923_s28 = sld [smem:[#allocation84_spill]]  ;;  %s6375_s1 = smov [#allocation42]  }
 0x16c   :  { %s432_s21 = sshll.u32 %s6375_s1, 4  ;;  %s6376_s9 = smov [#allocation43]   ;;  %s433_s21 = int_to_ptr.vmem [resolvable:$true] %s432_s21 }
 0x16d   :  { %s445_s14 = sshll.u32 %s6376_s9, 4  ;;  %s6239_s6 = scalar_lea.vmem %s433_s21, 1024  ;;  %s446_s14 = int_to_ptr.vmem [resolvable:$true] %s445_s14 }
 0x16e   :  { %p6240_p4 = scmp.ne.s32.totalorder %s433_s21, %s6239_s6  ;;  %p6244_p5 = scmp.lt.s32.totalorder %s433_s21, %s433_s21 }
 0x16f   :  { %p6245_p6 = scmp.lt.s32.totalorder %s6239_s6, %s6239_s6 }
 0x171   :  { %414 = dma.hbm_to_vmem [thread:$0]  %s6923_s28, 16, %s412_s22, [#allocation38]  }
 0x172   :  { %p6246_p7 = por %p6245_p6, %p6244_p5 }
 0x174   :  { %p6247_p8 = pnand %p6246_p7, %p6240_p4 }
 0x176   :  { %6250 = shalt.err (!%p6247_p8)
}
 0x177   :  { %438 = dma.hbm_to_vmem [thread:$0]  %s6588_s27, 1024, %s433_s21, [#allocation41], %s6348_s29, %s6348_s29, %s6349_s15  }
 0x178   :  { %s6259_s17 = scalar_lea.vmem %s446_s14, 16  ;;  %s6263_s2 = scalar_lea.vmem %s446_s14, 32 }
 0x179   :  { %p6260_p9 = scmp.ne.s32.totalorder %s446_s14, %s6259_s17  ;;  %p6264_p10 = scmp.lt.s32.totalorder %s446_s14, %s446_s14 }
 0x17a   :  { %p6265_p11 = scmp.lt.s32.totalorder %s6263_s2, %s6259_s17 }
 0x17c   :  { %p6266_p12 = por %p6265_p11, %p6264_p10 }
 0x17e   :  { %p6267_p13 = pnand %p6266_p12, %p6260_p9 }
 0x180   :  { %6270 = shalt.err (!%p6267_p13)
}
 0x181   :  { %448 = dma.hbm_to_vmem [thread:$0]  %s6593_s3, 16, %s446_s14, [#allocation44]  }
 0x182   :  { %6271 = dma.done.wait [#allocation3], 8192  }
 0x183   :  { %6272 = vsyncadd [#allocation3], 4294959104 }
 0x184   :  { %6273 = dma.done.wait [#allocation5], 4128  }
 0x185   :  { %6274 = vsyncadd [#allocation5], 4294963168 }
 0x186   :  { %6275 = dma.done.wait [#allocation8], 4128  }
 0x187   :  { %6276 = vsyncadd [#allocation8], 4294963168 }
 0x188   :  { %6277 = dma.done.wait [#allocation11], 2080  }
 0x189   :  { %6278 = vsyncadd [#allocation11], 4294965216 }
 0x18a   :  { %6279 = dma.done.wait [#allocation14], 2048  }
 0x18b   :  { %6280 = vsyncadd [#allocation14], 4294965248 }
 0x18c   :  { %6281 = dma.done.wait [#allocation17], 2048  }
 0x18d   :  { %6282 = vsyncadd [#allocation17], 4294965248 }
 0x18e   :  { %6283 = dma.done.wait [#allocation20], 2048  }
 0x18f   :  { %6284 = vsyncadd [#allocation20], 4294965248 }
 0x190   :  { %6285 = dma.done.wait [#allocation23], 1040  }
 0x191   :  { %6286 = vsyncadd [#allocation23], 4294966256 }
 0x192   :  { %6287 = dma.done.wait [#allocation26], 1040  }
 0x193   :  { %6288 = vsyncadd [#allocation26], 4294966256 }
 0x194   :  { %6289 = dma.done.wait [#allocation29], 1040  }
 0x195   :  { %6290 = vsyncadd [#allocation29], 4294966256 }
 0x196   :  { %6291 = dma.done.wait [#allocation32], 1040  }
 0x197   :  { %6292 = vsyncadd [#allocation32], 4294966256 }
 0x198   :  { %6293 = dma.done.wait [#allocation35], 1040  }
 0x199   :  { %6294 = vsyncadd [#allocation35], 4294966256 }
 0x19a   :  { %6295 = dma.done.wait [#allocation38], 1040  }
 0x19b   :  { %6296 = vsyncadd [#allocation38], 4294966256 }
 0x19c   :  { %6297 = dma.done.wait [#allocation41], 13312  }
 0x19d   :  { %6298 = vsyncadd [#allocation41], 4294953984 }
 0x19e   :  { %6299 = dma.done.wait [#allocation44], 16  }
 0x19f   :  { %6300 = vsyncadd [#allocation44], 4294967280  ;;  %v5231_v0 = vld [vmem:[#allocation2 + $0x74] ss:$8 sps:$4 sm:$0xff]   ;;  %v5235_v2 = vld [vmem:[#allocation2 + $0x70] ss:$8 sps:$4 sm:$0xff]  }
 0x1a0   :  { %v5233_v1 = vld [vmem:[#allocation2 + $0x174] ss:$8 sps:$4 sm:$0xff]   ;;  %948 = vmatprep.subr.bf16.mxu0 %v5231_v0  ;;  %v5236_v3 = vld [vmem:[#allocation2 + $0x170] ss:$8 sps:$4 sm:$0xff]   ;;  %v5237_v4 = vld [vmem:[#allocation2 + $0x64] ss:$8 sps:$4 sm:$0xff]  }
 0x1a1   :  { %989 = vmatprep.subr.bf16.mxu1 %v5233_v1  ;;  %949 = vmatpush1.bf16.msra.mxu0 %v5235_v2  ;;  %v5239_v5 = vld [vmem:[#allocation2 + $0x164] ss:$8 sps:$4 sm:$0xff]   ;;  %v5241_v6 = vld [vmem:[#allocation2 + $0x60] ss:$8 sps:$4 sm:$0xff]   ;;  %v5243_v8 = vld [vmem:[#allocation2 + $0x54] ss:$8 sps:$4 sm:$0xff]  }
 0x1a2   :  { %990 = vmatpush1.bf16.msra.mxu1 %v5236_v3  ;;  %950 = vmatprep.subr.bf16.mxu0 %v5237_v4  ;;  %v5242_v7 = vld [vmem:[#allocation2 + $0x160] ss:$8 sps:$4 sm:$0xff]   ;;  %v5245_v9 = vld [vmem:[#allocation2 + $0x154] ss:$8 sps:$4 sm:$0xff]   ;;  %v5247_v10 = vld [vmem:[#allocation2 + $0x50] ss:$8 sps:$4 sm:$0xff]  }
 0x1a3   :  { %991 = vmatprep.subr.bf16.mxu1 %v5239_v5  ;;  %v5248_v11 = vld [vmem:[#allocation2 + $0x150] ss:$8 sps:$4 sm:$0xff]   ;;  %v5249_v12 = vld [vmem:[#allocation2 + $0x44] ss:$8 sps:$4 sm:$0xff]   ;;  %v5253_v14 = vld [vmem:[#allocation2 + $0x40] ss:$8 sps:$4 sm:$0xff]  }
 0x1a4   :  { %v5251_v13 = vld [vmem:[#allocation2 + $0x144] ss:$8 sps:$4 sm:$0xff]   ;;  %v5254_v15 = vld [vmem:[#allocation2 + $0x140] ss:$8 sps:$4 sm:$0xff]   ;;  %v5255_v16 = vld [vmem:[#allocation2 + $0x34] ss:$8 sps:$4 sm:$0xff]  }
 0x1a5   :  { %951 = vmatpush1.bf16.msra.mxu0 %v5241_v6  ;;  %v5257_v17 = vld [vmem:[#allocation2 + $0x134] ss:$8 sps:$4 sm:$0xff]   ;;  %v5259_v18 = vld [vmem:[#allocation2 + $0x30] ss:$8 sps:$4 sm:$0xff]   ;;  %v5261_v20 = vld [vmem:[#allocation2 + $0x24] ss:$8 sps:$4 sm:$0xff]  }
 0x1a6   :  { %992 = vmatpush1.bf16.msra.mxu1 %v5242_v7  ;;  %952 = vmatprep.subr.bf16.mxu0 %v5243_v8  ;;  %v5260_v19 = vld [vmem:[#allocation2 + $0x130] ss:$8 sps:$4 sm:$0xff]   ;;  %v5263_v21 = vld [vmem:[#allocation2 + $0x124] ss:$8 sps:$4 sm:$0xff]   ;;  %v5265_v22 = vld [vmem:[#allocation2 + $0x20] ss:$8 sps:$4 sm:$0xff]  }
 0x1a7   :  { %993 = vmatprep.subr.bf16.mxu1 %v5245_v9  ;;  %v5266_v23 = vld [vmem:[#allocation2 + $0x120] ss:$8 sps:$4 sm:$0xff]   ;;  %v5267_v24 = vld [vmem:[#allocation2 + $0x14] ss:$8 sps:$4 sm:$0xff]   ;;  %v5271_v26 = vld [vmem:[#allocation2 + $0x10] ss:$8 sps:$4 sm:$0xff]  }
 0x1a8   :  { %v5269_v25 = vld [vmem:[#allocation2 + $0x114] ss:$8 sps:$4 sm:$0xff]   ;;  %v5272_v27 = vld [vmem:[#allocation2 + $0x110] ss:$8 sps:$4 sm:$0xff]   ;;  %v5273_v28 = vld [vmem:[#allocation2 + $0x4] ss:$8 sps:$4 sm:$0xff]  }
 0x1a9   :  { %953 = vmatpush1.bf16.msra.mxu0 %v5247_v10  ;;  %v5275_v29 = vld [vmem:[#allocation2 + $0x104] ss:$8 sps:$4 sm:$0xff]   ;;  %v5277_v30 = vld [vmem:[#allocation2] ss:$8 sps:$4 sm:$0xff]   ;;  %v5279_v32 = vld [vmem:[#allocation2 + $0xf4] ss:$8 sps:$4 sm:$0xff]  }
 0x1aa   :  { %994 = vmatpush1.bf16.msra.mxu1 %v5248_v11  ;;  %954 = vmatprep.subr.bf16.mxu0 %v5249_v12  ;;  %v5278_v31 = vld [vmem:[#allocation2 + $0x100] ss:$8 sps:$4 sm:$0xff]   ;;  %v5281_v33 = vld [vmem:[#allocation2 + $0x1f4] ss:$8 sps:$4 sm:$0xff]   ;;  %v5283_v34 = vld [vmem:[#allocation2 + $0xf0] ss:$8 sps:$4 sm:$0xff]  }
 0x1ab   :  { %995 = vmatprep.subr.bf16.mxu1 %v5251_v13  ;;  %v5284_v35 = vld [vmem:[#allocation2 + $0x1f0] ss:$8 sps:$4 sm:$0xff]   ;;  %v5285_v36 = vld [vmem:[#allocation2 + $0xe4] ss:$8 sps:$4 sm:$0xff]   ;;  %v5289_v38 = vld [vmem:[#allocation2 + $0xe0] ss:$8 sps:$4 sm:$0xff]  }
 0x1ac   :  { %v5287_v37 = vld [vmem:[#allocation2 + $0x1e4] ss:$8 sps:$4 sm:$0xff]   ;;  %s6924_s3 = sld [smem:[#allocation60_spill]]  ;;  %v5290_v39 = vld [vmem:[#allocation2 + $0x1e0] ss:$8 sps:$4 sm:$0xff]   ;;  %v6377_v47 = vmov 0  }
 0x1ad   :  { %955 = vmatpush1.bf16.msra.mxu0 %v5253_v14  ;;  %v5291_v40 = vld [vmem:[#allocation2 + $0xd4] ss:$8 sps:$4 sm:$0xff]   ;;  %v5295_v42 = vld [vmem:[#allocation2 + $0xd0] ss:$8 sps:$4 sm:$0xff]   ;;  %v5297_v44 = vld [vmem:[#allocation2 + $0xc4] ss:$8 sps:$4 sm:$0xff]  }
 0x1ae   :  { %996 = vmatpush1.bf16.msra.mxu1 %v5254_v15  ;;  %956 = vmatprep.subr.bf16.mxu0 %v5255_v16  ;;  %v5293_v41 = vld [vmem:[#allocation2 + $0x1d4] ss:$8 sps:$4 sm:$0xff]   ;;  %v5296_v43 = vld [vmem:[#allocation2 + $0x1d0] ss:$8 sps:$4 sm:$0xff]   ;;  %v5299_v45 = vld [vmem:[#allocation2 + $0x1c4] ss:$8 sps:$4 sm:$0xff]  }
 0x1af   :  { %997 = vmatprep.subr.bf16.mxu1 %v5257_v17  ;;  %v5301_v50 = vld [vmem:[#allocation2 + $0xc0] ss:$8 sps:$4 sm:$0xff]   ;;  %v5303_v53 = vld [vmem:[#allocation2 + $0xb4] ss:$8 sps:$4 sm:$0xff]   ;;  %v5307_v57 = vld [vmem:[#allocation2 + $0xb0] ss:$8 sps:$4 sm:$0xff]  }
 0x1b0   :  { %v5302_v51 = vld [vmem:[#allocation2 + $0x1c0] ss:$8 sps:$4 sm:$0xff]   ;;  %v5305_v54 = vld [vmem:[#allocation2 + $0x1b4] ss:$8 sps:$4 sm:$0xff]   ;;  %v5308_v58 = vld [vmem:[#allocation2 + $0x1b0] ss:$8 sps:$4 sm:$0xff]  }
 0x1b1   :  { %957 = vmatpush1.bf16.msra.mxu0 %v5259_v18  ;;  %v5309_v59 = vld [vmem:[#allocation2 + $0xa4] ss:$8 sps:$4 sm:$0xff]   ;;  %v5313_v61 = vld [vmem:[#allocation2 + $0xa0] ss:$8 sps:$4 sm:$0xff]   ;;  %v5315_v63 = vld [vmem:[#allocation2 + $0x94] ss:$8 sps:$4 sm:$0xff]  }
 0x1b2   :  { %998 = vmatpush1.bf16.msra.mxu1 %v5260_v19  ;;  %958 = vmatprep.subr.bf16.mxu0 %v5261_v20  ;;  %v534_v46 = vld [vmem:[%s6924_s3] sm:$0xff]  ;;  %v535_v49 = vld [vmem:[%s6924_s3 + $0x8] sm:$0xff]  ;;  %v5317_v0 = vld [vmem:[#allocation2 + $0x194] ss:$8 sps:$4 sm:$0xff]   ;;  %s6925_s27 = sld [smem:[#allocation66_spill]]  ;;  %vm6379_vm0 = vmmov 0  }
 0x1b3   :  { %999 = vmatprep.subr.bf16.mxu1 %v5263_v21  ;;  %v536_v48 = vmax.bf16 %v6377_v47, %v534_v46  ;;  %v537_v52 = vmax.bf16 %v6377_v47, %v535_v49  ;;  %v5311_v60 = vld [vmem:[#allocation2 + $0x1a4] ss:$8 sps:$4 sm:$0xff]   ;;  %v5314_v62 = vld [vmem:[#allocation2 + $0x1a0] ss:$8 sps:$4 sm:$0xff]   ;;  %v5319_v1 = vld [vmem:[#allocation2 + $0x90] ss:$8 sps:$4 sm:$0xff]  }
 0x1b4   :  { %v5320_v2 = vld [vmem:[#allocation2 + $0x190] ss:$8 sps:$4 sm:$0xff]   ;;  %v5321_v3 = vld [vmem:[#allocation2 + $0x84] ss:$8 sps:$4 sm:$0xff]   ;;  %v5325_v5 = vld [vmem:[#allocation2 + $0x80] ss:$8 sps:$4 sm:$0xff]  }
 0x1b5   :  { %959 = vmatpush1.bf16.msra.mxu0 %v5265_v22  ;;  %v4316_v55 = vcombine.high %v536_v48, %v536_v48  ;;  %v4318_v56 = vcombine.high %v537_v52, %v537_v52  ;;  %v5323_v4 = vld [vmem:[#allocation2 + $0x184] ss:$8 sps:$4 sm:$0xff]   ;;  %v5326_v6 = vld [vmem:[#allocation2 + $0x180] ss:$8 sps:$4 sm:$0xff]   ;;  %v5327_v8 = vld [vmem:[#allocation6 + $0x70] ss:$8 sps:$4 sm:$0xff]   ;;  %v4315_v9 = vcombine.low %v536_v48, %v536_v48  ;;  %v4317_v10 = vcombine.low %v537_v52, %v537_v52 }
 0x1b6   :  { %1000 = vmatpush1.bf16.msra.mxu1 %v5266_v23  ;;  %960 = vmatprep.subr.bf16.mxu0 %v5267_v24  ;;  %v5329_v7 = vld [vmem:[#allocation6 + $0x74] ss:$8 sps:$4 sm:$0xff]   ;;  %v5332_v11 = vld [vmem:[#allocation6 + $0x64] ss:$8 sps:$4 sm:$0xff]   ;;  %v5330_v12 = vld [vmem:[#allocation6 + $0x60] ss:$8 sps:$4 sm:$0xff]  }
 0x1b7   :  { %1001 = vmatprep.subr.bf16.mxu1 %v5269_v25  ;;  %980 = vmatprep.mubr.bf16.mxu0 %v4316_v55  ;;  %v5335_v13 = vld [vmem:[#allocation6 + $0x54] ss:$8 sps:$4 sm:$0xff]   ;;  %v5333_v14 = vld [vmem:[#allocation6 + $0x50] ss:$8 sps:$4 sm:$0xff]   ;;  %v5338_v15 = vld [vmem:[#allocation6 + $0x44] ss:$8 sps:$4 sm:$0xff]  }
 0x1b8   :  { %1021 = vmatprep.mubr.bf16.mxu1 %v4318_v56  ;;  %v5336_v16 = vld [vmem:[#allocation6 + $0x40] ss:$8 sps:$4 sm:$0xff]   ;;  %v5341_v17 = vld [vmem:[#allocation6 + $0x34] ss:$8 sps:$4 sm:$0xff]   ;;  %v5339_v18 = vld [vmem:[#allocation6 + $0x30] ss:$8 sps:$4 sm:$0xff]  }
 0x1b9   :  { %961 = vmatpush1.bf16.msra.mxu0 %v5271_v26  ;;  %v5344_v19 = vld [vmem:[#allocation6 + $0x24] ss:$8 sps:$4 sm:$0xff]   ;;  %v5342_v20 = vld [vmem:[#allocation6 + $0x20] ss:$8 sps:$4 sm:$0xff]   ;;  %v5347_v21 = vld [vmem:[#allocation6 + $0x14] ss:$8 sps:$4 sm:$0xff]  }
 0x1ba   :  { %1002 = vmatpush1.bf16.msra.mxu1 %v5272_v27  ;;  %962 = vmatprep.subr.bf16.mxu0 %v5273_v28  ;;  %v5345_v22 = vld [vmem:[#allocation6 + $0x10] ss:$8 sps:$4 sm:$0xff]   ;;  %v5350_v23 = vld [vmem:[#allocation6 + $0x4] ss:$8 sps:$4 sm:$0xff]   ;;  %v5348_v24 = vld [vmem:[#allocation6] ss:$8 sps:$4 sm:$0xff]  }
 0x1bb   :  { %1003 = vmatprep.subr.bf16.mxu1 %v5275_v29  ;;  %v5353_v25 = vld [vmem:[#allocation6 + $0xf4] ss:$8 sps:$4 sm:$0xff]   ;;  %v5351_v26 = vld [vmem:[#allocation6 + $0xf0] ss:$8 sps:$4 sm:$0xff]   ;;  %v5356_v27 = vld [vmem:[#allocation6 + $0xe4] ss:$8 sps:$4 sm:$0xff]  }
 0x1bc   :  { %v5354_v28 = vld [vmem:[#allocation6 + $0xe0] ss:$8 sps:$4 sm:$0xff]   ;;  %v5359_v29 = vld [vmem:[#allocation6 + $0xd4] ss:$8 sps:$4 sm:$0xff]   ;;  %s6926_s29 = sld [smem:[#allocation68_spill]] }
 0x1bd   :  { %963 = vmatpush1.bf16.msra.mxu0 %v5277_v30  ;;  %v5357_v30 = vld [vmem:[#allocation6 + $0xd0] ss:$8 sps:$4 sm:$0xff]   ;;  %v5384_v49 = vld [vmem:[#allocation9 + $0x40] ss:$8 sps:$4 sm:$0xff]   ;;  %s6927_s15 = sld [smem:[#allocation65_spill]] }
 0x1be   :  { %1004 = vmatpush1.bf16.msra.mxu1 %v5278_v31  ;;  %964 = vmatprep.subr.bf16.mxu0 %v5279_v32  ;;  %v5362_v31 = vld [vmem:[#allocation6 + $0xc4] ss:$8 sps:$4 sm:$0xff]   ;;  %v5360_v32 = vld [vmem:[#allocation6 + $0xc0] ss:$8 sps:$4 sm:$0xff]   ;;  %v5381_v46 = vld [vmem:[#allocation9 + $0x50] ss:$8 sps:$4 sm:$0xff]  }
 0x1bf   :  { %1005 = vmatprep.subr.bf16.mxu1 %v5281_v33  ;;  %v5365_v33 = vld [vmem:[#allocation6 + $0xb4] ss:$8 sps:$4 sm:$0xff]   ;;  %v5386_v48 = vld [vmem:[#allocation9 + $0x44] ss:$8 sps:$4 sm:$0xff]   ;;  %s6928_s7 = sld [smem:[#allocation61_spill]] }
 0x1c0   :  { %v5392_v52 = vld [vmem:[#allocation9 + $0x24] ss:$8 sps:$4 sm:$0xff]   ;;  %v5393_v55 = vld [vmem:[#allocation9 + $0x10] ss:$8 sps:$4 sm:$0xff]   ;;  %s6929_s10 = sld [smem:[#allocation67_spill]] }
 0x1c1   :  { %965 = vmatpush2.bf16.msra.mxu0 %v5283_v34  ;;  %v5363_v34 = vld [vmem:[#allocation6 + $0xb0] ss:$8 sps:$4 sm:$0xff]   ;;  %s6930_s11 = sld [smem:[#allocation70_spill]] }
 0x1c2   :  { %1006 = vmatpush2.bf16.msra.mxu1 %v5284_v35  ;;  %966 = vmatprep.subr.bf16.mxu0 %v5285_v36  ;;  %v5368_v35 = vld [vmem:[#allocation6 + $0xa4] ss:$8 sps:$4 sm:$0xff]   ;;  %v5366_v36 = vld [vmem:[#allocation6 + $0xa0] ss:$8 sps:$4 sm:$0xff]   ;;  %s6931_s24 = sld [smem:[#allocation72_spill]] }
 0x1c3   :  { %1007 = vmatprep.subr.bf16.mxu1 %v5287_v37  ;;  %v5371_v37 = vld [vmem:[#allocation6 + $0x94] ss:$8 sps:$4 sm:$0xff]   ;;  %v5398_v56 = vld [vmem:[#allocation9 + $0x4] ss:$8 sps:$4 sm:$0xff]   ;;  %s6932_s25 = sld [smem:[#allocation73_spill]] }
 0x1c4   :  { %s6933_s5 = sld [smem:[#allocation75_spill]] }
 0x1c5   :  { %967 = vmatpush2.bf16.msra.mxu0 %v5289_v38  ;;  %v5369_v38 = vld [vmem:[#allocation6 + $0x90] ss:$8 sps:$4 sm:$0xff]   ;;  %s6934_s8 = sld [smem:[#allocation62_spill]] }
 0x1c6   :  { %1008 = vmatpush2.bf16.msra.mxu1 %v5290_v39  ;;  %968 = vmatprep.subr.bf16.mxu0 %v5291_v40  ;;  %v5374_v39 = vld [vmem:[#allocation6 + $0x84] ss:$8 sps:$4 sm:$0xff]   ;;  %v5372_v40 = vld [vmem:[#allocation6 + $0x80] ss:$8 sps:$4 sm:$0xff]   ;;  %s6935_s16 = sld [smem:[#allocation76_spill]] }
 0x1c7   :  { %1009 = vmatprep.subr.bf16.mxu1 %v5293_v41  ;;  %v5375_v41 = vld [vmem:[#allocation9 + $0x70] ss:$8 sps:$4 sm:$0xff]   ;;  %s6936_s18 = sld [smem:[#allocation69_spill]] }
 0x1c8   :  { %s6937_s0 = sld [smem:[#allocation78_spill]] }
 0x1c9   :  { %969 = vmatpush2.bf16.msra.mxu0 %v5295_v42  ;;  %v5377_v42 = vld [vmem:[#allocation9 + $0x74] ss:$8 sps:$4 sm:$0xff]  }
 0x1ca   :  { %1010 = vmatpush2.bf16.msra.mxu1 %v5296_v43  ;;  %970 = vmatprep.subr.bf16.mxu0 %v5297_v44  ;;  %v5380_v43 = vld [vmem:[#allocation9 + $0x64] ss:$8 sps:$4 sm:$0xff]   ;;  %v5378_v44 = vld [vmem:[#allocation9 + $0x60] ss:$8 sps:$4 sm:$0xff]  }
 0x1cb   :  { %1011 = vmatprep.subr.bf16.mxu1 %v5299_v45  ;;  %v5383_v45 = vld [vmem:[#allocation9 + $0x54] ss:$8 sps:$4 sm:$0xff]  }
 0x1cd   :  { %971 = vmatpush2.bf16.msra.mxu0 %v5301_v50  ;;  %v5389_v50 = vld [vmem:[#allocation9 + $0x34] ss:$8 sps:$4 sm:$0xff]  }
 0x1ce   :  { %1012 = vmatpush2.bf16.msra.mxu1 %v5302_v51  ;;  %972 = vmatprep.subr.bf16.mxu0 %v5303_v53  ;;  %v5387_v51 = vld [vmem:[#allocation9 + $0x30] ss:$8 sps:$4 sm:$0xff]   ;;  %v5390_v53 = vld [vmem:[#allocation9 + $0x20] ss:$8 sps:$4 sm:$0xff]  }
 0x1cf   :  { %1013 = vmatprep.subr.bf16.mxu1 %v5305_v54  ;;  %v5395_v54 = vld [vmem:[#allocation9 + $0x14] ss:$8 sps:$4 sm:$0xff]  }
 0x1d1   :  { %973 = vmatpush2.bf16.msra.mxu0 %v5307_v57  ;;  %v5396_v57 = vld [vmem:[#allocation9] ss:$8 sps:$4 sm:$0xff]  }
 0x1d2   :  { %1014 = vmatpush2.bf16.msra.mxu1 %v5308_v58  ;;  %974 = vmatprep.subr.bf16.mxu0 %v5309_v59  ;;  %v5401_v58 = vld [vmem:[#allocation9 + $0xf4] ss:$8 sps:$4 sm:$0xff]   ;;  %v5399_v59 = vld [vmem:[#allocation9 + $0xf0] ss:$8 sps:$4 sm:$0xff]  }
 0x1d3   :  { %1015 = vmatprep.subr.bf16.mxu1 %v5311_v60  ;;  %v5404_v60 = vld [vmem:[#allocation9 + $0xe4] ss:$8 sps:$4 sm:$0xff]  }
 0x1d5   :  { %975 = vmatpush2.bf16.msra.mxu0 %v5313_v61  ;;  %v5402_v61 = vld [vmem:[#allocation9 + $0xe0] ss:$8 sps:$4 sm:$0xff]  }
 0x1d6   :  { %1016 = vmatpush2.bf16.msra.mxu1 %v5314_v62  ;;  %976 = vmatprep.subr.bf16.mxu0 %v5315_v63  ;;  %v5407_v62 = vld [vmem:[#allocation9 + $0xd4] ss:$8 sps:$4 sm:$0xff]   ;;  %v5405_v63 = vld [vmem:[#allocation9 + $0xd0] ss:$8 sps:$4 sm:$0xff]  }
 0x1d7   :  { %1017 = vmatprep.subr.bf16.mxu1 %v5317_v0  ;;  %v5410_v0 = vld [vmem:[#allocation9 + $0xc4] ss:$8 sps:$4 sm:$0xff]  }
 0x1d9   :  { %977 = vmatpush2.bf16.msra.mxu0 %v5319_v1  ;;  %v5408_v1 = vld [vmem:[#allocation9 + $0xc0] ss:$8 sps:$4 sm:$0xff]  }
 0x1da   :  { %1018 = vmatpush2.bf16.msra.mxu1 %v5320_v2  ;;  %978 = vmatprep.subr.bf16.mxu0 %v5321_v3  ;;  %v5413_v2 = vld [vmem:[#allocation9 + $0xb4] ss:$8 sps:$4 sm:$0xff]   ;;  %v5411_v3 = vld [vmem:[#allocation9 + $0xb0] ss:$8 sps:$4 sm:$0xff]  }
 0x1db   :  { %1019 = vmatprep.subr.bf16.mxu1 %v5323_v4  ;;  %v5416_v4 = vld [vmem:[#allocation9 + $0xa4] ss:$8 sps:$4 sm:$0xff]  }
 0x1dd   :  { %979 = vmatpush2.bf16.msra.mxu0 %v5325_v5  ;;  %v5414_v5 = vld [vmem:[#allocation9 + $0xa0] ss:$8 sps:$4 sm:$0xff]  }
 0x1de   :  { %1020 = vmatpush2.bf16.msra.mxu1 %v5326_v6  ;;  %1238 = vmatprep.subr.bf16.mxu0 %v5329_v7  ;;  %v604_v6 = vlaneseq }
 0x1df   :  { %1487 = vmatprep.subr.bf16.mxu1 %v5377_v42  ;;  %v5432_v42 = vld [vmem:[#allocation12 + $0x18] sm:$0xff]  }
 0x1e0   :  { %981 = vmatmul.mubr.bf16.vlgmr.msra.gmra.mxu0 %v4315_v9  ;;  %v605_v7 = vshrl.u32 %v604_v6, 7  ;;  %v602_v9 = vld [vmem:[#allocation4] sm:$0x3]  ;;  %v1315_v6 = vld [vmem:[#allocation10] sm:$0x3] }
 0x1e1   :  { %1022 = vmatmul.mubr.bf16.vlgmr.msra.gmra.mxu1 %v4317_v10  ;;  %1239 = vmatpush1.bf16.msra.mxu0 %v5327_v8 }
 0x1e2   :  { %1240 = vmatprep.subr.bf16.mxu0 %v5332_v11  ;;  %1488 = vmatpush1.bf16.msra.mxu1 %v5375_v41  ;;  %v6674_v8 = vsub.s32 0, %v605_v7  ;;  %v6676_v10 = vsub.s32 1, %v605_v7  ;;  %v5431_v41 = vld [vmem:[#allocation12 + $0x58] sm:$0xff]  }
 0x1e3   :  { %1489 = vmatprep.subr.bf16.mxu1 %v5380_v43  ;;  %v5433_v43 = vld [vmem:[#allocation12 + $0x50] sm:$0xff]  }
 0x1e4   :  { %v607_v11 = vrot.slane %v602_v9, %v6674_v8  ;;  %v1320_v7 = vrot.slane %v1315_v6, %v6674_v8 }
 0x1e5   :  { %1241 = vmatpush1.bf16.msra.mxu0 %v5330_v12  ;;  %v611_v12 = vrot.slane %v602_v9, %v6676_v10  ;;  %v1324_v9 = vrot.slane %v1315_v6, %v6676_v10 }
 0x1e6   :  { %1242 = vmatprep.subr.bf16.mxu0 %v5335_v13  ;;  %1490 = vmatpush1.bf16.msra.mxu1 %v5378_v44  ;;  %v5434_v44 = vld [vmem:[#allocation12 + $0x10] sm:$0xff]  }
 0x1e7   :  { %1491 = vmatprep.subr.bf16.mxu1 %v5383_v45  ;;  %v1066_v45 = vld [vmem:[#allocation7] sm:$0x3] }
 0x1e9   :  { %1243 = vmatpush1.bf16.msra.mxu0 %v5333_v14 }
 0x1ea   :  { %1244 = vmatprep.subr.bf16.mxu0 %v5338_v15  ;;  %1492 = vmatpush1.bf16.msra.mxu1 %v5381_v46  ;;  %v1071_v46 = vrot.slane %v1066_v45, %v6674_v8  ;;  %v5446_v8 = vld [vmem:[%s6925_s27] sm:$0xff]  }
 0x1eb   :  { %1493 = vmatprep.subr.bf16.mxu1 %v5386_v48  ;;  %v1075_v48 = vrot.slane %v1066_v45, %v6676_v10  ;;  %v5455_v10 = vld [vmem:[%s6926_s29 + $0x38] sm:$0xff]   ;;  %v1933_v45 = vld [vmem:[%s6928_s7] sm:$0xf] }
 0x1ed   :  { %1245 = vmatpush1.bf16.msra.mxu0 %v5336_v16 }
 0x1ee   :  { %1246 = vmatprep.subr.bf16.mxu0 %v5341_v17  ;;  %1494 = vmatpush1.bf16.msra.mxu1 %v5384_v49 }
 0x1ef   :  { %1495 = vmatprep.subr.bf16.mxu1 %v5389_v50 }
 0x1f1   :  { %1247 = vmatpush1.bf16.msra.mxu0 %v5339_v18 }
 0x1f2   :  { %1248 = vmatprep.subr.bf16.mxu0 %v5344_v19  ;;  %1496 = vmatpush1.bf16.msra.mxu1 %v5387_v51 }
 0x1f3   :  { %1497 = vmatprep.subr.bf16.mxu1 %v5392_v52 }
 0x1f5   :  { %1249 = vmatpush1.bf16.msra.mxu0 %v5342_v20 }
 0x1f6   :  { %1250 = vmatprep.subr.bf16.mxu0 %v5347_v21  ;;  %1498 = vmatpush1.bf16.msra.mxu1 %v5390_v53 }
 0x1f7   :  { %1499 = vmatprep.subr.bf16.mxu1 %v5395_v54 }
 0x1f9   :  { %1251 = vmatpush1.bf16.msra.mxu0 %v5345_v22 }
 0x1fa   :  { %1252 = vmatprep.subr.bf16.mxu0 %v5350_v23  ;;  %1500 = vmatpush1.bf16.msra.mxu1 %v5393_v55 }
 0x1fb   :  { %1501 = vmatprep.subr.bf16.mxu1 %v5398_v56 }
 0x1fd   :  { %1253 = vmatpush1.bf16.msra.mxu0 %v5348_v24 }
 0x1fe   :  { %1254 = vmatprep.subr.bf16.mxu0 %v5353_v25  ;;  %1502 = vmatpush1.bf16.msra.mxu1 %v5396_v57 }
 0x1ff   :  { %1503 = vmatprep.subr.bf16.mxu1 %v5401_v58 }
 0x201   :  { %1255 = vmatpush2.bf16.msra.mxu0 %v5351_v26 }
 0x202   :  { %1256 = vmatprep.subr.bf16.mxu0 %v5356_v27  ;;  %1504 = vmatpush2.bf16.msra.mxu1 %v5399_v59  ;;  %v5435_v59 = vld [vmem:[#allocation12 + $0x48] sm:$0xff]  }
 0x203   :  { %1505 = vmatprep.subr.bf16.mxu1 %v5404_v60  ;;  %v5436_v60 = vld [vmem:[#allocation12 + $0x8] sm:$0xff]  }
 0x205   :  { %1257 = vmatpush2.bf16.msra.mxu0 %v5354_v28 }
 0x206   :  { %1258 = vmatprep.subr.bf16.mxu0 %v5359_v29  ;;  %1506 = vmatpush2.bf16.msra.mxu1 %v5402_v61  ;;  %v5419_v29 = vld [vmem:[#allocation9 + $0x94] ss:$8 sps:$4 sm:$0xff]   ;;  %v5437_v61 = vld [vmem:[#allocation12 + $0x40] sm:$0xff]  }
 0x207   :  { %1507 = vmatprep.subr.bf16.mxu1 %v5407_v62  ;;  %v5438_v62 = vld [vmem:[#allocation12] sm:$0xff]  }
 0x209   :  { %1259 = vmatpush2.bf16.msra.mxu0 %v5357_v30  ;;  %v5417_v30 = vld [vmem:[#allocation9 + $0x90] ss:$8 sps:$4 sm:$0xff]  }
 0x20a   :  { %1260 = vmatprep.subr.bf16.mxu0 %v5362_v31  ;;  %1508 = vmatpush2.bf16.msra.mxu1 %v5405_v63  ;;  %v5422_v31 = vld [vmem:[#allocation9 + $0x84] ss:$8 sps:$4 sm:$0xff]   ;;  %v5439_v63 = vld [vmem:[%s6925_s27 + $0x38] sm:$0xff]  }
 0x20b   :  { %1509 = vmatprep.subr.bf16.mxu1 %v5410_v0  ;;  %v6378_v0 = vmov 0.0  }
 0x20d   :  { %1261 = vmatpush2.bf16.msra.mxu0 %v5360_v32  ;;  %v5420_v32 = vld [vmem:[#allocation9 + $0x80] ss:$8 sps:$4 sm:$0xff]  }
 0x20e   :  { %1262 = vmatprep.subr.bf16.mxu0 %v5365_v33  ;;  %1510 = vmatpush2.bf16.msra.mxu1 %v5408_v1  ;;  %v5423_v33 = vld [vmem:[#allocation12 + $0x78] sm:$0xff]   ;;  %v5440_v1 = vld [vmem:[%s6925_s27 + $0x30] sm:$0xff]  }
 0x20f   :  { %1511 = vmatprep.subr.bf16.mxu1 %v5413_v2  ;;  %v5441_v2 = vld [vmem:[%s6925_s27 + $0x28] sm:$0xff]  }
 0x211   :  { %1263 = vmatpush2.bf16.msra.mxu0 %v5363_v34  ;;  %v5424_v34 = vld [vmem:[#allocation12 + $0x38] sm:$0xff]  }
 0x212   :  { %1264 = vmatprep.subr.bf16.mxu0 %v5368_v35  ;;  %1512 = vmatpush2.bf16.msra.mxu1 %v5411_v3  ;;  %v5425_v35 = vld [vmem:[#allocation12 + $0x70] sm:$0xff]   ;;  %v5442_v3 = vld [vmem:[%s6925_s27 + $0x20] sm:$0xff]  }
 0x213   :  { %1513 = vmatprep.subr.bf16.mxu1 %v5416_v4  ;;  %v5443_v4 = vld [vmem:[%s6925_s27 + $0x18] sm:$0xff]  }
 0x215   :  { %1265 = vmatpush2.bf16.msra.mxu0 %v5366_v36  ;;  %v5426_v36 = vld [vmem:[#allocation12 + $0x30] sm:$0xff]  }
 0x216   :  { %1266 = vmatprep.subr.bf16.mxu0 %v5371_v37  ;;  %1514 = vmatpush2.bf16.msra.mxu1 %v5414_v5  ;;  %v5427_v37 = vld [vmem:[#allocation12 + $0x68] sm:$0xff]  }
 0x217   :  { %1515 = vmatprep.subr.bf16.mxu1 %v5419_v29  ;;  %v5444_v5 = vld [vmem:[%s6925_s27 + $0x10] sm:$0xff]   ;;  %v4447_v29 = vld [vmem:[%s6927_s15] ss:$0 sm:$0xff] }
 0x219   :  { %1267 = vmatpush2.bf16.msra.mxu0 %v5369_v38  ;;  %v5428_v38 = vld [vmem:[#allocation12 + $0x28] sm:$0xff]  }
 0x21a   :  { %1268 = vmatprep.subr.bf16.mxu0 %v5374_v39  ;;  %1516 = vmatpush2.bf16.msra.mxu1 %v5417_v30  ;;  %v5429_v39 = vld [vmem:[#allocation12 + $0x60] sm:$0xff]  }
 0x21b   :  { %1517 = vmatprep.subr.bf16.mxu1 %v5422_v31 }
 0x21d   :  { %1269 = vmatpush2.bf16.msra.mxu0 %v5372_v40  ;;  %v5430_v40 = vld [vmem:[#allocation12 + $0x20] sm:$0xff]  }
 0x21e   :  { %1518 = vmatpush2.bf16.msra.mxu1 %v5420_v32  ;;  %4695 = vmatprep.subr.bf16.mxu0 %v5423_v33 }
 0x21f   :  { %4852 = vmatprep.subr.bf16.mxu1 %v6378_v0 }
 0x2a0   :  { %v982_v13 = vpop.f32.mrf.mxu0 }
 0x2a1   :  { %v1023_v14 = vpop.f32.mrf.mxu1  ;;  %v983_v15 = vadd.f32 %v982_v13, %v607_v11 }
 0x2a2   :  { %v984_v16 = vpop.f32.mrf.mxu0 }
 0x2a3   :  { %v1025_v17 = vpop.f32.mrf.mxu1  ;;  %v1024_v18 = vadd.f32 %v1023_v14, %v983_v15  ;;  %v985_v19 = vadd.f32 %v984_v16, %v611_v12 }
 0x2a4   :  { %v986_v20 = vpop.f32.mrf.mxu0 }
 0x2a5   :  { %v1027_v21 = vpop.f32.mrf.mxu1  ;;  %v1026_v22 = vadd.f32 %v1025_v17, %v985_v19  ;;  %v1030_v23 = vmax.f32 %v1024_v18, 0.0 }
 0x2a6   :  { %v987_v24 = vpop.f32.mrf.mxu0  ;;  %v5445_v21 = vld [vmem:[%s6925_s27 + $0x8] sm:$0xff]  }
 0x2a7   :  { %v1028_v25 = vpop.f32.mrf.mxu1  ;;  %v1031_v26 = vmax.f32 %v1026_v22, 0.0  ;;  %v1032_v28 = vpack.c.bf16 %v1030_v23, %v1030_v23  ;;  %v5456_v22 = vld [vmem:[%s6926_s29 + $0x30] sm:$0xff]   ;;  %v5457_v23 = vld [vmem:[%s6926_s29 + $0x28] sm:$0xff]   ;;  %v5458_v24 = vld [vmem:[%s6926_s29 + $0x20] sm:$0xff]  }
 0x2a8   :  { %v5459_v25 = vld [vmem:[%s6926_s29 + $0x18] sm:$0xff]  }
 0x2a9   :  { %v1033_v27 = vpack.c.bf16 %v1031_v26, %v1031_v26  ;;  %v5460_v26 = vld [vmem:[%s6926_s29 + $0x10] sm:$0xff]  }
 0x2ab   :  { %1270 = vmatprep.mubr.bf16.mxu0 %v1033_v27  ;;  %v5461_v27 = vld [vmem:[%s6926_s29 + $0x8] sm:$0xff]  }
 0x2ac   :  { %1271 = vmatmul.mubr.bf16.vlgmr.msra.gmra.mxu0 %v1032_v28 }
 0x2ad   :  { %4696 = vmatpush3.bf16.msra.mxu0 %v5424_v34 }
 0x2ae   :  { %4697 = vmatprep.subr.bf16.mxu0 %v5425_v35 }
 0x2b1   :  { %4698 = vmatpush3.bf16.msra.mxu0 %v5426_v36  ;;  %v5447_v36 = vld [vmem:[#allocation13 + $0x38] sm:$0xff]  }
 0x2b2   :  { %4699 = vmatprep.subr.bf16.mxu0 %v5427_v37 }
 0x2b5   :  { %4700 = vmatpush3.bf16.msra.mxu0 %v5428_v38  ;;  %v5448_v38 = vld [vmem:[#allocation13 + $0x30] sm:$0xff]  }
 0x2b6   :  { %4701 = vmatprep.subr.bf16.mxu0 %v5429_v39  ;;  %v5449_v39 = vld [vmem:[#allocation13 + $0x28] sm:$0xff]  }
 0x2b9   :  { %4702 = vmatpush3.bf16.msra.mxu0 %v5430_v40  ;;  %v5450_v40 = vld [vmem:[#allocation13 + $0x20] sm:$0xff]  }
 0x2ba   :  { %4703 = vmatprep.subr.bf16.mxu0 %v5431_v41  ;;  %v5451_v41 = vld [vmem:[#allocation13 + $0x18] sm:$0xff]  }
 0x2bd   :  { %4704 = vmatpush3.bf16.msra.mxu0 %v5432_v42  ;;  %v5452_v42 = vld [vmem:[#allocation13 + $0x10] sm:$0xff]  }
 0x2be   :  { %4705 = vmatprep.subr.bf16.mxu0 %v5433_v43  ;;  %v5453_v43 = vld [vmem:[#allocation13 + $0x8] sm:$0xff]  }
 0x2c1   :  { %4706 = vmatpush3.bf16.msra.mxu0 %v5434_v44  ;;  %v5454_v44 = vld [vmem:[#allocation13] sm:$0xff]  }
 0x2c2   :  { %4707 = vmatprep.subr.bf16.mxu0 %v5435_v59  ;;  %v5465_v59 = vld [vmem:[#allocation15 + $0x28] sm:$0xff]  }
 0x2c5   :  { %4708 = vmatpush3.bf16.msra.mxu0 %v5436_v60  ;;  %v5466_v60 = vld [vmem:[#allocation15 + $0x20] sm:$0xff]  }
 0x2c6   :  { %4709 = vmatprep.subr.bf16.mxu0 %v5437_v61  ;;  %v5467_v61 = vld [vmem:[#allocation15 + $0x18] sm:$0xff]  }
 0x2c9   :  { %4710 = vmatpush3.bf16.msra.mxu0 %v5438_v62  ;;  %v5468_v62 = vld [vmem:[#allocation15 + $0x10] sm:$0xff]  }
 0x2ca   :  { %4872 = vmatprep.subr.bf16.mxu0 %v6378_v0 }
 0x36c   :  { %v1272_v49 = vpop.f32.mrf.mxu0 }
 0x36d   :  { %v1273_v50 = vadd.f32 %v1272_v49, %v1071_v46  ;;  %v1934_v46 = vmax.bf16 %v6377_v47, %v1933_v45  ;;  %v4464_v49 = vld [vmem:[%s6929_s10] ss:$0 sm:$0xff] }
 0x36e   :  { %v1274_v51 = vpop.f32.mrf.mxu0  ;;  %v4500_v45 = vld [vmem:[%s6932_s25] ss:$0 sm:$0xff] }
 0x36f   :  { %v1275_v52 = vadd.f32 %v1274_v51, %v1075_v48  ;;  %v1279_v53 = vmax.f32 %v1273_v50, 0.0  ;;  %v5462_v48 = vld [vmem:[%s6926_s29] sm:$0xff]  }
 0x370   :  { %v1276_v54 = vpop.f32.mrf.mxu0 }
 0x371   :  { %v1280_v55 = vmax.f32 %v1275_v52, 0.0  ;;  %v1281_v58 = vpack.c.bf16 %v1279_v53, %v1279_v53 }
 0x372   :  { %v1277_v56 = vpop.f32.mrf.mxu0 }
 0x373   :  { %v1282_v57 = vpack.c.bf16 %v1280_v55, %v1280_v55  ;;  %v5463_v55 = vld [vmem:[#allocation15 + $0x38] sm:$0xff]  }
 0x375   :  { %1519 = vmatprep.mubr.bf16.mxu1 %v1282_v57 }
 0x376   :  { %1520 = vmatmul.mubr.bf16.vlgmr.msra.gmra.mxu1 %v1281_v58  ;;  %v5464_v58 = vld [vmem:[#allocation15 + $0x30] sm:$0xff]  }
 0x377   :  { %4853 = vmatpush3.bf16.msra.mxu1 %v5439_v63  ;;  %4868 = vmatprep.mubr.msk.bf16.mxu1 %vm6379_vm0, %v6378_v0  ;;  %v5469_v63 = vld [vmem:[#allocation15 + $0x8] sm:$0xff]  }
 0x378   :  { %4854 = vmatprep.subr.bf16.mxu1 %v6378_v0 }
 0x37b   :  { %4855 = vmatpush3.bf16.msra.mxu1 %v5440_v1  ;;  %v4482_v1 = vld [vmem:[%s6930_s11] ss:$0 sm:$0xff] }
 0x37c   :  { %4856 = vmatprep.subr.bf16.mxu1 %v6378_v0 }
 0x37f   :  { %4857 = vmatpush3.bf16.msra.mxu1 %v5441_v2 }
 0x380   :  { %4858 = vmatprep.subr.bf16.mxu1 %v6378_v0 }
 0x383   :  { %4859 = vmatpush3.bf16.msra.mxu1 %v5442_v3  ;;  %v5470_v3 = vld [vmem:[#allocation15] sm:$0xff]  }
 0x384   :  { %4860 = vmatprep.subr.bf16.mxu1 %v6378_v0 }
 0x387   :  { %4861 = vmatpush3.bf16.msra.mxu1 %v5443_v4 }
 0x388   :  { %4862 = vmatprep.subr.bf16.mxu1 %v6378_v0 }
 0x38b   :  { %4863 = vmatpush3.bf16.msra.mxu1 %v5444_v5 }
 0x38c   :  { %4864 = vmatprep.subr.bf16.mxu1 %v6378_v0 }
 0x38f   :  { %4865 = vmatpush3.bf16.msra.mxu1 %v5445_v21  ;;  %v5480_v21 = vld [vmem:[#allocation18 + $0x30] sm:$0xff]  }
 0x390   :  { %4866 = vmatprep.subr.bf16.mxu1 %v6378_v0 }
 0x393   :  { %4867 = vmatpush3.bf16.msra.mxu1 %v5446_v8  ;;  %v5481_v8 = vld [vmem:[#allocation18 + $0x28] sm:$0xff]  }
 0x394   :  { %4892 = vmatprep.subr.bf16.mxu1 %v6378_v0 }
 0x436   :  { %v1521_v11 = vpop.f32.mrf.mxu1 }
 0x437   :  { %v1522_v12 = vadd.f32 %v1521_v11, %v1320_v7 }
 0x438   :  { %v1523_v13 = vpop.f32.mrf.mxu1 }
 0x439   :  { %v1524_v14 = vadd.f32 %v1523_v13, %v1324_v9  ;;  %v1528_v15 = vmax.f32 %v1522_v12, 0.0  ;;  %v5471_v12 = vld [vmem:[#allocation16 + $0x38] sm:$0xff]   ;;  %v5472_v13 = vld [vmem:[#allocation16 + $0x30] sm:$0xff]  }
 0x43a   :  { %v1525_v16 = vpop.f32.mrf.mxu1 }
 0x43b   :  { %v1529_v17 = vmax.f32 %v1524_v14, 0.0  ;;  %v1530_v20 = vpack.c.bf16 %v1528_v15, %v1528_v15  ;;  %v5473_v14 = vld [vmem:[#allocation16 + $0x28] sm:$0xff]   ;;  %v5474_v15 = vld [vmem:[#allocation16 + $0x20] sm:$0xff]   ;;  %v5475_v16 = vld [vmem:[#allocation16 + $0x18] sm:$0xff]  }
 0x43c   :  { %v1526_v18 = vpop.f32.mrf.mxu1 }
 0x43d   :  { %v1531_v19 = vpack.c.bf16 %v1529_v17, %v1529_v17  ;;  %v5476_v17 = vld [vmem:[#allocation16 + $0x10] sm:$0xff]   ;;  %v5477_v18 = vld [vmem:[#allocation16 + $0x8] sm:$0xff]  }
 0x43f   :  { %1699 = vmatprep.mubr.bf16.mxu0 %v1531_v19  ;;  %v5478_v19 = vld [vmem:[#allocation16] sm:$0xff]  }
 0x440   :  { %1700 = vmatmul.mubr.bf16.vlgmr.msra.gmra.mxu0 %v1530_v20  ;;  %v5479_v20 = vld [vmem:[#allocation18 + $0x38] sm:$0xff]  }
 0x441   :  { %4888 = vmatprep.mubr.msk.bf16.mxu0 %vm6379_vm0, %v6378_v0  ;;  %4873 = vmatpush3.bf16.msra.mxu0 %v5455_v10  ;;  %v5482_v10 = vld [vmem:[#allocation18 + $0x20] sm:$0xff]  }
 0x442   :  { %4874 = vmatprep.subr.bf16.mxu0 %v6378_v0 }
 0x445   :  { %4875 = vmatpush3.bf16.msra.mxu0 %v5456_v22  ;;  %v5483_v22 = vld [vmem:[#allocation18 + $0x18] sm:$0xff]  }
 0x446   :  { %4876 = vmatprep.subr.bf16.mxu0 %v6378_v0 }
 0x449   :  { %4877 = vmatpush3.bf16.msra.mxu0 %v5457_v23  ;;  %v5484_v23 = vld [vmem:[#allocation18 + $0x10] sm:$0xff]  }
 0x44a   :  { %4878 = vmatprep.subr.bf16.mxu0 %v6378_v0 }
 0x44d   :  { %4879 = vmatpush3.bf16.msra.mxu0 %v5458_v24 }
 0x44e   :  { %4880 = vmatprep.subr.bf16.mxu0 %v6378_v0 }
 0x451   :  { %4881 = vmatpush3.bf16.msra.mxu0 %v5459_v25 }
 0x452   :  { %4882 = vmatprep.subr.bf16.mxu0 %v6378_v0 }
 0x455   :  { %4883 = vmatpush3.bf16.msra.mxu0 %v5460_v26 }
 0x456   :  { %4884 = vmatprep.subr.bf16.mxu0 %v6378_v0 }
 0x459   :  { %4885 = vmatpush3.bf16.msra.mxu0 %v5461_v27 }
 0x45a   :  { %4886 = vmatprep.subr.bf16.mxu0 %v6378_v0 }
 0x45d   :  { %4887 = vmatpush3.bf16.msra.mxu0 %v5462_v48 }
 0x45e   :  { %4912 = vmatprep.subr.bf16.mxu0 %v6378_v0 }
 0x500   :  { %v4711_v28 = vpop.f32.mrf.mxu0 }
 0x502   :  { %v4712_v30 = vpop.f32.mrf.mxu0 }
 0x503   :  { %v4713_v31 = vadd.f32 %v4712_v30, %v4711_v28  ;;  %v4491_v28 = vld [vmem:[%s6931_s24] ss:$0 sm:$0xff] }
 0x504   :  { %v4714_v32 = vpop.f32.mrf.mxu0 }
 0x505   :  { %v1702_v33 = vadd.f32 %v4713_v31, %v4447_v29 }
 0x506   :  { %v4715_v34 = vpop.f32.mrf.mxu0 }
 0x507   :  { %v1707_v35 = vmax.f32 %v1702_v33, 0.0 }
 0x509   :  { %v1708_v37 = vpack.c.bf16 %v1707_v35, %v1707_v35 }
 0x50b   :  { %4869 = vmatmul.mubr.bf16.vlgmr.msra.gmra.mxu1 %v1708_v37  ;;  %v5486_v37 = vld [vmem:[#allocation18] sm:$0xff]  }
 0x50c   :  { %4893 = vmatpush3.bf16.msra.mxu1 %v5447_v36  ;;  %4908 = vmatprep.mubr.msk.bf16.mxu1 %vm6379_vm0, %v6378_v0  ;;  %v5485_v36 = vld [vmem:[#allocation18 + $0x8] sm:$0xff]  }
 0x50d   :  { %4894 = vmatprep.subr.bf16.mxu1 %v6378_v0 }
 0x510   :  { %4895 = vmatpush3.bf16.msra.mxu1 %v5448_v38  ;;  %v5487_v38 = vld [vmem:[#allocation19 + $0x38] sm:$0xff]  }
 0x511   :  { %4896 = vmatprep.subr.bf16.mxu1 %v6378_v0 }
 0x514   :  { %4897 = vmatpush3.bf16.msra.mxu1 %v5449_v39  ;;  %v5488_v39 = vld [vmem:[#allocation19 + $0x30] sm:$0xff]  }
 0x515   :  { %4898 = vmatprep.subr.bf16.mxu1 %v6378_v0 }
 0x518   :  { %4899 = vmatpush3.bf16.msra.mxu1 %v5450_v40  ;;  %v5489_v40 = vld [vmem:[#allocation19 + $0x28] sm:$0xff]  }
 0x519   :  { %4900 = vmatprep.subr.bf16.mxu1 %v6378_v0 }
 0x51c   :  { %4901 = vmatpush3.bf16.msra.mxu1 %v5451_v41  ;;  %v5490_v41 = vld [vmem:[#allocation19 + $0x20] sm:$0xff]  }
 0x51d   :  { %4902 = vmatprep.subr.bf16.mxu1 %v6378_v0 }
 0x520   :  { %4903 = vmatpush3.bf16.msra.mxu1 %v5452_v42  ;;  %v5491_v42 = vld [vmem:[#allocation19 + $0x18] sm:$0xff]  }
 0x521   :  { %4904 = vmatprep.subr.bf16.mxu1 %v6378_v0 }
 0x524   :  { %4905 = vmatpush3.bf16.msra.mxu1 %v5453_v43  ;;  %v5492_v43 = vld [vmem:[#allocation19 + $0x10] sm:$0xff]  }
 0x525   :  { %4906 = vmatprep.subr.bf16.mxu1 %v6378_v0 }
 0x528   :  { %4907 = vmatpush3.bf16.msra.mxu1 %v5454_v44  ;;  %v5493_v44 = vld [vmem:[#allocation19 + $0x8] sm:$0xff]  }
 0x529   :  { %4932 = vmatprep.subr.bf16.mxu1 %v6378_v0 }
 0x52b   :  { %4909 = vmatmul.mubr.bf16.vlgmr.msra.gmra.mxu1 %v1934_v46 }
 0x52c   :  { %4948 = vmatprep.mubr.msk.bf16.mxu1 %vm6379_vm0, %v6378_v0  ;;  %4933 = vmatpush3.bf16.msra.mxu1 %v5471_v12  ;;  %v5498_v12 = vld [vmem:[#allocation22 + $0x20] sm:$0xff]  }
 0x52d   :  { %4934 = vmatprep.subr.bf16.mxu1 %v6378_v0 }
 0x530   :  { %4935 = vmatpush3.bf16.msra.mxu1 %v5472_v13  ;;  %v5499_v13 = vld [vmem:[#allocation22 + $0x18] sm:$0xff]  }
 0x531   :  { %4936 = vmatprep.subr.bf16.mxu1 %v6378_v0 }
 0x534   :  { %4937 = vmatpush3.bf16.msra.mxu1 %v5473_v14  ;;  %v5500_v14 = vld [vmem:[#allocation22 + $0x10] sm:$0xff]  }
 0x535   :  { %4938 = vmatprep.subr.bf16.mxu1 %v6378_v0 }
 0x538   :  { %4939 = vmatpush3.bf16.msra.mxu1 %v5474_v15  ;;  %v5501_v15 = vld [vmem:[#allocation22 + $0x8] sm:$0xff]  }
 0x539   :  { %4940 = vmatprep.subr.bf16.mxu1 %v6378_v0 }
 0x53c   :  { %4941 = vmatpush3.bf16.msra.mxu1 %v5475_v16  ;;  %v5502_v16 = vld [vmem:[#allocation22] sm:$0xff]  }
 0x53d   :  { %4942 = vmatprep.subr.bf16.mxu1 %v6378_v0 }
 0x540   :  { %4943 = vmatpush3.bf16.msra.mxu1 %v5476_v17  ;;  %v2611_v17 = vld [vmem:[%s6934_s8] sm:$0xf] }
 0x541   :  { %4944 = vmatprep.subr.bf16.mxu1 %v6378_v0 }
 0x544   :  { %4945 = vmatpush3.bf16.msra.mxu1 %v5477_v18  ;;  %v2612_v18 = vmax.bf16 %v6377_v47, %v2611_v17  ;;  %v5537_v17 = vld [vmem:[#allocation34 + $0x28] sm:$0xff]  }
 0x545   :  { %4946 = vmatprep.subr.bf16.mxu1 %v6378_v0 }
 0x548   :  { %4947 = vmatpush3.bf16.msra.mxu1 %v5478_v19  ;;  %v5510_v19 = vld [vmem:[#allocation21] sm:$0xff]  }
 0x549   :  { %4972 = vmatprep.subr.bf16.mxu1 %v6378_v0 }
 0x5cb   :  { %v1814_v50 = vpop.f32.mrf.mxu1 }
 0x5cc   :  { %v1815_v51 = vadd.f32 %v4464_v49, %v1814_v50 }
 0x5cd   :  { %v4870_v52 = vpop.f32.mrf.mxu1 }
 0x5ce   :  { %v1820_v53 = vmax.f32 %v1815_v51, 0.0 }
 0x5cf   :  { %v1817_v54 = vpop.f32.mrf.mxu1 }
 0x5d0   :  { %v1821_v56 = vpack.c.bf16 %v1820_v53, %v1820_v53  ;;  %v5494_v54 = vld [vmem:[#allocation19] sm:$0xff]  }
 0x5d1   :  { %v4871_v57 = vpop.f32.mrf.mxu1 }
 0x5d2   :  { %4889 = vmatmul.mubr.bf16.vlgmr.msra.gmra.mxu0 %v1821_v56  ;;  %v5504_v56 = vld [vmem:[#allocation21 + $0x30] sm:$0xff]   ;;  %v5505_v57 = vld [vmem:[#allocation21 + $0x28] sm:$0xff]  }
 0x5d3   :  { %4913 = vmatpush3.bf16.msra.mxu0 %v5463_v55  ;;  %4928 = vmatprep.mubr.msk.bf16.mxu0 %vm6379_vm0, %v6378_v0  ;;  %v5503_v55 = vld [vmem:[#allocation21 + $0x38] sm:$0xff]  }
 0x5d4   :  { %4914 = vmatprep.subr.bf16.mxu0 %v6378_v0 }
 0x5d7   :  { %4915 = vmatpush3.bf16.msra.mxu0 %v5464_v58  ;;  %v5506_v58 = vld [vmem:[#allocation21 + $0x20] sm:$0xff]  }
 0x5d8   :  { %4916 = vmatprep.subr.bf16.mxu0 %v6378_v0 }
 0x5db   :  { %4917 = vmatpush3.bf16.msra.mxu0 %v5465_v59  ;;  %v5507_v59 = vld [vmem:[#allocation21 + $0x18] sm:$0xff]  }
 0x5dc   :  { %4918 = vmatprep.subr.bf16.mxu0 %v6378_v0 }
 0x5df   :  { %4919 = vmatpush3.bf16.msra.mxu0 %v5466_v60  ;;  %v5508_v60 = vld [vmem:[#allocation21 + $0x10] sm:$0xff]  }
 0x5e0   :  { %4920 = vmatprep.subr.bf16.mxu0 %v6378_v0 }
 0x5e3   :  { %4921 = vmatpush3.bf16.msra.mxu0 %v5467_v61  ;;  %v5509_v61 = vld [vmem:[#allocation21 + $0x8] sm:$0xff]  }
 0x5e4   :  { %4922 = vmatprep.subr.bf16.mxu0 %v6378_v0 }
 0x5e7   :  { %4923 = vmatpush3.bf16.msra.mxu0 %v5468_v62  ;;  %v4509_v62 = vld [vmem:[%s6933_s5] ss:$0 sm:$0xff] }
 0x5e8   :  { %4924 = vmatprep.subr.bf16.mxu0 %v6378_v0 }
 0x5eb   :  { %v2040_v2 = vpop.f32.mrf.mxu1  ;;  %4925 = vmatpush3.bf16.msra.mxu0 %v5469_v63 }
 0x5ec   :  { %v2041_v4 = vadd.f32 %v4482_v1, %v2040_v2  ;;  %4926 = vmatprep.subr.bf16.mxu0 %v6378_v0 }
 0x5ed   :  { %v4910_v5 = vpop.f32.mrf.mxu1 }
 0x5ee   :  { %v2046_v6 = vmax.f32 %v2041_v4, 0.0  ;;  %v5495_v5 = vld [vmem:[#allocation22 + $0x38] sm:$0xff]  }
 0x5ef   :  { %v2043_v7 = vpop.f32.mrf.mxu1  ;;  %4927 = vmatpush3.bf16.msra.mxu0 %v5470_v3 }
 0x5f0   :  { %v2047_v9 = vpack.c.bf16 %v2046_v6, %v2046_v6  ;;  %4952 = vmatprep.subr.bf16.mxu0 %v6378_v0 }
 0x5f1   :  { %v4911_v11 = vpop.f32.mrf.mxu1 }
 0x5f2   :  { %4929 = vmatmul.mubr.bf16.vlgmr.msra.gmra.mxu0 %v2047_v9  ;;  %v5496_v9 = vld [vmem:[#allocation22 + $0x30] sm:$0xff]   ;;  %v5497_v11 = vld [vmem:[#allocation22 + $0x28] sm:$0xff]  }
 0x5f3   :  { %4968 = vmatprep.mubr.msk.bf16.mxu0 %vm6379_vm0, %v6378_v0  ;;  %4953 = vmatpush3.bf16.msra.mxu0 %v5479_v20  ;;  %v4518_v20 = vld [vmem:[%s6935_s16] ss:$0 sm:$0xff] }
 0x5f4   :  { %4954 = vmatprep.subr.bf16.mxu0 %v6378_v0 }
 0x5f7   :  { %4955 = vmatpush3.bf16.msra.mxu0 %v5480_v21 }
 0x5f8   :  { %4956 = vmatprep.subr.bf16.mxu0 %v6378_v0 }
 0x5fb   :  { %4957 = vmatpush3.bf16.msra.mxu0 %v5481_v8 }
 0x5fc   :  { %4958 = vmatprep.subr.bf16.mxu0 %v6378_v0 }
 0x5ff   :  { %4959 = vmatpush3.bf16.msra.mxu0 %v5482_v10 }
 0x600   :  { %4960 = vmatprep.subr.bf16.mxu0 %v6378_v0 }
 0x603   :  { %4961 = vmatpush3.bf16.msra.mxu0 %v5483_v22 }
 0x604   :  { %4962 = vmatprep.subr.bf16.mxu0 %v6378_v0 }
 0x607   :  { %4963 = vmatpush3.bf16.msra.mxu0 %v5484_v23 }
 0x608   :  { %4964 = vmatprep.subr.bf16.mxu0 %v6378_v0 }
 0x60b   :  { %4965 = vmatpush3.bf16.msra.mxu0 %v5485_v36  ;;  %v5518_v36 = vld [vmem:[#allocation25] sm:$0xff]  }
 0x60c   :  { %4966 = vmatprep.subr.bf16.mxu0 %v6378_v0 }
 0x60f   :  { %4967 = vmatpush3.bf16.msra.mxu0 %v5486_v37 }
 0x610   :  { %4992 = vmatprep.subr.bf16.mxu0 %v6378_v0 }
 0x692   :  { %v6765_v24 = vpop.f32.mrf.mxu0 }
 0x694   :  { %v4890_v25 = vpop.f32.mrf.mxu0 }
 0x695   :  { %v5511_v25 = vld [vmem:[#allocation25 + $0x38] sm:$0xff]  }
 0x696   :  { %v1930_v26 = vpop.f32.mrf.mxu0 }
 0x698   :  { %v4891_v27 = vpop.f32.mrf.mxu0 }
 0x6b2   :  { %v2153_v29 = vpop.f32.mrf.mxu0 }
 0x6b3   :  { %v2154_v30 = vadd.f32 %v4491_v28, %v2153_v29  ;;  %v5512_v28 = vld [vmem:[#allocation25 + $0x30] sm:$0xff]   ;;  %v5513_v29 = vld [vmem:[#allocation25 + $0x28] sm:$0xff]  }
 0x6b4   :  { %v4930_v31 = vpop.f32.mrf.mxu0 }
 0x6b5   :  { %v2159_v32 = vmax.f32 %v2154_v30, 0.0  ;;  %v5514_v30 = vld [vmem:[#allocation25 + $0x20] sm:$0xff]   ;;  %v5515_v31 = vld [vmem:[#allocation25 + $0x18] sm:$0xff]  }
 0x6b6   :  { %v2156_v33 = vpop.f32.mrf.mxu0 }
 0x6b7   :  { %v2160_v34 = vpack.c.bf16 %v2159_v32, %v2159_v32  ;;  %v5516_v32 = vld [vmem:[#allocation25 + $0x10] sm:$0xff]   ;;  %v5517_v33 = vld [vmem:[#allocation25 + $0x8] sm:$0xff]  }
 0x6b8   :  { %v4931_v35 = vpop.f32.mrf.mxu0 }
 0x6b9   :  { %4949 = vmatmul.mubr.bf16.vlgmr.msra.gmra.mxu1 %v2160_v34  ;;  %v4536_v34 = vld [vmem:[#allocation24] ss:$0 sm:$0xff] }
 0x6ba   :  { %4988 = vmatprep.mubr.msk.bf16.mxu1 %vm6379_vm0, %v6378_v0  ;;  %4973 = vmatpush3.bf16.msra.mxu1 %v5487_v38 }
 0x6bb   :  { %4974 = vmatprep.subr.bf16.mxu1 %v6378_v0 }
 0x6be   :  { %4975 = vmatpush3.bf16.msra.mxu1 %v5488_v39 }
 0x6bf   :  { %4976 = vmatprep.subr.bf16.mxu1 %v6378_v0 }
 0x6c2   :  { %4977 = vmatpush3.bf16.msra.mxu1 %v5489_v40 }
 0x6c3   :  { %4978 = vmatprep.subr.bf16.mxu1 %v6378_v0 }
 0x6c6   :  { %4979 = vmatpush3.bf16.msra.mxu1 %v5490_v41 }
 0x6c7   :  { %4980 = vmatprep.subr.bf16.mxu1 %v6378_v0 }
 0x6ca   :  { %4981 = vmatpush3.bf16.msra.mxu1 %v5491_v42 }
 0x6cb   :  { %4982 = vmatprep.subr.bf16.mxu1 %v6378_v0 }
 0x6ce   :  { %4983 = vmatpush3.bf16.msra.mxu1 %v5492_v43  ;;  %v5519_v43 = vld [vmem:[#allocation28 + $0x38] sm:$0xff]  }
 0x6cf   :  { %4984 = vmatprep.subr.bf16.mxu1 %v6378_v0 }
 0x6d2   :  { %4985 = vmatpush3.bf16.msra.mxu1 %v5493_v44  ;;  %v5520_v44 = vld [vmem:[#allocation28 + $0x30] sm:$0xff]  }
 0x6d3   :  { %4986 = vmatprep.subr.bf16.mxu1 %v6378_v0 }
 0x6d6   :  { %4987 = vmatpush3.bf16.msra.mxu1 %v5494_v54  ;;  %v5529_v54 = vld [vmem:[#allocation31 + $0x28] sm:$0xff]  }
 0x6d7   :  { %5012 = vmatprep.subr.bf16.mxu1 %v6378_v0 }
 0x779   :  { %v2266_v46 = vpop.f32.mrf.mxu1 }
 0x77a   :  { %v2267_v48 = vadd.f32 %v4500_v45, %v2266_v46  ;;  %v5521_v45 = vld [vmem:[#allocation28 + $0x28] sm:$0xff]   ;;  %v5522_v46 = vld [vmem:[#allocation28 + $0x20] sm:$0xff]  }
 0x77b   :  { %v4950_v49 = vpop.f32.mrf.mxu1 }
 0x77c   :  { %v2272_v50 = vmax.f32 %v2267_v48, 0.0  ;;  %v5523_v48 = vld [vmem:[#allocation28 + $0x18] sm:$0xff]   ;;  %v5524_v49 = vld [vmem:[#allocation28 + $0x10] sm:$0xff]  }
 0x77d   :  { %v2269_v51 = vpop.f32.mrf.mxu1 }
 0x77e   :  { %v2273_v52 = vpack.c.bf16 %v2272_v50, %v2272_v50  ;;  %v5525_v50 = vld [vmem:[#allocation28 + $0x8] sm:$0xff]   ;;  %v5526_v51 = vld [vmem:[#allocation28] sm:$0xff]  }
 0x77f   :  { %v4951_v53 = vpop.f32.mrf.mxu1 }
 0x780   :  { %4969 = vmatmul.mubr.bf16.vlgmr.msra.gmra.mxu0 %v2273_v52  ;;  %v5527_v52 = vld [vmem:[#allocation31 + $0x38] sm:$0xff]   ;;  %v5528_v53 = vld [vmem:[#allocation31 + $0x30] sm:$0xff]  }
 0x781   :  { %5008 = vmatprep.mubr.msk.bf16.mxu0 %vm6379_vm0, %v6378_v0  ;;  %4993 = vmatpush3.bf16.msra.mxu0 %v5503_v55  ;;  %v5530_v55 = vld [vmem:[#allocation31 + $0x20] sm:$0xff]  }
 0x782   :  { %4994 = vmatprep.subr.bf16.mxu0 %v6378_v0 }
 0x785   :  { %4995 = vmatpush3.bf16.msra.mxu0 %v5504_v56  ;;  %v5531_v56 = vld [vmem:[#allocation31 + $0x18] sm:$0xff]  }
 0x786   :  { %4996 = vmatprep.subr.bf16.mxu0 %v6378_v0 }
 0x789   :  { %4997 = vmatpush3.bf16.msra.mxu0 %v5505_v57  ;;  %v5532_v57 = vld [vmem:[#allocation31 + $0x10] sm:$0xff]  }
 0x78a   :  { %4998 = vmatprep.subr.bf16.mxu0 %v6378_v0 }
 0x78d   :  { %4999 = vmatpush3.bf16.msra.mxu0 %v5506_v58  ;;  %v4473_v58 = vld [vmem:[%s6936_s18] ss:$0 sm:$0xff] }
 0x78e   :  { %5000 = vmatprep.subr.bf16.mxu0 %v6378_v0 }
 0x791   :  { %5001 = vmatpush3.bf16.msra.mxu0 %v5507_v59  ;;  %v4527_v59 = vld [vmem:[%s6937_s0] ss:$0 sm:$0xff] }
 0x792   :  { %5002 = vmatprep.subr.bf16.mxu0 %v6378_v0 }
 0x795   :  { %5003 = vmatpush3.bf16.msra.mxu0 %v5508_v60 }
 0x796   :  { %5004 = vmatprep.subr.bf16.mxu0 %v6378_v0 }
 0x799   :  { %5005 = vmatpush3.bf16.msra.mxu0 %v5509_v61  ;;  %v1928_v61 = vadd.f32 %v4473_v58, %v6765_v24  ;;  %v5534_v24 = vld [vmem:[#allocation31] sm:$0xff]   ;;  %v5583_v58 = vld [vmem:[#allocation40 + $0xc4] ss:$48 sps:$4 sm:$0xff]  }
 0x79a   :  { %5006 = vmatprep.subr.bf16.mxu0 %v6378_v0 }
 0x79d   :  { %5007 = vmatpush3.bf16.msra.mxu0 %v5510_v19  ;;  %v5539_v19 = vld [vmem:[#allocation34 + $0x18] sm:$0xff]  }
 0x79e   :  { %5032 = vmatprep.subr.bf16.mxu0 %v6378_v0 }
 0x840   :  { %v2379_v63 = vpop.f32.mrf.mxu0 }
 0x841   :  { %v2380_v1 = vadd.f32 %v4509_v62, %v2379_v63 }
 0x842   :  { %v4970_v2 = vpop.f32.mrf.mxu0 }
 0x843   :  { %v2385_v3 = vmax.f32 %v2380_v1, 0.0 }
 0x844   :  { %v2382_v4 = vpop.f32.mrf.mxu0 }
 0x845   :  { %v2386_v6 = vpack.c.bf16 %v2385_v3, %v2385_v3  ;;  %v4545_v4 = vld [vmem:[#allocation27] ss:$0 sm:$0xff] }
 0x846   :  { %v4971_v7 = vpop.f32.mrf.mxu0 }
 0x847   :  { %4989 = vmatmul.mubr.bf16.vlgmr.msra.gmra.mxu1 %v2386_v6 }
 0x848   :  { %5013 = vmatpush3.bf16.msra.mxu1 %v5495_v5  ;;  %5028 = vmatprep.mubr.msk.bf16.mxu1 %vm6379_vm0, %v6378_v0 }
 0x849   :  { %5014 = vmatprep.subr.bf16.mxu1 %v6378_v0 }
 0x84c   :  { %5015 = vmatpush3.bf16.msra.mxu1 %v5496_v9 }
 0x84d   :  { %5016 = vmatprep.subr.bf16.mxu1 %v6378_v0 }
 0x850   :  { %5017 = vmatpush3.bf16.msra.mxu1 %v5497_v11 }
 0x851   :  { %5018 = vmatprep.subr.bf16.mxu1 %v6378_v0 }
 0x854   :  { %5019 = vmatpush3.bf16.msra.mxu1 %v5498_v12 }
 0x855   :  { %5020 = vmatprep.subr.bf16.mxu1 %v6378_v0 }
 0x858   :  { %5021 = vmatpush3.bf16.msra.mxu1 %v5499_v13 }
 0x859   :  { %5022 = vmatprep.subr.bf16.mxu1 %v6378_v0 }
 0x85c   :  { %5023 = vmatpush3.bf16.msra.mxu1 %v5500_v14  ;;  %v5533_v14 = vld [vmem:[#allocation31 + $0x8] sm:$0xff]  }
 0x85d   :  { %5024 = vmatprep.subr.bf16.mxu1 %v6378_v0 }
 0x860   :  { %5025 = vmatpush3.bf16.msra.mxu1 %v5501_v15  ;;  %v5535_v15 = vld [vmem:[#allocation34 + $0x38] sm:$0xff]  }
 0x861   :  { %5026 = vmatprep.subr.bf16.mxu1 %v6378_v0 }
 0x864   :  { %5027 = vmatpush3.bf16.msra.mxu1 %v5502_v16  ;;  %v5536_v16 = vld [vmem:[#allocation34 + $0x30] sm:$0xff]  }
 0x865   :  { %5052 = vmatprep.subr.bf16.mxu1 %v6378_v0 }
 0x867   :  { %5029 = vmatmul.mubr.bf16.vlgmr.msra.gmra.mxu1 %v2612_v18  ;;  %v5538_v18 = vld [vmem:[#allocation34 + $0x20] sm:$0xff]  }
 0x868   :  { %5068 = vmatprep.mubr.msk.bf16.mxu1 %vm6379_vm0, %v6378_v0  ;;  %5053 = vmatpush3.bf16.msra.mxu1 %v5519_v43 }
 0x869   :  { %5054 = vmatprep.subr.bf16.mxu1 %v6378_v0 }
 0x86c   :  { %5055 = vmatpush3.bf16.msra.mxu1 %v5520_v44  ;;  %v5549_v44 = vld [vmem:[#allocation37 + $0x8] sm:$0xff]  }
 0x86d   :  { %5056 = vmatprep.subr.bf16.mxu1 %v6378_v0 }
 0x870   :  { %5057 = vmatpush3.bf16.msra.mxu1 %v5521_v45  ;;  %v5550_v45 = vld [vmem:[#allocation37] sm:$0xff]  }
 0x871   :  { %5058 = vmatprep.subr.bf16.mxu1 %v6378_v0 }
 0x874   :  { %5059 = vmatpush3.bf16.msra.mxu1 %v5522_v46  ;;  %v5551_v46 = vld [vmem:[#allocation40 + $0x2a0] ss:$48 sps:$4 sm:$0xff]  }
 0x875   :  { %5060 = vmatprep.subr.bf16.mxu1 %v6378_v0 }
 0x878   :  { %5061 = vmatpush3.bf16.msra.mxu1 %v5523_v48  ;;  %v5553_v48 = vld [vmem:[#allocation40 + $0x2a4] ss:$48 sps:$4 sm:$0xff]  }
 0x879   :  { %5062 = vmatprep.subr.bf16.mxu1 %v6378_v0 }
 0x87c   :  { %5063 = vmatpush3.bf16.msra.mxu1 %v5524_v49  ;;  %v5556_v49 = vld [vmem:[#allocation40 + $0x2ac] ss:$48 sps:$4 sm:$0xff]  }
 0x87d   :  { %5064 = vmatprep.subr.bf16.mxu1 %v6378_v0 }
 0x880   :  { %5065 = vmatpush3.bf16.msra.mxu1 %v5525_v50  ;;  %v5559_v50 = vld [vmem:[#allocation40 + $0x244] ss:$48 sps:$4 sm:$0xff]  }
 0x881   :  { %5066 = vmatprep.subr.bf16.mxu1 %v6378_v0 }
 0x884   :  { %5067 = vmatpush3.bf16.msra.mxu1 %v5526_v51  ;;  %v5557_v51 = vld [vmem:[#allocation40 + $0x240] ss:$48 sps:$4 sm:$0xff]  }
 0x885   :  { %5092 = vmatprep.subr.bf16.mxu1 %v6378_v0 }
 0x907   :  { %v2492_v21 = vpop.f32.mrf.mxu1 }
 0x908   :  { %v2493_v8 = vadd.f32 %v4518_v20, %v2492_v21  ;;  %v5540_v20 = vld [vmem:[#allocation34 + $0x10] sm:$0xff]   ;;  %v4554_v21 = vld [vmem:[#allocation30] ss:$0 sm:$0xff] }
 0x909   :  { %v4990_v10 = vpop.f32.mrf.mxu1 }
 0x90a   :  { %v2498_v22 = vmax.f32 %v2493_v8, 0.0 }
 0x90b   :  { %v2495_v23 = vpop.f32.mrf.mxu1 }
 0x90c   :  { %v2499_v26 = vpack.c.bf16 %v2498_v22, %v2498_v22 }
 0x90d   :  { %v4991_v27 = vpop.f32.mrf.mxu1 }
 0x90e   :  { %5009 = vmatmul.mubr.bf16.vlgmr.msra.gmra.mxu0 %v2499_v26 }
 0x90f   :  { %5033 = vmatpush3.bf16.msra.mxu0 %v5511_v25  ;;  %5048 = vmatprep.mubr.msk.bf16.mxu0 %vm6379_vm0, %v6378_v0 }
 0x910   :  { %5034 = vmatprep.subr.bf16.mxu0 %v6378_v0 }
 0x913   :  { %5035 = vmatpush3.bf16.msra.mxu0 %v5512_v28  ;;  %v5541_v28 = vld [vmem:[#allocation34 + $0x8] sm:$0xff]  }
 0x914   :  { %5036 = vmatprep.subr.bf16.mxu0 %v6378_v0 }
 0x917   :  { %5037 = vmatpush3.bf16.msra.mxu0 %v5513_v29  ;;  %v5542_v29 = vld [vmem:[#allocation34] sm:$0xff]  }
 0x918   :  { %5038 = vmatprep.subr.bf16.mxu0 %v6378_v0 }
 0x91b   :  { %5039 = vmatpush3.bf16.msra.mxu0 %v5514_v30  ;;  %v5543_v30 = vld [vmem:[#allocation37 + $0x38] sm:$0xff]  }
 0x91c   :  { %5040 = vmatprep.subr.bf16.mxu0 %v6378_v0 }
 0x91f   :  { %5041 = vmatpush3.bf16.msra.mxu0 %v5515_v31  ;;  %v5544_v31 = vld [vmem:[#allocation37 + $0x30] sm:$0xff]  }
 0x920   :  { %5042 = vmatprep.subr.bf16.mxu0 %v6378_v0 }
 0x923   :  { %5043 = vmatpush3.bf16.msra.mxu0 %v5516_v32  ;;  %v5545_v32 = vld [vmem:[#allocation37 + $0x28] sm:$0xff]  }
 0x924   :  { %5044 = vmatprep.subr.bf16.mxu0 %v6378_v0 }
 0x927   :  { %v2718_v35 = vpop.f32.mrf.mxu1  ;;  %5045 = vmatpush3.bf16.msra.mxu0 %v5517_v33  ;;  %v5546_v33 = vld [vmem:[#allocation37 + $0x20] sm:$0xff]  }
 0x928   :  { %v2719_v37 = vadd.f32 %v4536_v34, %v2718_v35  ;;  %5046 = vmatprep.subr.bf16.mxu0 %v6378_v0  ;;  %v5547_v34 = vld [vmem:[#allocation37 + $0x18] sm:$0xff]   ;;  %v5548_v35 = vld [vmem:[#allocation37 + $0x10] sm:$0xff]  }
 0x929   :  { %v5030_v38 = vpop.f32.mrf.mxu1 }
 0x92a   :  { %v2724_v39 = vmax.f32 %v2719_v37, 0.0 }
 0x92b   :  { %v2721_v40 = vpop.f32.mrf.mxu1  ;;  %5047 = vmatpush3.bf16.msra.mxu0 %v5518_v36  ;;  %v4563_v36 = vld [vmem:[#allocation33] ss:$0 sm:$0xff] }
 0x92c   :  { %v2725_v41 = vpack.c.bf16 %v2724_v39, %v2724_v39  ;;  %5072 = vmatprep.subr.bf16.mxu0 %v6378_v0 }
 0x92d   :  { %v5031_v42 = vpop.f32.mrf.mxu1 }
 0x92e   :  { %5049 = vmatmul.mubr.bf16.vlgmr.msra.gmra.mxu0 %v2725_v41 }
 0x92f   :  { %5088 = vmatprep.mubr.msk.bf16.mxu0 %vm6379_vm0, %v6378_v0  ;;  %5073 = vmatpush3.bf16.msra.mxu0 %v5527_v52  ;;  %v5565_v52 = vld [vmem:[#allocation40 + $0x1e4] ss:$48 sps:$4 sm:$0xff]  }
 0x930   :  { %5074 = vmatprep.subr.bf16.mxu0 %v6378_v0 }
 0x933   :  { %5075 = vmatpush3.bf16.msra.mxu0 %v5528_v53  ;;  %v5563_v53 = vld [vmem:[#allocation40 + $0x1e0] ss:$48 sps:$4 sm:$0xff]  }
 0x934   :  { %5076 = vmatprep.subr.bf16.mxu0 %v6378_v0 }
 0x937   :  { %5077 = vmatpush3.bf16.msra.mxu0 %v5529_v54  ;;  %v5571_v54 = vld [vmem:[#allocation40 + $0x184] ss:$48 sps:$4 sm:$0xff]  }
 0x938   :  { %5078 = vmatprep.subr.bf16.mxu0 %v6378_v0 }
 0x93b   :  { %5079 = vmatpush3.bf16.msra.mxu0 %v5530_v55  ;;  %v5569_v55 = vld [vmem:[#allocation40 + $0x180] ss:$48 sps:$4 sm:$0xff]  }
 0x93c   :  { %5080 = vmatprep.subr.bf16.mxu0 %v6378_v0 }
 0x93f   :  { %5081 = vmatpush3.bf16.msra.mxu0 %v5531_v56  ;;  %v5577_v56 = vld [vmem:[#allocation40 + $0x124] ss:$48 sps:$4 sm:$0xff]  }
 0x940   :  { %5082 = vmatprep.subr.bf16.mxu0 %v6378_v0 }
 0x943   :  { %5083 = vmatpush3.bf16.msra.mxu0 %v5532_v57  ;;  %v5575_v57 = vld [vmem:[#allocation40 + $0x120] ss:$48 sps:$4 sm:$0xff]  }
 0x944   :  { %5084 = vmatprep.subr.bf16.mxu0 %v6378_v0 }
 0x947   :  { %5085 = vmatpush3.bf16.msra.mxu0 %v5533_v14  ;;  %v5566_v14 = vld [vmem:[#allocation40 + $0x1e8] ss:$48 sps:$4 sm:$0xff]  }
 0x948   :  { %5086 = vmatprep.subr.bf16.mxu0 %v6378_v0 }
 0x94b   :  { %5087 = vmatpush3.bf16.msra.mxu0 %v5534_v24  ;;  %v5574_v24 = vld [vmem:[#allocation40 + $0x18c] ss:$48 sps:$4 sm:$0xff]  }
 0x94c   :  { %5112 = vmatprep.subr.bf16.mxu0 %v6378_v0 }
 0x9ce   :  { %v2605_v60 = vpop.f32.mrf.mxu0 }
 0x9cf   :  { %v2606_v62 = vadd.f32 %v4527_v59, %v2605_v60  ;;  %v5581_v59 = vld [vmem:[#allocation40 + $0xc0] ss:$48 sps:$4 sm:$0xff]   ;;  %v5589_v60 = vld [vmem:[#allocation40 + $0x64] ss:$48 sps:$4 sm:$0xff]  }
 0x9d0   :  { %v5010_v63 = vpop.f32.mrf.mxu0 }
 0x9d1   :  { %v6836_v1 = vadd.f32 %v2606_v62, %v1928_v61  ;;  %v5587_v61 = vld [vmem:[#allocation40 + $0x60] ss:$48 sps:$4 sm:$0xff]   ;;  %v4572_v62 = vld [vmem:[#allocation36] ss:$0 sm:$0xff] }
 0x9d2   :  { %v2608_v2 = vpop.f32.mrf.mxu0 }
 0x9d4   :  { %v5011_v3 = vpop.f32.mrf.mxu0 }
 0x9ee   :  { %v2831_v5 = vpop.f32.mrf.mxu0 }
 0x9ef   :  { %v2832_v6 = vadd.f32 %v4545_v4, %v2831_v5 }
 0x9f0   :  { %v5050_v7 = vpop.f32.mrf.mxu0 }
 0x9f1   :  { %v2837_v9 = vmax.f32 %v2832_v6, 0.0  ;;  %v5554_v6 = vld [vmem:[#allocation40 + $0x2a8] ss:$48 sps:$4 sm:$0xff]  }
 0x9f2   :  { %v2834_v11 = vpop.f32.mrf.mxu0 }
 0x9f3   :  { %v2838_v12 = vpack.c.bf16 %v2837_v9, %v2837_v9  ;;  %v5562_v9 = vld [vmem:[#allocation40 + $0x24c] ss:$48 sps:$4 sm:$0xff]  }
 0x9f4   :  { %v5051_v13 = vpop.f32.mrf.mxu0 }
 0x9f5   :  { %5069 = vmatmul.mubr.bf16.vlgmr.msra.gmra.mxu1 %v2838_v12  ;;  %v5560_v12 = vld [vmem:[#allocation40 + $0x248] ss:$48 sps:$4 sm:$0xff]   ;;  %v5568_v13 = vld [vmem:[#allocation40 + $0x1ec] ss:$48 sps:$4 sm:$0xff]  }
 0x9f6   :  { %5108 = vmatprep.mubr.msk.bf16.mxu1 %vm6379_vm0, %v6378_v0  ;;  %5093 = vmatpush3.bf16.msra.mxu1 %v5535_v15  ;;  %v5572_v15 = vld [vmem:[#allocation40 + $0x188] ss:$48 sps:$4 sm:$0xff]  }
 0x9f7   :  { %5094 = vmatprep.subr.bf16.mxu1 %v6378_v0 }
 0x9fa   :  { %5095 = vmatpush3.bf16.msra.mxu1 %v5536_v16  ;;  %v5580_v16 = vld [vmem:[#allocation40 + $0x12c] ss:$48 sps:$4 sm:$0xff]  }
 0x9fb   :  { %5096 = vmatprep.subr.bf16.mxu1 %v6378_v0 }
 0x9fe   :  { %5097 = vmatpush3.bf16.msra.mxu1 %v5537_v17  ;;  %v5578_v17 = vld [vmem:[#allocation40 + $0x128] ss:$48 sps:$4 sm:$0xff]  }
 0x9ff   :  { %5098 = vmatprep.subr.bf16.mxu1 %v6378_v0 }
 0xa02   :  { %5099 = vmatpush3.bf16.msra.mxu1 %v5538_v18  ;;  %v5586_v18 = vld [vmem:[#allocation40 + $0xcc] ss:$48 sps:$4 sm:$0xff]  }
 0xa03   :  { %5100 = vmatprep.subr.bf16.mxu1 %v6378_v0 }
 0xa06   :  { %5101 = vmatpush3.bf16.msra.mxu1 %v5539_v19  ;;  %v5584_v19 = vld [vmem:[#allocation40 + $0xc8] ss:$48 sps:$4 sm:$0xff]  }
 0xa07   :  { %5102 = vmatprep.subr.bf16.mxu1 %v6378_v0 }
 0xa0a   :  { %5103 = vmatpush3.bf16.msra.mxu1 %v5540_v20  ;;  %v5592_v20 = vld [vmem:[#allocation40 + $0x6c] ss:$48 sps:$4 sm:$0xff]  }
 0xa0b   :  { %5104 = vmatprep.subr.bf16.mxu1 %v6378_v0 }
 0xa0e   :  { %5105 = vmatpush3.bf16.msra.mxu1 %v5541_v28 }
 0xa0f   :  { %5106 = vmatprep.subr.bf16.mxu1 %v6378_v0 }
 0xa12   :  { %5107 = vmatpush3.bf16.msra.mxu1 %v5542_v29 }
 0xa13   :  { %3868 = vmatprep.subr.bf16.mxu1 %v5553_v48  ;;  %v5620_v48 = vld [vmem:[#allocation40 + $0x198] ss:$48 sps:$4 sm:$0xff]  }
 0xab5   :  { %v2944_v8 = vpop.f32.mrf.mxu1 }
 0xab6   :  { %v2945_v10 = vadd.f32 %v4554_v21, %v2944_v8  ;;  %v5590_v21 = vld [vmem:[#allocation40 + $0x68] ss:$48 sps:$4 sm:$0xff]   ;;  %v5595_v8 = vld [vmem:[#allocation40 + $0x4] ss:$48 sps:$4 sm:$0xff]  }
 0xab7   :  { %v5070_v22 = vpop.f32.mrf.mxu1 }
 0xab8   :  { %v2950_v23 = vmax.f32 %v2945_v10, 0.0  ;;  %v5598_v10 = vld [vmem:[#allocation40 + $0xc] ss:$48 sps:$4 sm:$0xff]   ;;  %v5593_v22 = vld [vmem:[#allocation40] ss:$48 sps:$4 sm:$0xff]  }
 0xab9   :  { %v2947_v25 = vpop.f32.mrf.mxu1 }
 0xaba   :  { %v2951_v26 = vpack.c.bf16 %v2950_v23, %v2950_v23  ;;  %v5596_v23 = vld [vmem:[#allocation40 + $0x8] ss:$48 sps:$4 sm:$0xff]   ;;  %v5601_v25 = vld [vmem:[#allocation40 + $0x2b4] ss:$48 sps:$4 sm:$0xff]  }
 0xabb   :  { %v5071_v27 = vpop.f32.mrf.mxu1 }
 0xabc   :  { %5089 = vmatmul.mubr.bf16.vlgmr.msra.gmra.mxu0 %v2951_v26  ;;  %v5604_v26 = vld [vmem:[#allocation40 + $0x2bc] ss:$48 sps:$4 sm:$0xff]  }
 0xabd   :  { %5128 = vmatprep.mubr.msk.bf16.mxu0 %vm6379_vm0, %v6378_v0  ;;  %5113 = vmatpush3.bf16.msra.mxu0 %v5543_v30  ;;  %v4581_v27 = vld [vmem:[#allocation39] ss:$0 sm:$0xff] }
 0xabe   :  { %5114 = vmatprep.subr.bf16.mxu0 %v6378_v0 }
 0xac1   :  { %5115 = vmatpush3.bf16.msra.mxu0 %v5544_v31 }
 0xac2   :  { %5116 = vmatprep.subr.bf16.mxu0 %v6378_v0 }
 0xac5   :  { %5117 = vmatpush3.bf16.msra.mxu0 %v5545_v32 }
 0xac6   :  { %5118 = vmatprep.subr.bf16.mxu0 %v6378_v0 }
 0xac9   :  { %5119 = vmatpush3.bf16.msra.mxu0 %v5546_v33  ;;  %v5599_v33 = vld [vmem:[#allocation40 + $0x2b0] ss:$48 sps:$4 sm:$0xff]  }
 0xaca   :  { %5120 = vmatprep.subr.bf16.mxu0 %v6378_v0 }
 0xacd   :  { %5121 = vmatpush3.bf16.msra.mxu0 %v5547_v34  ;;  %v5602_v34 = vld [vmem:[#allocation40 + $0x2b8] ss:$48 sps:$4 sm:$0xff]  }
 0xace   :  { %5122 = vmatprep.subr.bf16.mxu0 %v6378_v0 }
 0xad1   :  { %5123 = vmatpush3.bf16.msra.mxu0 %v5548_v35 }
 0xad2   :  { %5124 = vmatprep.subr.bf16.mxu0 %v6378_v0 }
 0xad5   :  { %5125 = vmatpush3.bf16.msra.mxu0 %v5549_v44  ;;  %v5619_v44 = vld [vmem:[#allocation40 + $0x194] ss:$48 sps:$4 sm:$0xff]  }
 0xad6   :  { %5126 = vmatprep.subr.bf16.mxu0 %v6378_v0 }
 0xad9   :  { %5127 = vmatpush3.bf16.msra.mxu0 %v5550_v45  ;;  %v5622_v45 = vld [vmem:[#allocation40 + $0x19c] ss:$48 sps:$4 sm:$0xff]  }
 0xada   :  { %3909 = vmatprep.subr.bf16.mxu0 %v5556_v49  ;;  %v5625_v49 = vld [vmem:[#allocation40 + $0x134] ss:$48 sps:$4 sm:$0xff]  }
 0xb7c   :  { %v3057_v37 = vpop.f32.mrf.mxu0 }
 0xb7d   :  { %v3058_v38 = vadd.f32 %v4563_v36, %v3057_v37  ;;  %v5607_v36 = vld [vmem:[#allocation40 + $0x254] ss:$48 sps:$4 sm:$0xff]   ;;  %v5610_v37 = vld [vmem:[#allocation40 + $0x25c] ss:$48 sps:$4 sm:$0xff]  }
 0xb7e   :  { %v5090_v39 = vpop.f32.mrf.mxu0 }
 0xb7f   :  { %v3063_v40 = vmax.f32 %v3058_v38, 0.0  ;;  %v5605_v39 = vld [vmem:[#allocation40 + $0x250] ss:$48 sps:$4 sm:$0xff]  }
 0xb80   :  { %v3060_v41 = vpop.f32.mrf.mxu0 }
 0xb81   :  { %v3064_v42 = vpack.c.bf16 %v3063_v40, %v3063_v40  ;;  %v5608_v40 = vld [vmem:[#allocation40 + $0x258] ss:$48 sps:$4 sm:$0xff]   ;;  %v5613_v41 = vld [vmem:[#allocation40 + $0x1f4] ss:$48 sps:$4 sm:$0xff]  }
 0xb82   :  { %v5091_v43 = vpop.f32.mrf.mxu0 }
 0xb83   :  { %5109 = vmatmul.mubr.bf16.vlgmr.msra.gmra.mxu1 %v3064_v42  ;;  %v5611_v42 = vld [vmem:[#allocation40 + $0x1f0] ss:$48 sps:$4 sm:$0xff]   ;;  %v5614_v43 = vld [vmem:[#allocation40 + $0x1f8] ss:$48 sps:$4 sm:$0xff]  }
 0xb84   :  { %3900 = vmatprep.mubr.bf16.mxu1 %v6377_v47  ;;  %3869 = vmatpush1.bf16.msra.mxu1 %v5551_v46  ;;  %v5617_v46 = vld [vmem:[#allocation40 + $0x190] ss:$48 sps:$4 sm:$0xff]  }
 0xb85   :  { %3870 = vmatprep.subr.bf16.mxu1 %v5559_v50  ;;  %v5628_v50 = vld [vmem:[#allocation40 + $0x13c] ss:$48 sps:$4 sm:$0xff]  }
 0xb88   :  { %3871 = vmatpush1.bf16.msra.mxu1 %v5557_v51  ;;  %v5623_v51 = vld [vmem:[#allocation40 + $0x130] ss:$48 sps:$4 sm:$0xff]  }
 0xb89   :  { %3872 = vmatprep.subr.bf16.mxu1 %v5565_v52  ;;  %v5626_v52 = vld [vmem:[#allocation40 + $0x138] ss:$48 sps:$4 sm:$0xff]  }
 0xb8c   :  { %3873 = vmatpush1.bf16.msra.mxu1 %v5563_v53  ;;  %v5631_v53 = vld [vmem:[#allocation40 + $0xd4] ss:$48 sps:$4 sm:$0xff]  }
 0xb8d   :  { %3874 = vmatprep.subr.bf16.mxu1 %v5571_v54  ;;  %v5634_v54 = vld [vmem:[#allocation40 + $0xdc] ss:$48 sps:$4 sm:$0xff]  }
 0xb90   :  { %3875 = vmatpush1.bf16.msra.mxu1 %v5569_v55  ;;  %v5629_v55 = vld [vmem:[#allocation40 + $0xd0] ss:$48 sps:$4 sm:$0xff]  }
 0xb91   :  { %3876 = vmatprep.subr.bf16.mxu1 %v5577_v56  ;;  %v5632_v56 = vld [vmem:[#allocation40 + $0xd8] ss:$48 sps:$4 sm:$0xff]  }
 0xb94   :  { %3877 = vmatpush1.bf16.msra.mxu1 %v5575_v57  ;;  %v5637_v57 = vld [vmem:[#allocation40 + $0x74] ss:$48 sps:$4 sm:$0xff]  }
 0xb95   :  { %3878 = vmatprep.subr.bf16.mxu1 %v5583_v58  ;;  %v5640_v58 = vld [vmem:[#allocation40 + $0x7c] ss:$48 sps:$4 sm:$0xff]  }
 0xb98   :  { %3879 = vmatpush1.bf16.msra.mxu1 %v5581_v59  ;;  %v5635_v59 = vld [vmem:[#allocation40 + $0x70] ss:$48 sps:$4 sm:$0xff]  }
 0xb99   :  { %3880 = vmatprep.subr.bf16.mxu1 %v5589_v60  ;;  %v5638_v60 = vld [vmem:[#allocation40 + $0x78] ss:$48 sps:$4 sm:$0xff]  }
 0xb9c   :  { %3881 = vmatpush1.bf16.msra.mxu1 %v5587_v61  ;;  %v5643_v61 = vld [vmem:[#allocation40 + $0x14] ss:$48 sps:$4 sm:$0xff]  }
 0xb9d   :  { %3882 = vmatprep.subr.bf16.mxu1 %v5595_v8  ;;  %v5671_v8 = vld [vmem:[#allocation40 + $0x140] ss:$48 sps:$4 sm:$0xff]  }
 0xba0   :  { %3883 = vmatpush1.bf16.msra.mxu1 %v5593_v22  ;;  %v5682_v22 = vld [vmem:[#allocation40 + $0xec] ss:$48 sps:$4 sm:$0xff]  }
 0xba1   :  { %3950 = vmatprep.subr.bf16.mxu1 %v5601_v25  ;;  %v5680_v25 = vld [vmem:[#allocation40 + $0xe8] ss:$48 sps:$4 sm:$0xff]  }
 0xc43   :  { %v3170_v63 = vpop.f32.mrf.mxu1 }
 0xc44   :  { %v3171_v2 = vadd.f32 %v4572_v62, %v3170_v63  ;;  %v5646_v62 = vld [vmem:[#allocation40 + $0x1c] ss:$48 sps:$4 sm:$0xff]   ;;  %v5641_v63 = vld [vmem:[#allocation40 + $0x10] ss:$48 sps:$4 sm:$0xff]  }
 0xc45   :  { %v5110_v3 = vpop.f32.mrf.mxu1 }
 0xc46   :  { %v3176_v4 = vmax.f32 %v3171_v2, 0.0  ;;  %v5644_v2 = vld [vmem:[#allocation40 + $0x18] ss:$48 sps:$4 sm:$0xff]   ;;  %v5649_v3 = vld [vmem:[#allocation40 + $0x2c4] ss:$48 sps:$4 sm:$0xff]  }
 0xc47   :  { %v3173_v5 = vpop.f32.mrf.mxu1 }
 0xc48   :  { %v3177_v7 = vpack.c.bf16 %v3176_v4, %v3176_v4  ;;  %v5652_v4 = vld [vmem:[#allocation40 + $0x2cc] ss:$48 sps:$4 sm:$0xff]   ;;  %v5647_v5 = vld [vmem:[#allocation40 + $0x2c0] ss:$48 sps:$4 sm:$0xff]  }
 0xc49   :  { %v5111_v11 = vpop.f32.mrf.mxu1 }
 0xc4a   :  { %5129 = vmatmul.mubr.bf16.vlgmr.msra.gmra.mxu0 %v3177_v7  ;;  %v5655_v7 = vld [vmem:[#allocation40 + $0x264] ss:$48 sps:$4 sm:$0xff]   ;;  %v5653_v11 = vld [vmem:[#allocation40 + $0x260] ss:$48 sps:$4 sm:$0xff]  }
 0xc4b   :  { %3910 = vmatpush1.bf16.msra.mxu0 %v5554_v6  ;;  %3941 = vmatprep.mubr.bf16.mxu0 %v6377_v47  ;;  %v5650_v6 = vld [vmem:[#allocation40 + $0x2c8] ss:$48 sps:$4 sm:$0xff]  }
 0xc4c   :  { %3911 = vmatprep.subr.bf16.mxu0 %v5562_v9  ;;  %v5658_v9 = vld [vmem:[#allocation40 + $0x26c] ss:$48 sps:$4 sm:$0xff]  }
 0xc4f   :  { %3912 = vmatpush1.bf16.msra.mxu0 %v5560_v12  ;;  %v5656_v12 = vld [vmem:[#allocation40 + $0x268] ss:$48 sps:$4 sm:$0xff]  }
 0xc50   :  { %3913 = vmatprep.subr.bf16.mxu0 %v5568_v13  ;;  %v5661_v13 = vld [vmem:[#allocation40 + $0x204] ss:$48 sps:$4 sm:$0xff]  }
 0xc53   :  { %3914 = vmatpush1.bf16.msra.mxu0 %v5566_v14  ;;  %v5664_v14 = vld [vmem:[#allocation40 + $0x20c] ss:$48 sps:$4 sm:$0xff]  }
 0xc54   :  { %3915 = vmatprep.subr.bf16.mxu0 %v5574_v24  ;;  %v5659_v24 = vld [vmem:[#allocation40 + $0x200] ss:$48 sps:$4 sm:$0xff]  }
 0xc57   :  { %3916 = vmatpush1.bf16.msra.mxu0 %v5572_v15  ;;  %v5662_v15 = vld [vmem:[#allocation40 + $0x208] ss:$48 sps:$4 sm:$0xff]  }
 0xc58   :  { %3917 = vmatprep.subr.bf16.mxu0 %v5580_v16  ;;  %v5667_v16 = vld [vmem:[#allocation40 + $0x1a4] ss:$48 sps:$4 sm:$0xff]  }
 0xc5b   :  { %3918 = vmatpush1.bf16.msra.mxu0 %v5578_v17  ;;  %v5670_v17 = vld [vmem:[#allocation40 + $0x1ac] ss:$48 sps:$4 sm:$0xff]  }
 0xc5c   :  { %3919 = vmatprep.subr.bf16.mxu0 %v5586_v18  ;;  %v5665_v18 = vld [vmem:[#allocation40 + $0x1a0] ss:$48 sps:$4 sm:$0xff]  }
 0xc5f   :  { %3920 = vmatpush1.bf16.msra.mxu0 %v5584_v19  ;;  %v5668_v19 = vld [vmem:[#allocation40 + $0x1a8] ss:$48 sps:$4 sm:$0xff]  }
 0xc60   :  { %3921 = vmatprep.subr.bf16.mxu0 %v5592_v20  ;;  %v5673_v20 = vld [vmem:[#allocation40 + $0x144] ss:$48 sps:$4 sm:$0xff]  }
 0xc63   :  { %3922 = vmatpush1.bf16.msra.mxu0 %v5590_v21  ;;  %v5676_v21 = vld [vmem:[#allocation40 + $0x14c] ss:$48 sps:$4 sm:$0xff]  }
 0xc64   :  { %3923 = vmatprep.subr.bf16.mxu0 %v5598_v10  ;;  %v5679_v10 = vld [vmem:[#allocation40 + $0xe4] ss:$48 sps:$4 sm:$0xff]  }
 0xc67   :  { %3924 = vmatpush1.bf16.msra.mxu0 %v5596_v23  ;;  %v5677_v23 = vld [vmem:[#allocation40 + $0xe0] ss:$48 sps:$4 sm:$0xff]  }
 0xc68   :  { %3991 = vmatprep.subr.bf16.mxu0 %v5604_v26  ;;  %v5685_v26 = vld [vmem:[#allocation40 + $0x84] ss:$48 sps:$4 sm:$0xff]  }
 0xd0a   :  { %v3283_v28 = vpop.f32.mrf.mxu0 }
 0xd0b   :  { %v3284_v29 = vadd.f32 %v4581_v27, %v3283_v28  ;;  %v5688_v27 = vld [vmem:[#allocation40 + $0x8c] ss:$48 sps:$4 sm:$0xff]   ;;  %v5683_v28 = vld [vmem:[#allocation40 + $0x80] ss:$48 sps:$4 sm:$0xff]  }
 0xd0c   :  { %v5130_v30 = vpop.f32.mrf.mxu0 }
 0xd0d   :  { %v3290_v31 = vadd.f32 %v6836_v1, %v3284_v29  ;;  %v5616_v1 = vld [vmem:[#allocation40 + $0x1fc] ss:$48 sps:$4 sm:$0xff]   ;;  %v5686_v29 = vld [vmem:[#allocation40 + $0x88] ss:$48 sps:$4 sm:$0xff]   ;;  %v5691_v30 = vld [vmem:[#allocation40 + $0x24] ss:$48 sps:$4 sm:$0xff]  }
 0xd0e   :  { %v3286_v32 = vpop.f32.mrf.mxu0 }
 0xd0f   :  { %v6861_v35 = vpack.c.bf16 %v3290_v31, %v3290_v31  ;;  %v5694_v31 = vld [vmem:[#allocation40 + $0x2c] ss:$48 sps:$4 sm:$0xff]   ;;  %v5689_v32 = vld [vmem:[#allocation40 + $0x20] ss:$48 sps:$4 sm:$0xff]  }
 0xd10   :  { %v5131_v38 = vpop.f32.mrf.mxu0 }
 0xd11   :  { %3901 = vmatmul.mubr.bf16.vlgmr.msra.gmra.mxu1 %v6861_v35  ;;  %3942 = vmatmul.mubr.bf16.vlgmr.msra.gmra.mxu0 %v6861_v35 }
 0xd12   :  { %3951 = vmatpush1.bf16.msra.mxu1 %v5599_v33  ;;  %3992 = vmatpush1.bf16.msra.mxu0 %v5602_v34  ;;  %v5692_v33 = vld [vmem:[#allocation40 + $0x28] ss:$48 sps:$4 sm:$0xff]  }
 0xd13   :  { %3952 = vmatprep.subr.bf16.mxu1 %v5607_v36  ;;  %3993 = vmatprep.subr.bf16.mxu0 %v5610_v37 }
 0xd14   :  { %3982 = vmatprep.mubr.bf16.mxu1 %v6377_v47  ;;  %4023 = vmatprep.mubr.bf16.mxu0 %v6377_v47 }
 0xd16   :  { %3953 = vmatpush1.bf16.msra.mxu1 %v5605_v39  ;;  %3994 = vmatpush1.bf16.msra.mxu0 %v5608_v40 }
 0xd17   :  { %3954 = vmatprep.subr.bf16.mxu1 %v5613_v41  ;;  %3995 = vmatprep.subr.bf16.mxu0 %v5616_v1 }
 0xd1a   :  { %3955 = vmatpush1.bf16.msra.mxu1 %v5611_v42  ;;  %3996 = vmatpush1.bf16.msra.mxu0 %v5614_v43 }
 0xd1b   :  { %3956 = vmatprep.subr.bf16.mxu1 %v5619_v44  ;;  %3997 = vmatprep.subr.bf16.mxu0 %v5622_v45 }
 0xd1e   :  { %3957 = vmatpush1.bf16.msra.mxu1 %v5617_v46  ;;  %3998 = vmatpush1.bf16.msra.mxu0 %v5620_v48 }
 0xd1f   :  { %3958 = vmatprep.subr.bf16.mxu1 %v5625_v49  ;;  %3999 = vmatprep.subr.bf16.mxu0 %v5628_v50 }
 0xd22   :  { %3959 = vmatpush1.bf16.msra.mxu1 %v5623_v51  ;;  %4000 = vmatpush1.bf16.msra.mxu0 %v5626_v52 }
 0xd23   :  { %3960 = vmatprep.subr.bf16.mxu1 %v5631_v53  ;;  %4001 = vmatprep.subr.bf16.mxu0 %v5634_v54 }
 0xd26   :  { %3961 = vmatpush1.bf16.msra.mxu1 %v5629_v55  ;;  %4002 = vmatpush1.bf16.msra.mxu0 %v5632_v56 }
 0xd27   :  { %3962 = vmatprep.subr.bf16.mxu1 %v5637_v57  ;;  %4003 = vmatprep.subr.bf16.mxu0 %v5640_v58 }
 0xd2a   :  { %3963 = vmatpush1.bf16.msra.mxu1 %v5635_v59  ;;  %4004 = vmatpush1.bf16.msra.mxu0 %v5638_v60 }
 0xd2b   :  { %3964 = vmatprep.subr.bf16.mxu1 %v5643_v61  ;;  %4005 = vmatprep.subr.bf16.mxu0 %v5646_v62 }
 0xd2e   :  { %3965 = vmatpush1.bf16.msra.mxu1 %v5641_v63  ;;  %4006 = vmatpush1.bf16.msra.mxu0 %v5644_v2 }
 0xd2f   :  { %4032 = vmatprep.subr.bf16.mxu1 %v5649_v3  ;;  %4073 = vmatprep.subr.bf16.mxu0 %v5652_v4 }
 0xd31   :  { %3983 = vmatmul.mubr.bf16.vlgmr.msra.gmra.mxu1 %v6861_v35  ;;  %4024 = vmatmul.mubr.bf16.vlgmr.msra.gmra.mxu0 %v6861_v35 }
 0xd32   :  { %4033 = vmatpush1.bf16.msra.mxu1 %v5647_v5  ;;  %4074 = vmatpush1.bf16.msra.mxu0 %v5650_v6 }
 0xd33   :  { %4034 = vmatprep.subr.bf16.mxu1 %v5655_v7  ;;  %4075 = vmatprep.subr.bf16.mxu0 %v5658_v9  ;;  %v5695_v9 = vld [vmem:[#allocation42 + $0x38] sm:$0xff]  }
 0xd34   :  { %4064 = vmatprep.mubr.bf16.mxu1 %v6377_v47  ;;  %4105 = vmatprep.mubr.bf16.mxu0 %v6377_v47  ;;  %v5674_v47 = vld [vmem:[#allocation40 + $0x148] ss:$48 sps:$4 sm:$0xff]  }
 0xd36   :  { %4035 = vmatpush1.bf16.msra.mxu1 %v5653_v11  ;;  %4076 = vmatpush1.bf16.msra.mxu0 %v5656_v12  ;;  %v5696_v11 = vld [vmem:[#allocation42 + $0x30] sm:$0xff]   ;;  %v5697_v12 = vld [vmem:[#allocation42 + $0x28] sm:$0xff]  }
 0xd37   :  { %4036 = vmatprep.subr.bf16.mxu1 %v5661_v13  ;;  %4077 = vmatprep.subr.bf16.mxu0 %v5664_v14  ;;  %v5698_v13 = vld [vmem:[#allocation42 + $0x20] sm:$0xff]   ;;  %v5699_v14 = vld [vmem:[#allocation42 + $0x18] sm:$0xff]  }
 0xd3a   :  { %4037 = vmatpush1.bf16.msra.mxu1 %v5659_v24  ;;  %4078 = vmatpush1.bf16.msra.mxu0 %v5662_v15  ;;  %v5700_v24 = vld [vmem:[#allocation42 + $0x10] sm:$0xff]   ;;  %v5701_v15 = vld [vmem:[#allocation42 + $0x8] sm:$0xff]  }
 0xd3b   :  { %4038 = vmatprep.subr.bf16.mxu1 %v5667_v16  ;;  %4079 = vmatprep.subr.bf16.mxu0 %v5670_v17  ;;  %v5702_v16 = vld [vmem:[#allocation42] sm:$0xff]  }
 0xd3e   :  { %4039 = vmatpush1.bf16.msra.mxu1 %v5665_v18  ;;  %4080 = vmatpush1.bf16.msra.mxu0 %v5668_v19 }
 0xd3f   :  { %4040 = vmatprep.subr.bf16.mxu1 %v5673_v20  ;;  %4081 = vmatprep.subr.bf16.mxu0 %v5676_v21 }
 0xd42   :  { %4041 = vmatpush1.bf16.msra.mxu1 %v5671_v8  ;;  %4082 = vmatpush1.bf16.msra.mxu0 %v5674_v47  ;;  %v4686_v47 = vld [vmem:[#allocation43] ss:$0 sm:$0xff] }
 0xd43   :  { %4042 = vmatprep.subr.bf16.mxu1 %v5679_v10  ;;  %4083 = vmatprep.subr.bf16.mxu0 %v5682_v22 }
 0xd46   :  { %4043 = vmatpush1.bf16.msra.mxu1 %v5677_v23  ;;  %4084 = vmatpush1.bf16.msra.mxu0 %v5680_v25 }
 0xd47   :  { %4044 = vmatprep.subr.bf16.mxu1 %v5685_v26  ;;  %4085 = vmatprep.subr.bf16.mxu0 %v5688_v27 }
 0xd4a   :  { %4045 = vmatpush1.bf16.msra.mxu1 %v5683_v28  ;;  %4086 = vmatpush1.bf16.msra.mxu0 %v5686_v29 }
 0xd4b   :  { %4046 = vmatprep.subr.bf16.mxu1 %v5691_v30  ;;  %4087 = vmatprep.subr.bf16.mxu0 %v5694_v31 }
 0xd4e   :  { %4047 = vmatpush1.bf16.msra.mxu1 %v5689_v32  ;;  %4088 = vmatpush1.bf16.msra.mxu0 %v5692_v33 }
 0xd4f   :  { %5132 = vmatprep.subr.bf16.mxu1 %v6378_v0 }
 0xd51   :  { %4065 = vmatmul.mubr.bf16.vlgmr.msra.gmra.mxu1 %v6861_v35  ;;  %4106 = vmatmul.mubr.bf16.vlgmr.msra.gmra.mxu0 %v6861_v35 }
 0xd52   :  { %5148 = vmatprep.mubr.msk.bf16.mxu1 %vm6379_vm0, %v6378_v0  ;;  %5133 = vmatpush3.bf16.msra.mxu1 %v5695_v9 }
 0xd53   :  { %5134 = vmatprep.subr.bf16.mxu1 %v6378_v0 }
 0xd56   :  { %5135 = vmatpush3.bf16.msra.mxu1 %v5696_v11 }
 0xd57   :  { %5136 = vmatprep.subr.bf16.mxu1 %v6378_v0 }
 0xd5a   :  { %5137 = vmatpush3.bf16.msra.mxu1 %v5697_v12 }
 0xd5b   :  { %5138 = vmatprep.subr.bf16.mxu1 %v6378_v0 }
 0xd5e   :  { %5139 = vmatpush3.bf16.msra.mxu1 %v5698_v13 }
 0xd5f   :  { %5140 = vmatprep.subr.bf16.mxu1 %v6378_v0 }
 0xd62   :  { %5141 = vmatpush3.bf16.msra.mxu1 %v5699_v14 }
 0xd63   :  { %5142 = vmatprep.subr.bf16.mxu1 %v6378_v0 }
 0xd66   :  { %5143 = vmatpush3.bf16.msra.mxu1 %v5700_v24 }
 0xd67   :  { %5144 = vmatprep.subr.bf16.mxu1 %v6378_v0 }
 0xd6a   :  { %5145 = vmatpush3.bf16.msra.mxu1 %v5701_v15 }
 0xd6b   :  { %5146 = vmatprep.subr.bf16.mxu1 %v6378_v0 }
 0xd6e   :  { %5147 = vmatpush3.bf16.msra.mxu1 %v5702_v16 }
 0xdd1   :  { %v3902_v34 = vpop.f32.mrf.mxu1  ;;  %v3943_v36 = vpop.f32.mrf.mxu0 }
 0xdd3   :  { %v3904_v37 = vpop.f32.mrf.mxu1  ;;  %v3945_v38 = vpop.f32.mrf.mxu0 }
 0xdd5   :  { %v3906_v39 = vpop.f32.mrf.mxu1  ;;  %v3947_v40 = vpop.f32.mrf.mxu0 }
 0xdd7   :  { %v3907_v41 = vpop.f32.mrf.mxu1  ;;  %v3948_v1 = vpop.f32.mrf.mxu0 }
 0xdf1   :  { %v3984_v42 = vpop.f32.mrf.mxu1  ;;  %v4025_v43 = vpop.f32.mrf.mxu0 }
 0xdf2   :  { %v4114_v52 = vmul.f32 %v3984_v42, %v3902_v34  ;;  %v4116_v56 = vmul.f32 %v4025_v43, %v3943_v36 }
 0xdf3   :  { %v3986_v44 = vpop.f32.mrf.mxu1  ;;  %v4027_v45 = vpop.f32.mrf.mxu0 }
 0xdf4   :  { %v4115_v53 = vmul.f32 %v3986_v44, %v3904_v37  ;;  %v4117_v61 = vmul.f32 %v4027_v45, %v3945_v38 }
 0xdf5   :  { %v3988_v46 = vpop.f32.mrf.mxu1  ;;  %v4029_v48 = vpop.f32.mrf.mxu0 }
 0xdf7   :  { %v3989_v49 = vpop.f32.mrf.mxu1  ;;  %v4030_v50 = vpop.f32.mrf.mxu0 }
 0xe11   :  { %v4066_v35 = vpop.f32.mrf.mxu1  ;;  %v4107_v51 = vpop.f32.mrf.mxu0 }
 0xe12   :  { %v4118_v57 = vmul.f32 %v4114_v52, %v4066_v35  ;;  %v4120_v62 = vmul.f32 %v4116_v56, %v4107_v51 }
 0xe13   :  { %v4068_v54 = vpop.f32.mrf.mxu1  ;;  %v4109_v55 = vpop.f32.mrf.mxu0 }
 0xe14   :  { %v4119_v58 = vmul.f32 %v4115_v53, %v4068_v54  ;;  %v4121_v4 = vmul.f32 %v4117_v61, %v4109_v55 }
 0xe15   :  { %v4070_v59 = vpop.f32.mrf.mxu1  ;;  %v4111_v60 = vpop.f32.mrf.mxu0 }
 0xe16   :  { %v4122_v63 = vadd.f32 %v4119_v58, %v4118_v57 }
 0xe17   :  { %v4071_v2 = vpop.f32.mrf.mxu1  ;;  %v4112_v3 = vpop.f32.mrf.mxu0 }
 0xe18   :  { %v4123_v5 = vadd.f32 %v4122_v63, %v4120_v62 }
 0xe1a   :  { %v4124_v6 = vadd.f32 %v4123_v5, %v4121_v4 }
 0xe1c   :  { %v4125_v7 = vmul.f32 %v4124_v6, %v4124_v6 }
 0xe1e   :  { %4126 = vadd.xlane.f32.xlu0 %v4125_v7 }
 0xea7   :  { %v4127_v17 = vpop.xlane.xlu0 %4126 }
 0xea8   :  { %v4128_v18 = vmax.f32 %v4127_v17, 1e-24 }
 0xeaa   :  { %5703 = vrsqrt.f32 %v4128_v18 }
 0xeb7   :  { %v5704_v19 = vpop.eup %5703 }
 0xeb8   :  { %v4130_v20 = vmul.f32 %v5704_v19, %v4124_v6 }
 0xeba   :  { %5705 = vtanh.f32 %v4130_v20 }
 0xec7   :  { %v5706_v21 = vpop.eup %5705 }
 0xec8   :  { %v4132_v8 = vpack.c.bf16 %v5706_v21, %v5706_v21 }
 0xeca   :  { %5149 = vmatmul.mubr.bf16.vlgmr.msra.gmra.mxu1 %v4132_v8 }
 0xf8a   :  { %v4238_v10 = vpop.f32.mrf.mxu1 }
 0xf8b   :  { %v4239_v22 = vadd.f32 %v4686_v47, %v4238_v10 }
 0xf8c   :  { %v5150_v23 = vpop.f32.mrf.mxu1 }
 0xf8d   :  { %4244 = vmax.xlane.f32.xlu0 %v4239_v22 }
 0xf8e   :  { %v4241_v25 = vpop.f32.mrf.mxu1 }
 0xf90   :  { %v5151_v26 = vpop.f32.mrf.mxu1 }
0x1016   :  { %v4245_v27 = vpop.xlane.xlu0 %4244 }
0x1017   :  { %v4246_v0 = vsub.f32 %v4239_v22, %v4245_v27 }
0x1019   :  { %v4247_v28 = vmul.f32 1.442695, %v4246_v0 }
0x101b   :  { %5707 = vpow2.f32 %v4247_v28 }
0x1028   :  { %v5708_v29 = vpop.eup %5707 }
0x1029   :  { %4249 = vadd.xlane.f32.xlu1 %v5708_v29 }
0x10b2   :  { %v4250_v30 = vpop.xlane.xlu1 %4249 }
0x10b3   :  { %5709 = vrcp.f32 %v4250_v30 }
0x10c0   :  { %v5710_v31 = vpop.eup %5709 }
0x10c1   :  { %v4252_v32 = vmul.f32 %v5710_v31, %v5708_v29 }
0x10c3   :  { %4253 = vst [vmem:[%s6598_s12] sm:$0xff] %v4252_v32 }
0x10c4   :  { %4258 = vsyncpa [#allocation3], 1 }
0x10c5   :  { %4259 = vsyncpa [#allocation5], 1 }
0x10c6   :  { %4260 = vsyncpa [#allocation8], 1 }
0x10c7   :  { %4261 = vsyncpa [#allocation11], 1 }
0x10c8   :  { %4262 = vsyncpa [#allocation14], 1 }
0x10c9   :  { %4263 = vsyncpa [#allocation17], 1 }
0x10ca   :  { %4264 = vsyncpa [#allocation20], 1 }
0x10cb   :  { %4265 = vsyncpa [#allocation23], 1 }
0x10cc   :  { %4266 = vsyncpa [#allocation26], 1 }
0x10cd   :  { %4267 = vsyncpa [#allocation29], 1 }
0x10ce   :  { %4268 = vsyncpa [#allocation32], 1 }
0x10cf   :  { %4269 = vsyncpa [#allocation35], 1 }
0x10d0   :  { %4270 = vsyncpa [#allocation38], 1 }
0x10d1   :  { %4271 = vsyncpa [#allocation41], 1 }
0x10d2   :  { %4272 = vsyncpa [#allocation44], 1 }

</bundles_post_ra>
